<compile_context>
chip_gen: v6e
topology: v6e:2x2x1
jax: 0.10.0
libtpu: 0.0.40
codegen_flags: <defaults>
</compile_context>

<pallas_src>
import functools

import jax
import jax.numpy as jnp
from jax.experimental import pallas as pl
from jax.experimental.pallas import tpu as pltpu

EPS = 1e-5
MM_DTYPE = jnp.bfloat16    # MXU operand dtype (accumulation stays f32)
ACT_DTYPE = jnp.bfloat16   # inter-stage activation storage dtype


# ---------------------------------------------------------------------------
# Kernels
# ---------------------------------------------------------------------------
def _partial_stats(y2d):
    """Per-channel [sum; sum-of-squares] of an (M, C) f32 tile -> (2, C) f32."""
    s = jnp.sum(y2d, axis=0, keepdims=True)
    ss = jnp.sum(y2d * y2d, axis=0, keepdims=True)
    return jnp.concatenate([s, ss], axis=0)


def _conv1x1_kernel(a_ref, s_ref, t_ref, w_ref, y_ref, stats_ref, *,
                    apply_affine_relu):
    """[optional relu(a*scale+shift)] ; 1x1 conv as one matmul ; partial BN stats."""
    cin = a_ref.shape[-1]
    a = a_ref[...].astype(jnp.float32).reshape(-1, cin)       # (TH*W, Cin) f32
    if apply_affine_relu:
        a = jnp.maximum(a * s_ref[...] + t_ref[...], 0.0)     # (1,Cin) broadcast
    y = jnp.dot(a.astype(MM_DTYPE), w_ref[...],
                preferred_element_type=jnp.float32)            # (TH*W, Cout) f32
    stats_ref[...] = _partial_stats(y).reshape(stats_ref.shape)
    y_ref[...] = y.reshape(y_ref.shape).astype(y_ref.dtype)   # bf16 store


def _conv3x3_kernel(a_ref, s_ref, t_ref, w_ref, y_ref, stats_ref):
    """relu(bn1) ; 3x3 conv (pad=1) as 3 accumulated K=3C matmuls ; partial stats."""
    _, h, w, c = a_ref.shape
    a = a_ref[...].astype(jnp.float32).reshape(h, w, c)        # pre-BN conv1 out
    a = jnp.maximum(a * s_ref[...].reshape(1, 1, c)
                    + t_ref[...].reshape(1, 1, c), 0.0)

    # W-boundary masks / zero tiles hoisted once (previously rebuilt per tap).
    wi = jax.lax.broadcasted_iota(jnp.int32, (h, w, c), 1)
    mask_l = wi >= 1          # valid columns for dx == -1
    mask_r = wi < w - 1       # valid columns for dx == +1
    zero = jnp.zeros((h, w, c), jnp.float32)
    hpad = jnp.zeros((1, w, c), jnp.float32)

    def shift_h(v, dy):                    # out[i] = v[i+dy], zero padded
        if dy == 0:
            return v
        if dy == 1:
            return jnp.concatenate([v[1:], hpad], axis=0)
        return jnp.concatenate([hpad, v[:h - 1]], axis=0)

    def shift_w(v, dx):                    # out[:, j] = v[:, j+dx], zero padded
        if dx == 0:
            return v
        rolled = pltpu.roll(v, shift=(-dx) % w, axis=1)        # XLU sublane rotate
        return jnp.where(mask_r if dx == 1 else mask_l, rolled, zero)

    # Per-ky groups of 3 taps: three K=3C matmuls accumulated in f32 instead of
    # one K=9C matmul over a 9-wide lane concat -> only one tap group live at a
    # time and no large lane relayout.
    cout = w_ref.shape[-1]
    acc = None
    for ky in range(3):
        vh = shift_h(a, ky - 1)
        grp = jnp.concatenate([shift_w(vh, dx) for dx in (-1, 0, 1)], axis=-1)
        grp = grp.astype(MM_DTYPE).reshape(h * w, 3 * c)
        part = jnp.dot(grp, w_ref[pl.ds(ky * 3 * c, 3 * c), :],
                       preferred_element_type=jnp.float32)
        acc = part if acc is None else acc + part              # (HW, Cout) f32

    stats_ref[...] = _partial_stats(acc).reshape(stats_ref.shape)
    y_ref[...] = acc.reshape(1, h, w, cout).astype(y_ref.dtype)


def _final_kernel(y_ref, s_ref, t_ref, x_ref, o_ref):
    """out = relu(bn3(y3) + residual)."""
    c = o_ref.shape[-1]
    scale = s_ref[...].reshape(1, 1, 1, c)
    shift = t_ref[...].reshape(1, 1, 1, c)
    o_ref[...] = jnp.maximum(y_ref[...].astype(jnp.float32) * scale + shift
                             + x_ref[...], 0.0)


# ---------------------------------------------------------------------------
# Wrapper helpers
# ---------------------------------------------------------------------------
def _const_spec(shape, grid_rank):
    zeros = (0,) * len(shape)
    if grid_rank == 1:
        return pl.BlockSpec(tuple(shape), lambda i: zeros)
    return pl.BlockSpec(tuple(shape), lambda i, t: zeros)


def _compiler_params(grid_rank):
    # ~75% of physical VMEM: ~48 MiB on v7x, ~96 MiB on v5e/v6e.
    try:
        limit = int(pltpu.get_tpu_info().vmem_capacity_bytes * 3 // 4)
    except Exception:
        limit = 48 * 1024 * 1024
    return pltpu.CompilerParams(dimension_semantics=("parallel",) * grid_rank,
                                vmem_limit_bytes=limit)


def _pick_row_tile(h, n_batch, min_steps=4):
    """Row tile for the 1x1 / final stages: enough parallel grid steps for
    v7x's two TensorCores with small batches, bounded per-step VMEM, but the
    largest tile that still reaches `min_steps` (per-step overhead ~0.35us)."""
    for t in sorted({d for d in range(1, h + 1) if h % d == 0}, reverse=True):
        if t <= 8 or n_batch * (h // t) >= min_steps:
            return t
    return 1


def _bn_scale_shift(stats, gamma, beta, count):
    c = stats.shape[-1]
    tot = jnp.sum(stats.reshape(-1, 2, c), axis=0)            # fold all partials
    mean = tot[0] / count
    # NOTE: E[x^2]-E[x]^2 from f32 partial sums; fine at these scales (Welford /
    # shifted accumulation would be needed for very large N*H*W).
    var = tot[1] / count - mean * mean                        # biased (train mode)
    scale = gamma.reshape(-1) * jax.lax.rsqrt(var + EPS)
    shift = beta.reshape(-1) - mean * scale
    return scale.reshape(1, -1), shift.reshape(1, -1)


# ---------------------------------------------------------------------------
# Stages
# ---------------------------------------------------------------------------
def _conv1x1_stage(a, scale, shift, w, cout, th, apply_affine_relu):
    n, h, wdim, cin = a.shape
    nt = h // th
    kernel = functools.partial(_conv1x1_kernel,
                               apply_affine_relu=apply_affine_relu)
    y, stats = pl.pallas_call(
        kernel,
        out_shape=(jax.ShapeDtypeStruct((n, h, wdim, cout), ACT_DTYPE),
                   jax.ShapeDtypeStruct((n, nt, 2, cout), jnp.float32)),
        grid=(n, nt),
        in_specs=[pl.BlockSpec((1, th, wdim, cin), lambda i, t: (i, t, 0, 0)),
                  _const_spec(scale.shape, 2),
                  _const_spec(shift.shape, 2),
                  _const_spec(w.shape, 2)],
        out_specs=(pl.BlockSpec((1, th, wdim, cout), lambda i, t: (i, t, 0, 0)),
                   pl.BlockSpec((1, 1, 2, cout), lambda i, t: (i, t, 0, 0))),
        compiler_params=_compiler_params(2),
    )(a, scale, shift, w)
    return y, stats


def _conv3x3_stage(y1, scale, shift, w2p):
    n, h, wdim, c = y1.shape
    cout = w2p.shape[-1]
    y2, stats = pl.pallas_call(
        _conv3x3_kernel,
        out_shape=(jax.ShapeDtypeStruct((n, h, wdim, cout), ACT_DTYPE),
                   jax.ShapeDtypeStruct((n, 2, cout), jnp.float32)),
        grid=(n,),
        in_specs=[pl.BlockSpec((1, h, wdim, c), lambda i: (i, 0, 0, 0)),
                  _const_spec(scale.shape, 1),
                  _const_spec(shift.shape, 1),
                  _const_spec(w2p.shape, 1)],
        out_specs=(pl.BlockSpec((1, h, wdim, cout), lambda i: (i, 0, 0, 0)),
                   pl.BlockSpec((1, 2, cout), lambda i: (i, 0, 0))),
        compiler_params=_compiler_params(1),
    )(y1, scale, shift, w2p)
    return y2, stats


def _final_stage(y3, s3, t3, x, th):
    n, h, wdim, c4 = x.shape
    nt = h // th
    return pl.pallas_call(
        _final_kernel,
        out_shape=jax.ShapeDtypeStruct((n, h, wdim, c4), jnp.float32),
        grid=(n, nt),
        in_specs=[pl.BlockSpec((1, th, wdim, c4), lambda i, t: (i, t, 0, 0)),
                  _const_spec(s3.shape, 2),
                  _const_spec(t3.shape, 2),
                  pl.BlockSpec((1, th, wdim, c4), lambda i, t: (i, t, 0, 0))],
        out_specs=pl.BlockSpec((1, th, wdim, c4), lambda i, t: (i, t, 0, 0)),
        compiler_params=_compiler_params(2),
    )(y3, s3, t3, x)


@jax.jit
def bottleneck_forward(x, params):
    # TODO(synk): conv-block variant (stride != 1 / downsample path) and the
    # surrounding ResNet graph (stem conv/maxpool, avgpool, fc) not implemented;
    # identity bottleneck only (inplanes == 4*planes, stride=1).
    w1, w2, w3, g1, b1, g2, b2, g3, b3 = params
    n, h, wdim, cin = x.shape
    p = w1.shape[1]
    c4 = w3.shape[1]
    count = float(n * h * wdim)
    th = _pick_row_tile(h, n)

    w1b = w1.astype(MM_DTYPE)                     # (Cin, P)
    w2b = w2.reshape(9 * p, p).astype(MM_DTYPE)   # (9P, P), (ky,kx,cin) row order
    w3b = w3.astype(MM_DTYPE)                     # (P, 4P)
    dummy = jnp.zeros((1, cin), jnp.float32)      # stage-1 kernel ignores these

    # conv1 (1x1) + BN1 partial stats.  (y1 kept: re-reading x (4P f32 channels)
    # inside conv2 would cost more HBM than the bf16 y1 round trip.)
    y1, st1 = _conv1x1_stage(x, dummy, dummy, w1b, p, th, apply_affine_relu=False)
    s1, t1 = _bn_scale_shift(st1, g1, b1, count)

    # bn1+relu fused into conv2 (3x3, per-ky accumulated matmuls) + BN2 partials.
    y2, st2 = _conv3x3_stage(y1, s1, t1, w2b)
    s2, t2 = _bn_scale_shift(st2, g2, b2, count)

    # bn2+relu fused into conv3 (1x1) + BN3 partials.
    y3, st3 = _conv1x1_stage(y2, s2, t2, w3b, c4, th, apply_affine_relu=True)
    s3, t3 = _bn_scale_shift(st3, g3, b3, count)

    # bn3 + residual add + relu.
    return _final_stage(y3, s3, t3, x, th)


# ---------------------------------------------------------------------------
# Pure-XLA reference (mirrors the kernel's bf16 matmul operands and bf16
# inter-stage activation storage; stats always from the f32 conv output).
# ---------------------------------------------------------------------------
def _ref_forward(x, params, mm_dtype=jnp.float32, act_dtype=jnp.float32):
    w1, w2, w3, g1, b1, g2, b2, g3, b3 = params

    def conv(a, w, same):
        dn = ('NHWC', 'HWIO', 'NHWC')
        return jax.lax.conv_general_dilated(
            a.astype(mm_dtype), w.astype(mm_dtype), (1, 1),
            'SAME' if same else 'VALID', dimension_numbers=dn,
            preferred_element_type=jnp.float32)

    def bn_affine(y, g, b):
        m = y.mean(axis=(0, 1, 2))
        var = (y * y).mean(axis=(0, 1, 2)) - m * m
        scale = g * jax.lax.rsqrt(var + EPS)
        shift = b - m * scale
        yq = y.astype(act_dtype).astype(jnp.float32)   # inter-stage storage quant
        return yq * scale + shift

    y = jax.nn.relu(bn_affine(conv(x, w1[None, None], False), g1, b1))
    y = jax.nn.relu(bn_affine(conv(y, w2, True), g2, b2))
    y = bn_affine(conv(y, w3[None, None], False), g3, b3)
    return jax.nn.relu(y + x)


if __name__ == "__main__":
    # TODO(synk): tune / benchmark at real ResNet-50 shapes (C in {64,256,...},
    # H=W in {56,28,14,7}); this toy config is for correctness only.
    key = jax.random.PRNGKey(0)
    N, H, W = 2, 16, 16
    planes = 4
    inplanes = planes * 4   # expansion=4; identity block needs inplanes == 4*planes

    ks = jax.random.split(key, 10)
    x = jax.random.normal(ks[0], (N, H, W, inplanes), jnp.float32)
    w1 = 0.1 * jax.random.normal(ks[1], (inplanes, planes), jnp.float32)      # 1x1
    w2 = 0.1 * jax.random.normal(ks[2], (3, 3, planes, planes), jnp.float32)  # 3x3 HWIO
    w3 = 0.1 * jax.random.normal(ks[3], (planes, planes * 4), jnp.float32)    # 1x1
    g1 = 1.0 + 0.1 * jax.random.normal(ks[4], (planes,), jnp.float32)
    b1 = 0.1 * jax.random.normal(ks[5], (planes,), jnp.float32)
    g2 = 1.0 + 0.1 * jax.random.normal(ks[6], (planes,), jnp.float32)
    b2 = 0.1 * jax.random.normal(ks[7], (planes,), jnp.float32)
    g3 = 1.0 + 0.1 * jax.random.normal(ks[8], (planes * 4,), jnp.float32)
    b3 = 0.1 * jax.random.normal(ks[9], (planes * 4,), jnp.float32)
    params = (w1, w2, w3, g1, b1, g2, b2, g3, b3)

    out = jax.block_until_ready(bottleneck_forward(x, params))
    assert out.shape == (N, H, W, planes * 4)

    # Tight check vs an XLA reference with the same bf16 matmul operands and
    # bf16 inter-stage activation quantization (f32 accumulation in both).
    ref_q = jax.block_until_ready(
        _ref_forward(x, params, mm_dtype=MM_DTYPE, act_dtype=ACT_DTYPE))
    assert jnp.allclose(out, ref_q, atol=3e-2, rtol=3e-2), \
        "mismatch vs bf16-quantized XLA reference"

    # Sanity bound vs the pure-f32 reference (bf16 MXU + bf16 storage error only).
    ref_f32 = jax.block_until_ready(_ref_forward(x, params))
    assert float(jnp.max(jnp.abs(out - ref_f32))) < 0.35, \
        "kernel drifted too far from f32 reference"

    print("KERNEL_OK")
</pallas_src>

<mosaic_0001>
module attributes {stable_mosaic.version = 11 : i64} {
  func.func @_conv3x3_kernel(%arg0: i32, %arg1: memref<1x16x16x4xbf16, #tpu.memory_space<vmem>>, %arg2: memref<1x4xf32, #tpu.memory_space<vmem>>, %arg3: memref<1x4xf32, #tpu.memory_space<vmem>>, %arg4: memref<36x4xbf16, #tpu.memory_space<vmem>>, %arg5: memref<1x16x16x4xbf16, #tpu.memory_space<vmem>>, %arg6: memref<1x2x4xf32, #tpu.memory_space<vmem>>) attributes {dimension_semantics = [#tpu.dimension_semantics<parallel>], iteration_bounds = array<i64: 2>, scalar_prefetch = 0 : i64, scratch_operands = 0 : i64, tpu.core_type = #tpu.core_type<tc>, window_params = [{transform_indices = @transform_0, window_bounds = array<i64: 1, 16, 16, 4>}, {pipeline_mode = #tpu.pipeline_mode<synchronous>, transform_indices = @transform_1, window_bounds = array<i64: 1, 4>}, {pipeline_mode = #tpu.pipeline_mode<synchronous>, transform_indices = @transform_2, window_bounds = array<i64: 1, 4>}, {pipeline_mode = #tpu.pipeline_mode<synchronous>, transform_indices = @transform_3, window_bounds = array<i64: 36, 4>}, {transform_indices = @transform_4, window_bounds = array<i64: 1, 16, 16, 4>}, {transform_indices = @transform_5, window_bounds = array<i64: 1, 2, 4>}]} {
    %c0 = arith.constant 0 : index
    %c0_0 = arith.constant 0 : index
    %c0_1 = arith.constant 0 : index
    %c0_2 = arith.constant 0 : index
    %0 = vector.load %arg1[%c0, %c0_0, %c0_1, %c0_2] : memref<1x16x16x4xbf16, #tpu.memory_space<vmem>>, vector<1x16x16x4xbf16>
    %1 = arith.extf %0 : vector<1x16x16x4xbf16> to vector<1x16x16x4xf32>
    %2 = vector.shape_cast %1 : vector<1x16x16x4xf32> to vector<16x16x4xf32>
    %c0_3 = arith.constant 0 : index
    %c0_4 = arith.constant 0 : index
    %3 = vector.load %arg2[%c0_3, %c0_4] : memref<1x4xf32, #tpu.memory_space<vmem>>, vector<1x4xf32>
    %4 = vector.shape_cast %3 : vector<1x4xf32> to vector<1x1x4xf32>
    %5 = vector.broadcast %4 : vector<1x1x4xf32> to vector<16x16x4xf32>
    %6 = arith.mulf %2, %5 : vector<16x16x4xf32>
    %c0_5 = arith.constant 0 : index
    %c0_6 = arith.constant 0 : index
    %7 = vector.load %arg3[%c0_5, %c0_6] : memref<1x4xf32, #tpu.memory_space<vmem>>, vector<1x4xf32>
    %8 = vector.shape_cast %7 : vector<1x4xf32> to vector<1x1x4xf32>
    %9 = vector.broadcast %8 : vector<1x1x4xf32> to vector<16x16x4xf32>
    %10 = arith.addf %6, %9 : vector<16x16x4xf32>
    %cst = arith.constant 0.000000e+00 : f32
    %11 = vector.broadcast %cst : f32 to vector<16x16x4xf32>
    %12 = arith.maximumf %10, %11 : vector<16x16x4xf32>
    %13 = tpu.iota {dimensions = array<i32: 1>} : vector<16x16x4xi32>
    %c1_i32 = arith.constant 1 : i32
    %14 = vector.broadcast %c1_i32 : i32 to vector<16x16x4xi32>
    %15 = arith.cmpi sge, %13, %14 : vector<16x16x4xi32>
    %c15_i32 = arith.constant 15 : i32
    %16 = vector.broadcast %c15_i32 : i32 to vector<16x16x4xi32>
    %17 = arith.cmpi slt, %13, %16 : vector<16x16x4xi32>
    %cst_7 = arith.constant 0.000000e+00 : f32
    %18 = vector.broadcast %cst_7 : f32 to vector<16x16x4xf32>
    %cst_8 = arith.constant 0.000000e+00 : f32
    %19 = vector.broadcast %cst_8 : f32 to vector<1x16x4xf32>
    %20 = vector.extract_strided_slice %12 {offsets = [0, 0, 0], sizes = [15, 16, 4], strides = [1, 1, 1]} : vector<16x16x4xf32> to vector<15x16x4xf32>
    %21 = tpu.concatenate %19, %20 in 0 : vector<1x16x4xf32>, vector<15x16x4xf32> -> vector<16x16x4xf32>
    %c1_i32_9 = arith.constant 1 : i32
    %22 = tpu.dynamic_rotate %21 by %c1_i32_9 dim 1 : vector<16x16x4xf32>, i32 -> vector<16x16x4xf32>
    %23 = arith.select %15, %22, %18 : vector<16x16x4xi1>, vector<16x16x4xf32>
    %c15_i32_10 = arith.constant 15 : i32
    %24 = tpu.dynamic_rotate %21 by %c15_i32_10 dim 1 : vector<16x16x4xf32>, i32 -> vector<16x16x4xf32>
    %25 = arith.select %17, %24, %18 : vector<16x16x4xi1>, vector<16x16x4xf32>
    %26 = tpu.concatenate %23, %21, %25 in 2 : vector<16x16x4xf32>, vector<16x16x4xf32>, vector<16x16x4xf32> -> vector<16x16x12xf32>
    %27 = arith.truncf %26 : vector<16x16x12xf32> to vector<16x16x12xbf16>
    %28 = vector.shape_cast %27 : vector<16x16x12xbf16> to vector<256x12xbf16>
    %c0_11 = arith.constant 0 : index
    %c0_12 = arith.constant 0 : index
    %29 = vector.load %arg4[%c0_11, %c0_12] : memref<36x4xbf16, #tpu.memory_space<vmem>>, vector<12x4xbf16>
    %cst_13 = arith.constant dense<0.000000e+00> : vector<256x4xf32>
    %30 = tpu.matmul %28, %29, %cst_13 {dimension_numbers = #tpu.dot_dimension_numbers<[1], [0], [0], [1], [0, 0, 1, 1], [], []>} : vector<256x12xbf16>, vector<12x4xbf16>, vector<256x4xf32> -> vector<256x4xf32>
    %c1_i32_14 = arith.constant 1 : i32
    %31 = tpu.dynamic_rotate %12 by %c1_i32_14 dim 1 : vector<16x16x4xf32>, i32 -> vector<16x16x4xf32>
    %32 = arith.select %15, %31, %18 : vector<16x16x4xi1>, vector<16x16x4xf32>
    %c15_i32_15 = arith.constant 15 : i32
    %33 = tpu.dynamic_rotate %12 by %c15_i32_15 dim 1 : vector<16x16x4xf32>, i32 -> vector<16x16x4xf32>
    %34 = arith.select %17, %33, %18 : vector<16x16x4xi1>, vector<16x16x4xf32>
    %35 = tpu.concatenate %32, %12, %34 in 2 : vector<16x16x4xf32>, vector<16x16x4xf32>, vector<16x16x4xf32> -> vector<16x16x12xf32>
    %36 = arith.truncf %35 : vector<16x16x12xf32> to vector<16x16x12xbf16>
    %37 = vector.shape_cast %36 : vector<16x16x12xbf16> to vector<256x12xbf16>
    %c12 = arith.constant 12 : index
    %c0_16 = arith.constant 0 : index
    %38 = vector.load %arg4[%c12, %c0_16] : memref<36x4xbf16, #tpu.memory_space<vmem>>, vector<12x4xbf16>
    %cst_17 = arith.constant dense<0.000000e+00> : vector<256x4xf32>
    %39 = tpu.matmul %37, %38, %cst_17 {dimension_numbers = #tpu.dot_dimension_numbers<[1], [0], [0], [1], [0, 0, 1, 1], [], []>} : vector<256x12xbf16>, vector<12x4xbf16>, vector<256x4xf32> -> vector<256x4xf32>
    %40 = arith.addf %30, %39 : vector<256x4xf32>
    %41 = vector.extract_strided_slice %12 {offsets = [1, 0, 0], sizes = [15, 16, 4], strides = [1, 1, 1]} : vector<16x16x4xf32> to vector<15x16x4xf32>
    %42 = tpu.concatenate %41, %19 in 0 : vector<15x16x4xf32>, vector<1x16x4xf32> -> vector<16x16x4xf32>
    %c1_i32_18 = arith.constant 1 : i32
    %43 = tpu.dynamic_rotate %42 by %c1_i32_18 dim 1 : vector<16x16x4xf32>, i32 -> vector<16x16x4xf32>
    %44 = arith.select %15, %43, %18 : vector<16x16x4xi1>, vector<16x16x4xf32>
    %c15_i32_19 = arith.constant 15 : i32
    %45 = tpu.dynamic_rotate %42 by %c15_i32_19 dim 1 : vector<16x16x4xf32>, i32 -> vector<16x16x4xf32>
    %46 = arith.select %17, %45, %18 : vector<16x16x4xi1>, vector<16x16x4xf32>
    %47 = tpu.concatenate %44, %42, %46 in 2 : vector<16x16x4xf32>, vector<16x16x4xf32>, vector<16x16x4xf32> -> vector<16x16x12xf32>
    %48 = arith.truncf %47 : vector<16x16x12xf32> to vector<16x16x12xbf16>
    %49 = vector.shape_cast %48 : vector<16x16x12xbf16> to vector<256x12xbf16>
    %c24 = arith.constant 24 : index
    %c0_20 = arith.constant 0 : index
    %50 = vector.load %arg4[%c24, %c0_20] : memref<36x4xbf16, #tpu.memory_space<vmem>>, vector<12x4xbf16>
    %cst_21 = arith.constant dense<0.000000e+00> : vector<256x4xf32>
    %51 = tpu.matmul %49, %50, %cst_21 {dimension_numbers = #tpu.dot_dimension_numbers<[1], [0], [0], [1], [0, 0, 1, 1], [], []>} : vector<256x12xbf16>, vector<12x4xbf16>, vector<256x4xf32> -> vector<256x4xf32>
    %52 = arith.addf %40, %51 : vector<256x4xf32>
    %cst_22 = arith.constant dense<0.000000e+00> : vector<4xf32>
    %53 = vector.multi_reduction <add>, %52, %cst_22 [0] : vector<256x4xf32> to vector<4xf32>
    %54 = vector.shape_cast %53 : vector<4xf32> to vector<1x4xf32>
    %55 = arith.mulf %52, %52 : vector<256x4xf32>
    %cst_23 = arith.constant dense<0.000000e+00> : vector<4xf32>
    %56 = vector.multi_reduction <add>, %55, %cst_23 [0] : vector<256x4xf32> to vector<4xf32>
    %57 = vector.shape_cast %56 : vector<4xf32> to vector<1x4xf32>
    %58 = tpu.concatenate %54, %57 in 0 : vector<1x4xf32>, vector<1x4xf32> -> vector<2x4xf32>
    %59 = vector.shape_cast %58 : vector<2x4xf32> to vector<1x2x4xf32>
    %c0_24 = arith.constant 0 : index
    %c0_25 = arith.constant 0 : index
    %c0_26 = arith.constant 0 : index
    %60 = vector.load %arg6[%c0_24, %c0_25, %c0_26] : memref<1x2x4xf32, #tpu.memory_space<vmem>>, vector<1x2x4xf32>
    tpu.vector_store %arg6[%c0_24, %c0_25, %c0_26], %59 {strides = array<i32>} : memref<1x2x4xf32, #tpu.memory_space<vmem>>, vector<1x2x4xf32>,
    %61 = vector.shape_cast %52 : vector<256x4xf32> to vector<1x16x16x4xf32>
    %62 = arith.truncf %61 : vector<1x16x16x4xf32> to vector<1x16x16x4xbf16>
    %c0_27 = arith.constant 0 : index
    %c0_28 = arith.constant 0 : index
    %c0_29 = arith.constant 0 : index
    %c0_30 = arith.constant 0 : index
    %63 = vector.load %arg5[%c0_27, %c0_28, %c0_29, %c0_30] : memref<1x16x16x4xbf16, #tpu.memory_space<vmem>>, vector<1x16x16x4xbf16>
    tpu.vector_store %arg5[%c0_27, %c0_28, %c0_29, %c0_30], %62 {strides = array<i32>} : memref<1x16x16x4xbf16, #tpu.memory_space<vmem>>, vector<1x16x16x4xbf16>,
    return
  }
  func.func @transform_0(%arg0: i32) -> (i32, i32, i32, i32) {
    %c0_i32 = arith.constant 0 : i32
    %c0_i32_0 = arith.constant 0 : i32
    %c0_i32_1 = arith.constant 0 : i32
    %c0_i32_2 = arith.constant 0 : i32
    return %arg0, %c0_i32, %c0_i32_0, %c0_i32_1 : i32, i32, i32, i32
  }
  func.func @transform_1(%arg0: i32) -> (i32, i32) {
    %c0_i32 = arith.constant 0 : i32
    %c0_i32_0 = arith.constant 0 : i32
    %c0_i32_1 = arith.constant 0 : i32
    return %c0_i32, %c0_i32_0 : i32, i32
  }
  func.func @transform_2(%arg0: i32) -> (i32, i32) {
    %c0_i32 = arith.constant 0 : i32
    %c0_i32_0 = arith.constant 0 : i32
    %c0_i32_1 = arith.constant 0 : i32
    return %c0_i32, %c0_i32_0 : i32, i32
  }
  func.func @transform_3(%arg0: i32) -> (i32, i32) {
    %c0_i32 = arith.constant 0 : i32
    %c0_i32_0 = arith.constant 0 : i32
    %c0_i32_1 = arith.constant 0 : i32
    return %c0_i32, %c0_i32_0 : i32, i32
  }
  func.func @transform_4(%arg0: i32) -> (i32, i32, i32, i32) {
    %c0_i32 = arith.constant 0 : i32
    %c0_i32_0 = arith.constant 0 : i32
    %c0_i32_1 = arith.constant 0 : i32
    %c0_i32_2 = arith.constant 0 : i32
    return %arg0, %c0_i32, %c0_i32_0, %c0_i32_1 : i32, i32, i32, i32
  }
  func.func @transform_5(%arg0: i32) -> (i32, i32, i32) {
    %c0_i32 = arith.constant 0 : i32
    %c0_i32_0 = arith.constant 0 : i32
    %c0_i32_1 = arith.constant 0 : i32
    return %arg0, %c0_i32, %c0_i32_0 : i32, i32, i32
  }
}

module attributes {stable_mosaic.version = 11 : i64} {
  func.func @_conv1x1_kernel(%arg0: i32, %arg1: i32, %arg2: memref<1x8x16x4xbf16, #tpu.memory_space<vmem>>, %arg3: memref<1x4xf32, #tpu.memory_space<vmem>>, %arg4: memref<1x4xf32, #tpu.memory_space<vmem>>, %arg5: memref<4x16xbf16, #tpu.memory_space<vmem>>, %arg6: memref<1x8x16x16xbf16, #tpu.memory_space<vmem>>, %arg7: memref<1x1x2x16xf32, #tpu.memory_space<vmem>>) attributes {dimension_semantics = [#tpu.dimension_semantics<parallel>, #tpu.dimension_semantics<parallel>], iteration_bounds = array<i64: 2, 2>, scalar_prefetch = 0 : i64, scratch_operands = 0 : i64, tpu.core_type = #tpu.core_type<tc>, window_params = [{transform_indices = @transform_0, window_bounds = array<i64: 1, 8, 16, 4>}, {pipeline_mode = #tpu.pipeline_mode<synchronous>, transform_indices = @transform_1, window_bounds = array<i64: 1, 4>}, {pipeline_mode = #tpu.pipeline_mode<synchronous>, transform_indices = @transform_2, window_bounds = array<i64: 1, 4>}, {pipeline_mode = #tpu.pipeline_mode<synchronous>, transform_indices = @transform_3, window_bounds = array<i64: 4, 16>}, {transform_indices = @transform_4, window_bounds = array<i64: 1, 8, 16, 16>}, {transform_indices = @transform_5, window_bounds = array<i64: 1, 1, 2, 16>}]} {
    %c0 = arith.constant 0 : index
    %c0_0 = arith.constant 0 : index
    %c0_1 = arith.constant 0 : index
    %c0_2 = arith.constant 0 : index
    %0 = vector.load %arg2[%c0, %c0_0, %c0_1, %c0_2] : memref<1x8x16x4xbf16, #tpu.memory_space<vmem>>, vector<1x8x16x4xbf16>
    %1 = arith.extf %0 : vector<1x8x16x4xbf16> to vector<1x8x16x4xf32>
    %2 = vector.shape_cast %1 : vector<1x8x16x4xf32> to vector<128x4xf32>
    %c0_3 = arith.constant 0 : index
    %c0_4 = arith.constant 0 : index
    %3 = vector.load %arg3[%c0_3, %c0_4] : memref<1x4xf32, #tpu.memory_space<vmem>>, vector<1x4xf32>
    %4 = vector.broadcast %3 : vector<1x4xf32> to vector<128x4xf32>
    %5 = arith.mulf %2, %4 : vector<128x4xf32>
    %c0_5 = arith.constant 0 : index
    %c0_6 = arith.constant 0 : index
    %6 = vector.load %arg4[%c0_5, %c0_6] : memref<1x4xf32, #tpu.memory_space<vmem>>, vector<1x4xf32>
    %7 = vector.broadcast %6 : vector<1x4xf32> to vector<128x4xf32>
    %8 = arith.addf %5, %7 : vector<128x4xf32>
    %cst = arith.constant 0.000000e+00 : f32
    %9 = vector.broadcast %cst : f32 to vector<128x4xf32>
    %10 = arith.maximumf %8, %9 : vector<128x4xf32>
    %11 = arith.truncf %10 : vector<128x4xf32> to vector<128x4xbf16>
    %c0_7 = arith.constant 0 : index
    %c0_8 = arith.constant 0 : index
    %12 = vector.load %arg5[%c0_7, %c0_8] : memref<4x16xbf16, #tpu.memory_space<vmem>>, vector<4x16xbf16>
    %cst_9 = arith.constant dense<0.000000e+00> : vector<128x16xf32>
    %13 = tpu.matmul %11, %12, %cst_9 {dimension_numbers = #tpu.dot_dimension_numbers<[1], [0], [0], [1], [0, 0, 1, 1], [], []>} : vector<128x4xbf16>, vector<4x16xbf16>, vector<128x16xf32> -> vector<128x16xf32>
    %cst_10 = arith.constant dense<0.000000e+00> : vector<16xf32>
    %14 = vector.multi_reduction <add>, %13, %cst_10 [0] : vector<128x16xf32> to vector<16xf32>
    %15 = vector.shape_cast %14 : vector<16xf32> to vector<1x16xf32>
    %16 = arith.mulf %13, %13 : vector<128x16xf32>
    %cst_11 = arith.constant dense<0.000000e+00> : vector<16xf32>
    %17 = vector.multi_reduction <add>, %16, %cst_11 [0] : vector<128x16xf32> to vector<16xf32>
    %18 = vector.shape_cast %17 : vector<16xf32> to vector<1x16xf32>
    %19 = tpu.concatenate %15, %18 in 0 : vector<1x16xf32>, vector<1x16xf32> -> vector<2x16xf32>
    %20 = vector.shape_cast %19 : vector<2x16xf32> to vector<1x1x2x16xf32>
    %c0_12 = arith.constant 0 : index
    %c0_13 = arith.constant 0 : index
    %c0_14 = arith.constant 0 : index
    %c0_15 = arith.constant 0 : index
    %21 = vector.load %arg7[%c0_12, %c0_13, %c0_14, %c0_15] : memref<1x1x2x16xf32, #tpu.memory_space<vmem>>, vector<1x1x2x16xf32>
    tpu.vector_store %arg7[%c0_12, %c0_13, %c0_14, %c0_15], %20 {strides = array<i32>} : memref<1x1x2x16xf32, #tpu.memory_space<vmem>>, vector<1x1x2x16xf32>,
    %22 = vector.shape_cast %13 : vector<128x16xf32> to vector<1x8x16x16xf32>
    %23 = arith.truncf %22 : vector<1x8x16x16xf32> to vector<1x8x16x16xbf16>
    %c0_16 = arith.constant 0 : index
    %c0_17 = arith.constant 0 : index
    %c0_18 = arith.constant 0 : index
    %c0_19 = arith.constant 0 : index
    %24 = vector.load %arg6[%c0_16, %c0_17, %c0_18, %c0_19] : memref<1x8x16x16xbf16, #tpu.memory_space<vmem>>, vector<1x8x16x16xbf16>
    tpu.vector_store %arg6[%c0_16, %c0_17, %c0_18, %c0_19], %23 {strides = array<i32>} : memref<1x8x16x16xbf16, #tpu.memory_space<vmem>>, vector<1x8x16x16xbf16>,
    return
  }
  func.func @transform_0(%arg0: i32, %arg1: i32) -> (i32, i32, i32, i32) {
    %c0_i32 = arith.constant 0 : i32
    %c0_i32_0 = arith.constant 0 : i32
    %c0_i32_1 = arith.constant 0 : i32
    return %arg0, %arg1, %c0_i32, %c0_i32_0 : i32, i32, i32, i32
  }
  func.func @transform_1(%arg0: i32, %arg1: i32) -> (i32, i32) {
    %c0_i32 = arith.constant 0 : i32
    %c0_i32_0 = arith.constant 0 : i32
    %c0_i32_1 = arith.constant 0 : i32
    return %c0_i32, %c0_i32_0 : i32, i32
  }
  func.func @transform_2(%arg0: i32, %arg1: i32) -> (i32, i32) {
    %c0_i32 = arith.constant 0 : i32
    %c0_i32_0 = arith.constant 0 : i32
    %c0_i32_1 = arith.constant 0 : i32
    return %c0_i32, %c0_i32_0 : i32, i32
  }
  func.func @transform_3(%arg0: i32, %arg1: i32) -> (i32, i32) {
    %c0_i32 = arith.constant 0 : i32
    %c0_i32_0 = arith.constant 0 : i32
    %c0_i32_1 = arith.constant 0 : i32
    return %c0_i32, %c0_i32_0 : i32, i32
  }
  func.func @transform_4(%arg0: i32, %arg1: i32) -> (i32, i32, i32, i32) {
    %c0_i32 = arith.constant 0 : i32
    %c0_i32_0 = arith.constant 0 : i32
    %c0_i32_1 = arith.constant 0 : i32
    return %arg0, %arg1, %c0_i32, %c0_i32_0 : i32, i32, i32, i32
  }
  func.func @transform_5(%arg0: i32, %arg1: i32) -> (i32, i32, i32, i32) {
    %c0_i32 = arith.constant 0 : i32
    %c0_i32_0 = arith.constant 0 : i32
    %c0_i32_1 = arith.constant 0 : i32
    return %arg0, %arg1, %c0_i32, %c0_i32_0 : i32, i32, i32, i32
  }
}

module attributes {stable_mosaic.version = 11 : i64} {
  func.func @_conv1x1_kernel(%arg0: i32, %arg1: i32, %arg2: memref<1x8x16x16xf32, #tpu.memory_space<vmem>>, %arg3: memref<1x16xf32, #tpu.memory_space<vmem>>, %arg4: memref<1x16xf32, #tpu.memory_space<vmem>>, %arg5: memref<16x4xbf16, #tpu.memory_space<vmem>>, %arg6: memref<1x8x16x4xbf16, #tpu.memory_space<vmem>>, %arg7: memref<1x1x2x4xf32, #tpu.memory_space<vmem>>) attributes {dimension_semantics = [#tpu.dimension_semantics<parallel>, #tpu.dimension_semantics<parallel>], iteration_bounds = array<i64: 2, 2>, scalar_prefetch = 0 : i64, scratch_operands = 0 : i64, tpu.core_type = #tpu.core_type<tc>, window_params = [{transform_indices = @transform_0, window_bounds = array<i64: 1, 8, 16, 16>}, {pipeline_mode = #tpu.pipeline_mode<synchronous>, transform_indices = @transform_1, window_bounds = array<i64: 1, 16>}, {pipeline_mode = #tpu.pipeline_mode<synchronous>, transform_indices = @transform_2, window_bounds = array<i64: 1, 16>}, {pipeline_mode = #tpu.pipeline_mode<synchronous>, transform_indices = @transform_3, window_bounds = array<i64: 16, 4>}, {transform_indices = @transform_4, window_bounds = array<i64: 1, 8, 16, 4>}, {transform_indices = @transform_5, window_bounds = array<i64: 1, 1, 2, 4>}]} {
    %c0 = arith.constant 0 : index
    %c0_0 = arith.constant 0 : index
    %c0_1 = arith.constant 0 : index
    %c0_2 = arith.constant 0 : index
    %0 = vector.load %arg2[%c0, %c0_0, %c0_1, %c0_2] : memref<1x8x16x16xf32, #tpu.memory_space<vmem>>, vector<1x8x16x16xf32>
    %1 = vector.shape_cast %0 : vector<1x8x16x16xf32> to vector<128x16xf32>
    %2 = arith.truncf %1 : vector<128x16xf32> to vector<128x16xbf16>
    %c0_3 = arith.constant 0 : index
    %c0_4 = arith.constant 0 : index
    %3 = vector.load %arg5[%c0_3, %c0_4] : memref<16x4xbf16, #tpu.memory_space<vmem>>, vector<16x4xbf16>
    %cst = arith.constant dense<0.000000e+00> : vector<128x4xf32>
    %4 = tpu.matmul %2, %3, %cst {dimension_numbers = #tpu.dot_dimension_numbers<[1], [0], [0], [1], [0, 0, 1, 1], [], []>} : vector<128x16xbf16>, vector<16x4xbf16>, vector<128x4xf32> -> vector<128x4xf32>
    %cst_5 = arith.constant dense<0.000000e+00> : vector<4xf32>
    %5 = vector.multi_reduction <add>, %4, %cst_5 [0] : vector<128x4xf32> to vector<4xf32>
    %6 = vector.shape_cast %5 : vector<4xf32> to vector<1x4xf32>
    %7 = arith.mulf %4, %4 : vector<128x4xf32>
    %cst_6 = arith.constant dense<0.000000e+00> : vector<4xf32>
    %8 = vector.multi_reduction <add>, %7, %cst_6 [0] : vector<128x4xf32> to vector<4xf32>
    %9 = vector.shape_cast %8 : vector<4xf32> to vector<1x4xf32>
    %10 = tpu.concatenate %6, %9 in 0 : vector<1x4xf32>, vector<1x4xf32> -> vector<2x4xf32>
    %11 = vector.shape_cast %10 : vector<2x4xf32> to vector<1x1x2x4xf32>
    %c0_7 = arith.constant 0 : index
    %c0_8 = arith.constant 0 : index
    %c0_9 = arith.constant 0 : index
    %c0_10 = arith.constant 0 : index
    %12 = vector.load %arg7[%c0_7, %c0_8, %c0_9, %c0_10] : memref<1x1x2x4xf32, #tpu.memory_space<vmem>>, vector<1x1x2x4xf32>
    tpu.vector_store %arg7[%c0_7, %c0_8, %c0_9, %c0_10], %11 {strides = array<i32>} : memref<1x1x2x4xf32, #tpu.memory_space<vmem>>, vector<1x1x2x4xf32>,
    %13 = vector.shape_cast %4 : vector<128x4xf32> to vector<1x8x16x4xf32>
    %14 = arith.truncf %13 : vector<1x8x16x4xf32> to vector<1x8x16x4xbf16>
    %c0_11 = arith.constant 0 : index
    %c0_12 = arith.constant 0 : index
    %c0_13 = arith.constant 0 : index
    %c0_14 = arith.constant 0 : index
    %15 = vector.load %arg6[%c0_11, %c0_12, %c0_13, %c0_14] : memref<1x8x16x4xbf16, #tpu.memory_space<vmem>>, vector<1x8x16x4xbf16>
    tpu.vector_store %arg6[%c0_11, %c0_12, %c0_13, %c0_14], %14 {strides = array<i32>} : memref<1x8x16x4xbf16, #tpu.memory_space<vmem>>, vector<1x8x16x4xbf16>,
    return
  }
  func.func @transform_0(%arg0: i32, %arg1: i32) -> (i32, i32, i32, i32) {
    %c0_i32 = arith.constant 0 : i32
    %c0_i32_0 = arith.constant 0 : i32
    %c0_i32_1 = arith.constant 0 : i32
    return %arg0, %arg1, %c0_i32, %c0_i32_0 : i32, i32, i32, i32
  }
  func.func @transform_1(%arg0: i32, %arg1: i32) -> (i32, i32) {
    %c0_i32 = arith.constant 0 : i32
    %c0_i32_0 = arith.constant 0 : i32
    %c0_i32_1 = arith.constant 0 : i32
    return %c0_i32, %c0_i32_0 : i32, i32
  }
  func.func @transform_2(%arg0: i32, %arg1: i32) -> (i32, i32) {
    %c0_i32 = arith.constant 0 : i32
    %c0_i32_0 = arith.constant 0 : i32
    %c0_i32_1 = arith.constant 0 : i32
    return %c0_i32, %c0_i32_0 : i32, i32
  }
  func.func @transform_3(%arg0: i32, %arg1: i32) -> (i32, i32) {
    %c0_i32 = arith.constant 0 : i32
    %c0_i32_0 = arith.constant 0 : i32
    %c0_i32_1 = arith.constant 0 : i32
    return %c0_i32, %c0_i32_0 : i32, i32
  }
  func.func @transform_4(%arg0: i32, %arg1: i32) -> (i32, i32, i32, i32) {
    %c0_i32 = arith.constant 0 : i32
    %c0_i32_0 = arith.constant 0 : i32
    %c0_i32_1 = arith.constant 0 : i32
    return %arg0, %arg1, %c0_i32, %c0_i32_0 : i32, i32, i32, i32
  }
  func.func @transform_5(%arg0: i32, %arg1: i32) -> (i32, i32, i32, i32) {
    %c0_i32 = arith.constant 0 : i32
    %c0_i32_0 = arith.constant 0 : i32
    %c0_i32_1 = arith.constant 0 : i32
    return %arg0, %arg1, %c0_i32, %c0_i32_0 : i32, i32, i32, i32
  }
}

module attributes {stable_mosaic.version = 11 : i64} {
  func.func @_final_kernel(%arg0: i32, %arg1: i32, %arg2: memref<1x8x16x16xbf16, #tpu.memory_space<vmem>>, %arg3: memref<1x16xf32, #tpu.memory_space<vmem>>, %arg4: memref<1x16xf32, #tpu.memory_space<vmem>>, %arg5: memref<1x8x16x16xf32, #tpu.memory_space<vmem>>, %arg6: memref<1x8x16x16xf32, #tpu.memory_space<vmem>>) attributes {dimension_semantics = [#tpu.dimension_semantics<parallel>, #tpu.dimension_semantics<parallel>], iteration_bounds = array<i64: 2, 2>, scalar_prefetch = 0 : i64, scratch_operands = 0 : i64, tpu.core_type = #tpu.core_type<tc>, window_params = [{transform_indices = @transform_0, window_bounds = array<i64: 1, 8, 16, 16>}, {pipeline_mode = #tpu.pipeline_mode<synchronous>, transform_indices = @transform_1, window_bounds = array<i64: 1, 16>}, {pipeline_mode = #tpu.pipeline_mode<synchronous>, transform_indices = @transform_2, window_bounds = array<i64: 1, 16>}, {transform_indices = @transform_3, window_bounds = array<i64: 1, 8, 16, 16>}, {transform_indices = @transform_4, window_bounds = array<i64: 1, 8, 16, 16>}]} {
    %c0 = arith.constant 0 : index
    %c0_0 = arith.constant 0 : index
    %0 = vector.load %arg3[%c0, %c0_0] : memref<1x16xf32, #tpu.memory_space<vmem>>, vector<1x16xf32>
    %1 = vector.shape_cast %0 : vector<1x16xf32> to vector<1x1x1x16xf32>
    %c0_1 = arith.constant 0 : index
    %c0_2 = arith.constant 0 : index
    %2 = vector.load %arg4[%c0_1, %c0_2] : memref<1x16xf32, #tpu.memory_space<vmem>>, vector<1x16xf32>
    %3 = vector.shape_cast %2 : vector<1x16xf32> to vector<1x1x1x16xf32>
    %c0_3 = arith.constant 0 : index
    %c0_4 = arith.constant 0 : index
    %c0_5 = arith.constant 0 : index
    %c0_6 = arith.constant 0 : index
    %4 = vector.load %arg2[%c0_3, %c0_4, %c0_5, %c0_6] : memref<1x8x16x16xbf16, #tpu.memory_space<vmem>>, vector<1x8x16x16xbf16>
    %5 = arith.extf %4 : vector<1x8x16x16xbf16> to vector<1x8x16x16xf32>
    %6 = vector.broadcast %1 : vector<1x1x1x16xf32> to vector<1x8x16x16xf32>
    %7 = arith.mulf %5, %6 : vector<1x8x16x16xf32>
    %8 = vector.broadcast %3 : vector<1x1x1x16xf32> to vector<1x8x16x16xf32>
    %9 = arith.addf %7, %8 : vector<1x8x16x16xf32>
    %c0_7 = arith.constant 0 : index
    %c0_8 = arith.constant 0 : index
    %c0_9 = arith.constant 0 : index
    %c0_10 = arith.constant 0 : index
    %10 = vector.load %arg5[%c0_7, %c0_8, %c0_9, %c0_10] : memref<1x8x16x16xf32, #tpu.memory_space<vmem>>, vector<1x8x16x16xf32>
    %11 = arith.addf %9, %10 : vector<1x8x16x16xf32>
    %cst = arith.constant 0.000000e+00 : f32
    %12 = vector.broadcast %cst : f32 to vector<1x8x16x16xf32>
    %13 = arith.maximumf %11, %12 : vector<1x8x16x16xf32>
    %c0_11 = arith.constant 0 : index
    %c0_12 = arith.constant 0 : index
    %c0_13 = arith.constant 0 : index
    %c0_14 = arith.constant 0 : index
    %14 = vector.load %arg6[%c0_11, %c0_12, %c0_13, %c0_14] : memref<1x8x16x16xf32, #tpu.memory_space<vmem>>, vector<1x8x16x16xf32>
    tpu.vector_store %arg6[%c0_11, %c0_12, %c0_13, %c0_14], %13 {strides = array<i32>} : memref<1x8x16x16xf32, #tpu.memory_space<vmem>>, vector<1x8x16x16xf32>,
    return
  }
  func.func @transform_0(%arg0: i32, %arg1: i32) -> (i32, i32, i32, i32) {
    %c0_i32 = arith.constant 0 : i32
    %c0_i32_0 = arith.constant 0 : i32
    %c0_i32_1 = arith.constant 0 : i32
    return %arg0, %arg1, %c0_i32, %c0_i32_0 : i32, i32, i32, i32
  }
  func.func @transform_1(%arg0: i32, %arg1: i32) -> (i32, i32) {
    %c0_i32 = arith.constant 0 : i32
    %c0_i32_0 = arith.constant 0 : i32
    %c0_i32_1 = arith.constant 0 : i32
    return %c0_i32, %c0_i32_0 : i32, i32
  }
  func.func @transform_2(%arg0: i32, %arg1: i32) -> (i32, i32) {
    %c0_i32 = arith.constant 0 : i32
    %c0_i32_0 = arith.constant 0 : i32
    %c0_i32_1 = arith.constant 0 : i32
    return %c0_i32, %c0_i32_0 : i32, i32
  }
  func.func @transform_3(%arg0: i32, %arg1: i32) -> (i32, i32, i32, i32) {
    %c0_i32 = arith.constant 0 : i32
    %c0_i32_0 = arith.constant 0 : i32
    %c0_i32_1 = arith.constant 0 : i32
    return %arg0, %arg1, %c0_i32, %c0_i32_0 : i32, i32, i32, i32
  }
  func.func @transform_4(%arg0: i32, %arg1: i32) -> (i32, i32, i32, i32) {
    %c0_i32 = arith.constant 0 : i32
    %c0_i32_0 = arith.constant 0 : i32
    %c0_i32_1 = arith.constant 0 : i32
    return %arg0, %arg1, %c0_i32, %c0_i32_0 : i32, i32, i32, i32
  }
}

</mosaic_0001>

<bundles_post_ra>
// kernel: bottleneck_forward.7
= control target key start
LH: loop header
LB: loop body
LE: loop exit
PB: predicated region body
PF: predicated region fallthrough
CT: control target
= control target key end

     0   :  { %9 = vsyncpa [#allocation3], 0  ;;  %s1049_s0 = inlined_call_operand.vmem [shape: bf16[2,16,16,16], index: 0, kind: input, shape index: {}]   ;;  %s1050_s1 = inlined_call_operand.vmem [shape: f32[1,16], index: 1, kind: input, shape index: {}]   ;;  %s1051_s2 = inlined_call_operand.vmem [shape: f32[1,16], index: 2, kind: input, shape index: {}]   ;;  %s1052_s3 = inlined_call_operand.vmem [shape: f32[2,16,16,16], index: 3, kind: input, shape index: {}]   ;;  %s1053_s4 = inlined_call_operand.hbm [shape: f32[2,16,16,16], index: 4, kind: output, shape index: {}]  }
   0x1   :  { %11 = vsyncpa [#allocation3 + $0x1], 0  ;;  %s793_s15 = smov 0   ;;  %s795_s16 = smov 0  }
   0x2   :  { %s797_s17 = smov 0   ;;  %s799_s18 = smov 0  }
   0x3   :  { %s801_s19 = smov 0   ;;  %s803_s20 = smov 0  }
   0x4   :  { %s805_s21 = smov 0   ;;  %s807_s22 = smov 0  }
   0x5 LB: > { %s535_s23 = sadd.s32 4294967295, %s763_s22   ;;  %s536_s24 = sadd.s32 4294967294, %s763_s22   ;;  %s763_s22 = sphi %s807_s22, %s17_s22   ;;  %s759_s21 = sphi %s805_s21, %s1062_s21   ;;  %s755_s20 = sphi %s803_s20, %s1061_s20   ;;  %s751_s19 = sphi %s801_s19, %s1060_s19   ;;  %s747_s18 = sphi %s799_s18, %s1059_s18   ;;  %s743_s17 = sphi %s797_s17, %s1058_s17   ;;  %s739_s16 = sphi %s795_s16, %s1057_s16   ;;  %s735_s15 = sphi %s793_s15, %s1056_s15  }
   0x6   : > { %s26_s25 = sadd.s32 1, %s755_s20  ;;  %s29_s26 = sadd.s32 1, %s759_s21 }
   0x7   : > { %p27_p0 = scmp.ge.s32.totalorder %s26_s25, 2  ;;  %p146_p1 = scmp.ne.s32.totalorder %s743_s17, %s739_s16 }
   0x8   : > { %p147_p2 = scmp.eq.s32.totalorder %s535_s23, 3  ;;  %p152_p5 = scmp.ne.s32.totalorder %s739_s16, %s735_s15 }
   0x9   : > { %s1064_s25 = smov (%p27_p0, %s26_s25), 0  ;;  %s1066_s26 = smov (!%p27_p0, %s29_s26), %s759_s21 }
   0xa   : > { %s132_s27 = ssub.s32 %s755_s20, %s1064_s25  ;;  %p844_p3 = por %p147_p2, %p146_p1 }
   0xb   : > { %p31_p4 = scmp.ge.s32.totalorder %s1066_s26, 2  ;;  %p153_p6 = scmp.eq.s32.totalorder %s536_s24, 3 }
   0xc   : > { %p539_p7 = scmp.ge.s32.totalorder %s763_s22, 1  ;;  %p205_p9 = scmp.lt.s32.totalorder %s763_s22, 5 }
   0xd   : > { %s1068_s26 = smov (%p31_p4, %s1066_s26), 0  ;;  %p853_p8 = por %p153_p6, %p152_p5 }
   0xe   : > { %s131_s30 = ssub.s32 %s759_s21, %s1068_s26  ;;  %s136_s5 = sadd.s32 1, %s743_s17 }
   0xf   : > { %s133_s6 = sor.u32 %s132_s27, %s131_s30  ;;  %p206_p10 = pnand %p539_p7, %p205_p9 }
  0x10   : > { %p134_p11 = scmp.eq.s32.totalorder %s133_s6, 0  ;;  %s541_s8 = sshll.u32 (!%p206_p10), %s747_s18, 3 }
  0x11   : > { %209 = sbr.rel (%p206_p10) target bundleno = 66 (0x42), region = 36  ;;  %p247_p12 = scmp.lt.s32.totalorder (!%p206_p10), %s751_s19, 1 }
  0x12   : > { %s862_s7 = scalar_select %p134_p11, %s743_s17, %s136_s5  }
  0x13   : > { %p249_p13 = scmp.lt.s32.totalorder (!%p206_p10), %s541_s8, 15  ;;  %s558_s23 = sshll.u32 (!%p206_p10), %s747_s18, 4 }
  0x14   : > { %s554_s24 = sshll.u32 (!%p206_p10), %s751_s19, 5 }
  0x15   : > { %s957_s18 = sadd.s32 (!%p206_p10), %s558_s23, %s554_s24 }
  0x16   : > { %s248_s9 = scalar_select %p247_p12, %s751_s19, 1  ;;  %v875_v0 = vld [vmem:[%s1050_s1] ss:$0 sm:$0xff]  ;;  %vm395_vm0 = vcmask 130048  }
  0x17   : > { %s1070_s8 = smov (!%p249_p13, %s541_s8), 15  ;;  %v888_v5 = vld [vmem:[%s1051_s2] ss:$0 sm:$0xff]  ;;  %s555_s19 = sshll.u32 %s957_s18, 7 }
  0x18   : > { %s543_s10 = sshll.u32 %s248_s9, 5  ;;  %s542_s11 = sshll.u32 %s1070_s8, 1 }
  0x19   : > { %s253_s12 = sadd.s32 %s543_s10, %s542_s11  ;;  %s243_s10 = sand.u32 1, %s739_s16  }
  0x1a   : > { %s544_s13 = sshll.u32 %s253_s12, 2  ;;  %s548_s14 = sshll.u32 %s253_s12, 3 }
  0x1b   : > { %s870_s27 = scalar_lea.vmem %s1049_s0, %s544_s13  ;;  %s881_s9 = scalar_lea.vmem %s1052_s3, %s548_s14 }
  0x1c   : > { %v560_v1 = vld [vmem:[%s870_s27] sm:$0xff]   ;;  %v591_v4 = vld [vmem:[%s870_s27 + $0x8] sm:$0xff]   ;;  %v592_v8 = vld [vmem:[%s870_s27 + $0x10] sm:$0xff]   ;;  %s900_s13 = sshll.u32 %s243_s10, 7  ;;  %s980_s6 = scalar_lea.hbm %s1053_s4, %s555_s19 }
  0x1d   : > { %v561_v2 = vunpack.c.l.bf16 %v560_v1  ;;  %v562_v3 = vunpack.c.h.bf16 %v560_v1  ;;  %v565_v6 = vunpack.c.l.bf16 %v591_v4  ;;  %v566_v7 = vunpack.c.h.bf16 %v591_v4  ;;  %v593_v13 = vld [vmem:[%s870_s27 + $0x18] sm:$0xff]   ;;  %v347_v14 = vld [vmem:[%s881_s9] sm:$0xff]  ;;  %v348_v15 = vld [vmem:[%s881_s9 + $0x8] sm:$0xff]  ;;  %s924_s14 = scalar_lea.vmem [#allocation2], %s900_s13  ;;  %s998_s8 = scalar_lea.sflag [#allocation3], %s243_s10 }
  0x1e   : > { %v569_v11 = vunpack.c.l.bf16 %v592_v8  ;;  %v570_v12 = vunpack.c.h.bf16 %v592_v8  ;;  %v573_v18 = vunpack.c.l.bf16 %v593_v13  ;;  %v574_v19 = vunpack.c.h.bf16 %v593_v13  ;;  %v349_v22 = vld [vmem:[%s881_s9 + $0x10] sm:$0xff]  ;;  %v350_v23 = vld [vmem:[%s881_s9 + $0x18] sm:$0xff]  ;;  %v351_v28 = vld [vmem:[%s881_s9 + $0x20] sm:$0xff]  ;;  %s765_s11 = smov [#allocation2]  }
  0x1f   : > { %v309_v9 = vmul.f32 %v561_v2, %v875_v0  ;;  %v310_v10 = vmul.f32 %v562_v3, %v875_v0  ;;  %v311_v16 = vmul.f32 %v565_v6, %v875_v0  ;;  %v312_v17 = vmul.f32 %v566_v7, %v875_v0  ;;  %v352_v29 = vld [vmem:[%s881_s9 + $0x28] sm:$0xff]  ;;  %v353_v36 = vld [vmem:[%s881_s9 + $0x30] sm:$0xff]  ;;  %v354_v37 = vld [vmem:[%s881_s9 + $0x38] sm:$0xff]  ;;  %s675_s12 = sshll.u32 %s765_s11, 4  ;;  %s676_s12 = int_to_ptr.vmem [resolvable:$false] %s675_s12 }
  0x20   : > { %v313_v24 = vmul.f32 %v569_v11, %v875_v0  ;;  %v314_v25 = vmul.f32 %v570_v12, %v875_v0  ;;  %v315_v30 = vmul.f32 %v573_v18, %v875_v0  ;;  %v316_v31 = vmul.f32 %v574_v19, %v875_v0  ;;  %v594_v42 = vld [vmem:[%s870_s27 + $0x20] sm:$0xff]   ;;  %v595_v47 = vld [vmem:[%s870_s27 + $0x28] sm:$0xff]   ;;  %v596_v52 = vld [vmem:[%s870_s27 + $0x30] sm:$0xff]   ;;  %s677_s13 = scalar_lea.vmem %s676_s12, 4096 }
  0x21   : > { %v331_v20 = vadd.f32 %v888_v5, %v309_v9  ;;  %v332_v21 = vadd.f32 %v888_v5, %v310_v10  ;;  %v333_v26 = vadd.f32 %v888_v5, %v311_v16  ;;  %v334_v27 = vadd.f32 %v888_v5, %v312_v17  ;;  %v597_v57 = vld [vmem:[%s870_s27 + $0x38] sm:$0xff]   ;;  %v355_v3 = vld [vmem:[%s881_s9 + $0x40] sm:$0xff]  ;;  %v356_v4 = vld [vmem:[%s881_s9 + $0x48] sm:$0xff]  ;;  %s429_s27 = sshll.u32 %s924_s14, 4  ;;  %s982_s27 = int_to_ptr.vmem [resolvable:$true] %s429_s27 }
  0x22   : > { %v335_v34 = vadd.f32 %v888_v5, %v313_v24  ;;  %v336_v35 = vadd.f32 %v888_v5, %v314_v25  ;;  %v337_v40 = vadd.f32 %v888_v5, %v315_v30  ;;  %v338_v41 = vadd.f32 %v888_v5, %v316_v31  ;;  %v357_v12 = vld [vmem:[%s881_s9 + $0x50] sm:$0xff]  ;;  %v358_v13 = vld [vmem:[%s881_s9 + $0x58] sm:$0xff]  ;;  %v359_v18 = vld [vmem:[%s881_s9 + $0x60] sm:$0xff]  ;;  %p678_p4 = scmp.lt.s32.totalorder %s982_s27, %s676_s12 }
  0x23   : > { %v363_v32 = vadd.f32 %v347_v14, %v331_v20  ;;  %v364_v33 = vadd.f32 %v348_v15, %v332_v21  ;;  %v365_v38 = vadd.f32 %v349_v22, %v333_v26  ;;  %v366_v39 = vadd.f32 %v350_v23, %v334_v27  ;;  %v360_v19 = vld [vmem:[%s881_s9 + $0x68] sm:$0xff]  ;;  %v361_v26 = vld [vmem:[%s881_s9 + $0x70] sm:$0xff]  ;;  %v362_v27 = vld [vmem:[%s881_s9 + $0x78] sm:$0xff]  ;;  %s671_s9 = scalar_lea.vmem %s982_s27, 2048 }
  0x24   : > { %v367_v45 = vadd.f32 %v351_v28, %v335_v34  ;;  %v368_v46 = vadd.f32 %v352_v29, %v336_v35  ;;  %v369_v50 = vadd.f32 %v353_v36, %v337_v40  ;;  %v370_v51 = vadd.f32 %v354_v37, %v338_v41  ;;  %p672_p0 = scmp.ne.s32.totalorder %s982_s27, %s671_s9  ;;  %p679_p5 = scmp.lt.s32.totalorder %s677_s13, %s671_s9 }
  0x25   : > { %v379_v43 = vmax.f32 %v363_v32, 0.0  ;;  %v380_v44 = vmax.f32 %v364_v33, 0.0  ;;  %v381_v48 = vmax.f32 %v365_v38, 0.0  ;;  %v382_v49 = vmax.f32 %v366_v39, 0.0 }
  0x26   : > { %v383_v53 = vmax.f32 %v367_v45, 0.0  ;;  %v384_v54 = vmax.f32 %v368_v46, 0.0  ;;  %v577_v55 = vunpack.c.l.bf16 %v594_v42  ;;  %v578_v56 = vunpack.c.h.bf16 %v594_v42  ;;  %p673_p1 = pnand %p672_p0, %p844_p3  ;;  %p680_p6 = por %p679_p5, %p678_p4 }
  0x27   : > { %396 = vst.msk [vmem:[%s924_s14] sm:$0xff] %vm395_vm0, %v379_v43  ;;  %397 = vst.msk [vmem:[%s924_s14 + $0x8] sm:$0xff] %vm395_vm0, %v380_v44  ;;  %v385_v58 = vmax.f32 %v369_v50, 0.0  ;;  %v386_v59 = vmax.f32 %v370_v51, 0.0  ;;  %v581_v60 = vunpack.c.l.bf16 %v595_v47  ;;  %v582_v61 = vunpack.c.h.bf16 %v595_v47 }
  0x28   : > { %398 = vst.msk [vmem:[%s924_s14 + $0x10] sm:$0xff] %vm395_vm0, %v381_v48  ;;  %399 = vst.msk [vmem:[%s924_s14 + $0x18] sm:$0xff] %vm395_vm0, %v382_v49  ;;  %v317_v62 = vmul.f32 %v577_v55, %v875_v0  ;;  %v318_v63 = vmul.f32 %v578_v56, %v875_v0  ;;  %v585_v1 = vunpack.c.l.bf16 %v596_v52  ;;  %v586_v2 = vunpack.c.h.bf16 %v596_v52  ;;  %p674_p2 = pneg %p673_p1 }
  0x29   : > { %400 = vst.msk [vmem:[%s924_s14 + $0x20] sm:$0xff] %vm395_vm0, %v383_v53  ;;  %401 = vst.msk [vmem:[%s924_s14 + $0x28] sm:$0xff] %vm395_vm0, %v384_v54  ;;  %v319_v6 = vmul.f32 %v581_v60, %v875_v0  ;;  %v320_v7 = vmul.f32 %v582_v61, %v875_v0  ;;  %v589_v8 = vunpack.c.l.bf16 %v597_v57  ;;  %v590_v9 = vunpack.c.h.bf16 %v597_v57 }
  0x2a   : > { %402 = vst.msk [vmem:[%s924_s14 + $0x30] sm:$0xff] %vm395_vm0, %v385_v58  ;;  %403 = vst.msk [vmem:[%s924_s14 + $0x38] sm:$0xff] %vm395_vm0, %v386_v59  ;;  %v339_v10 = vadd.f32 %v888_v5, %v317_v62  ;;  %v340_v11 = vadd.f32 %v888_v5, %v318_v63  ;;  %v321_v14 = vmul.f32 %v585_v1, %v875_v0  ;;  %p681_p7 = pnand %p680_p6, %p674_p2 }
  0x2b   : > { %v322_v15 = vmul.f32 %v586_v2, %v875_v0  ;;  %v341_v16 = vadd.f32 %v888_v5, %v319_v6  ;;  %v342_v17 = vadd.f32 %v888_v5, %v320_v7  ;;  %v323_v20 = vmul.f32 %v589_v8, %v875_v0 }
  0x2c   : > { %v324_v21 = vmul.f32 %v590_v9, %v875_v0  ;;  %v371_v22 = vadd.f32 %v355_v3, %v339_v10  ;;  %v372_v23 = vadd.f32 %v356_v4, %v340_v11  ;;  %v343_v24 = vadd.f32 %v888_v5, %v321_v14 }
  0x2d   : > { %v344_v25 = vadd.f32 %v888_v5, %v322_v15  ;;  %v373_v28 = vadd.f32 %v357_v12, %v341_v16  ;;  %v374_v29 = vadd.f32 %v358_v13, %v342_v17  ;;  %v345_v30 = vadd.f32 %v888_v5, %v323_v20 }
  0x2e   : > { %v346_v31 = vadd.f32 %v888_v5, %v324_v21  ;;  %v387_v0 = vmax.f32 %v371_v22, 0.0  ;;  %v388_v32 = vmax.f32 %v372_v23, 0.0  ;;  %v375_v33 = vadd.f32 %v359_v18, %v343_v24 }
  0x2f   : > { %v376_v34 = vadd.f32 %v360_v19, %v344_v25  ;;  %v389_v35 = vmax.f32 %v373_v28, 0.0  ;;  %v390_v36 = vmax.f32 %v374_v29, 0.0  ;;  %v377_v37 = vadd.f32 %v361_v26, %v345_v30 }
  0x30   : > { %v378_v38 = vadd.f32 %v362_v27, %v346_v31  ;;  %404 = vst.msk [vmem:[%s924_s14 + $0x40] sm:$0xff] %vm395_vm0, %v387_v0  ;;  %405 = vst.msk [vmem:[%s924_s14 + $0x48] sm:$0xff] %vm395_vm0, %v388_v32  ;;  %v391_v5 = vmax.f32 %v375_v33, 0.0 }
  0x31   : > { %v392_v39 = vmax.f32 %v376_v34, 0.0  ;;  %406 = vst.msk [vmem:[%s924_s14 + $0x50] sm:$0xff] %vm395_vm0, %v389_v35  ;;  %407 = vst.msk [vmem:[%s924_s14 + $0x58] sm:$0xff] %vm395_vm0, %v390_v36  ;;  %v393_v40 = vmax.f32 %v377_v37, 0.0 }
  0x32   : > { %v394_v41 = vmax.f32 %v378_v38, 0.0  ;;  %408 = vst.msk [vmem:[%s924_s14 + $0x60] sm:$0xff] %vm395_vm0, %v391_v5 }
  0x33   : > { %409 = vst.msk [vmem:[%s924_s14 + $0x68] sm:$0xff] %vm395_vm0, %v392_v39  ;;  %410 = vst.msk [vmem:[%s924_s14 + $0x70] sm:$0xff] %vm395_vm0, %v393_v40 }
  0x34   : > { %411 = vst.msk [vmem:[%s924_s14 + $0x78] sm:$0xff] %vm395_vm0, %v394_v41 }
  0x35   : > { %684 = shalt.err (!%p681_p7)
}
  0x36   : > { %s685_s10 = scalar_lea.hbm %s980_s6, 2048  ;;  %s689_s24 = scalar_lea.hbm %s1053_s4, 8192 }
  0x37   : > { %p686_p9 = scmp.ne.s32.totalorder %s980_s6, %s685_s10  ;;  %p690_p12 = scmp.lt.s32.totalorder %s980_s6, %s1053_s4 }
  0x38   : > { %p691_p13 = scmp.lt.s32.totalorder %s689_s24, %s685_s10 }
  0x39   : > { %p687_p10 = pnand %p686_p9, %p844_p3 }
  0x3a   : > { %p692_p0 = por %p691_p13, %p690_p12 }
  0x3b   : > { %p688_p11 = pneg %p687_p10 }
  0x3d   : > { %p693_p1 = pnand %p692_p0, %p688_p11 }
  0x3f   : > { %696 = shalt.err (!%p693_p1)
}
  0x40   : > { %s766_s30 = smov 128   ;;  %s767_s5 = smov 8  }
  0x41   : > { %598 = dma.vmem_to_hbm [thread:$0]  (%p844_p3), %s982_s27, 2048, %s980_s6, %s998_s8, %s766_s30, %s766_s30, %s767_s5  }
  0x42 PF: > { %p604_p2 = scmp.ge.s32.totalorder %s763_s22, 2  ;;  %s444_s9 = sand.u32 1, %s735_s15  }
  0x43   : > { %s445_s11 = scalar_lea.sflag [#allocation3], %s444_s9 }
  0x44   : > { %p601_p4 = pnand %p604_p2, %p853_p8 }
  0x46   : > { %p602_p5 = pneg %p601_p4 }
  0x48   : > { %730 = dma.done.wait (%p602_p5), %s445_s11, 2048  }
  0x49   : > { %732 = vsyncadd (%p602_p5), %s445_s11, 4294965248  ;;  %s17_s22 = sadd.s32 1, %s763_s22   ;;  %s1056_s15 = smov %s739_s16 }
  0x4a   : > { %p14_p6 = scmp.ge.s32.totalorder %s17_s22, 6   ;;  %s1057_s16 = smov %s743_s17 }
  0x4b   : > { %s1058_s17 = smov %s862_s7  ;;  %s1059_s18 = smov %s755_s20 }
  0x4c   : > { %s1060_s19 = smov %s759_s21  ;;  %s1061_s20 = smov %s1064_s25 }
  0x4d   : > { %s1062_s21 = smov %s1068_s26  ;;  %16 = sbr.rel (!%p14_p6) target bundleno = 5 (0x5), region = 74 }
  0x52   :  { %450 = vsyncpa [#allocation3], 1 }
  0x53   :  { %452 = vsyncpa [#allocation3 + $0x1], 1 }

// kernel: bottleneck_forward.6
= control target key start
LH: loop header
LB: loop body
LE: loop exit
PB: predicated region body
PF: predicated region fallthrough
CT: control target
= control target key end

     0   :  { %s1081_s18 = smov 0   ;;  %s1083_s19 = smov 0   ;;  %s1294_s0 = inlined_call_operand.vmem [shape: bf16[2,16,16,4], index: 0, kind: input, shape index: {}]   ;;  %s1295_s1 = inlined_call_operand.vmem [shape: f32[1,4], index: 1, kind: input, shape index: {}]   ;;  %s1296_s2 = inlined_call_operand.vmem [shape: f32[1,4], index: 2, kind: input, shape index: {}]   ;;  %s1297_s3 = inlined_call_operand.vmem [shape: bf16[4,16], index: 3, kind: input, shape index: {}]   ;;  %s1298_s4 = inlined_call_operand.vmem [shape: bf16[2,16,16,16], index: 4, kind: output, shape index: {0}]   ;;  %s1299_s5 = inlined_call_operand.vmem [shape: f32[2,2,2,16], index: 5, kind: output, shape index: {1}]  }
   0x1   :  { %s1085_s20 = smov 0   ;;  %s1087_s21 = smov 0  }
   0x2   :  { %s1089_s22 = smov 0  }
   0x3 LB: > { %s25_s23 = sadd.s32 1, %s1041_s20  ;;  %s28_s24 = sadd.s32 1, %s1045_s21  ;;  %s1049_s22 = sphi %s1089_s22, %s16_s22   ;;  %s1045_s21 = sphi %s1087_s21, %s1303_s21   ;;  %s1041_s20 = sphi %s1085_s20, %s1302_s20   ;;  %s1037_s19 = sphi %s1083_s19, %s1301_s19   ;;  %s1033_s18 = sphi %s1081_s18, %s1300_s18  }
   0x4   : > { %p26_p0 = scmp.ge.s32.totalorder %s25_s23, 2  ;;  %p846_p1 = scmp.ge.s32.totalorder %s1049_s22, 1 }
   0x5   : > { %p214_p2 = scmp.lt.s32.totalorder %s1049_s22, 5 }
   0x6   : > { %s1305_s23 = smov (%p26_p0, %s25_s23), 0  ;;  %s1307_s24 = smov (!%p26_p0, %s28_s24), %s1045_s21 }
   0x7   : > { %p215_p3 = pnand %p846_p1, %p214_p2  ;;  %p30_p4 = scmp.ge.s32.totalorder %s1307_s24, 2 }
   0x8   : > { %s847_s27 = sshll.u32 (!%p215_p3), %s1033_s18, 3  ;;  %p261_p5 = scmp.lt.s32.totalorder (!%p215_p3), %s1037_s19, 1 }
   0x9   : > { %s1309_s24 = smov (%p30_p4, %s1307_s24), 0  ;;  %218 = sbr.rel (%p215_p3) target bundleno = 277 (0x115), region = 36 }
   0xa   : > { %p263_p6 = scmp.lt.s32.totalorder (!%p215_p3), %s847_s27, 15  ;;  %p284_p7 = scmp.lt.s32.totalorder (!%p215_p3), %s1033_s18, 1 }
   0xe   : > { %v393_v0 = vld [vmem:[%s1297_s3] sm:$0x3]  ;;  %vm419_vm0 = vcmask 1041408   ;;  %s1311_s19 = smov (!%p261_p5, %s1037_s19), 1  ;;  %s1313_s27 = smov (!%p263_p6, %s847_s27), 15  ;;  %vm394_vm1 = vcmask 31744  }
   0xf   : > { %969 = vmatprep.subr.msk.bf16.mxu0 %vm419_vm0, %v393_v0  ;;  %v421_v1 = vsel %vm419_vm0, %v393_v0, 0  ;;  %970 = vmatprep.subr.msk.bf16.mxu1 %vm419_vm0, %v393_v0  ;;  %s849_s28 = sshll.u32 %s1311_s19, 5  ;;  %s848_s29 = sshll.u32 %s1313_s27, 1  ;;  %v1133_v2 = vld [vmem:[%s1295_s1] ss:$0 sm:$0xff]  ;;  %vm679_vm2 = vcmask 125952  }
  0x10   : > { %950 = vmatpush3.bf16.msra.mxu0 %v421_v1  ;;  %968 = vmatpush3.bf16.msra.mxu1 %v421_v1  ;;  %s1120_s30 = sadd.s32 %s849_s28, %s848_s29  ;;  %v1142_v11 = vld [vmem:[%s1296_s2] ss:$0 sm:$0xff]  ;;  %vm520_vm3 = vcmask 130048   ;;  %s1315_s18 = smov (!%p284_p7, %s1033_s18), 1  ;;  %vm611_vm4 = vcmask 1040384   ;;  %vm613_vm5 = vcmask 123904  }
  0x11   : > { %s850_s6 = sshll.u32 %s1120_s30, 2  ;;  %s855_s17 = sshll.u32 %s1311_s19, 1 }
  0x12   : > { %s1128_s9 = scalar_lea.vmem %s1294_s0, %s850_s6  ;;  %s1193_s16 = scalar_lea.vmem %s1298_s4, %s850_s6 }
  0x13   : > { %v902_v3 = vld [vmem:[%s1128_s9] sm:$0xff]   ;;  %v933_v4 = vld [vmem:[%s1128_s9 + $0x8] sm:$0xff]   ;;  %v934_v5 = vld [vmem:[%s1128_s9 + $0x10] sm:$0xff]   ;;  %s287_s25 = sadd.s32 %s855_s17, %s1315_s18 }
  0x14   : > { %v903_v6 = vunpack.c.l.bf16 %v902_v3  ;;  %v904_v7 = vunpack.c.h.bf16 %v902_v3  ;;  %v907_v8 = vunpack.c.l.bf16 %v933_v4  ;;  %v908_v9 = vunpack.c.h.bf16 %v933_v4  ;;  %v935_v10 = vld [vmem:[%s1128_s9 + $0x18] sm:$0xff]   ;;  %v936_v32 = vld [vmem:[%s1128_s9 + $0x20] sm:$0xff]   ;;  %v937_v37 = vld [vmem:[%s1128_s9 + $0x28] sm:$0xff]   ;;  %s856_s26 = sshll.u32 %s287_s25, 1 }
  0x15   : > { %v911_v12 = vunpack.c.l.bf16 %v934_v5  ;;  %v912_v13 = vunpack.c.h.bf16 %v934_v5  ;;  %v915_v14 = vunpack.c.l.bf16 %v935_v10  ;;  %v916_v15 = vunpack.c.h.bf16 %v935_v10  ;;  %v938_v42 = vld [vmem:[%s1128_s9 + $0x30] sm:$0xff]   ;;  %v939_v47 = vld [vmem:[%s1128_s9 + $0x38] sm:$0xff]   ;;  %s289_s29 = scalar_lea.vmem %s1299_s5, %s856_s26 }
  0x16   : > { %v330_v16 = vmul.f32 %v903_v6, %v1133_v2  ;;  %v331_v17 = vmul.f32 %v904_v7, %v1133_v2  ;;  %v332_v18 = vmul.f32 %v907_v8, %v1133_v2  ;;  %v333_v19 = vmul.f32 %v908_v9, %v1133_v2 }
  0x17   : > { %v334_v20 = vmul.f32 %v911_v12, %v1133_v2  ;;  %v335_v21 = vmul.f32 %v912_v13, %v1133_v2  ;;  %v336_v22 = vmul.f32 %v915_v14, %v1133_v2  ;;  %v337_v23 = vmul.f32 %v916_v15, %v1133_v2 }
  0x18   : > { %v353_v24 = vadd.f32 %v1142_v11, %v330_v16  ;;  %v354_v25 = vadd.f32 %v1142_v11, %v331_v17  ;;  %v355_v26 = vadd.f32 %v1142_v11, %v332_v18  ;;  %v356_v27 = vadd.f32 %v1142_v11, %v333_v19 }
  0x19   : > { %v357_v28 = vadd.f32 %v1142_v11, %v334_v20  ;;  %v358_v29 = vadd.f32 %v1142_v11, %v335_v21  ;;  %v359_v30 = vadd.f32 %v1142_v11, %v336_v22  ;;  %v360_v31 = vadd.f32 %v1142_v11, %v337_v23 }
  0x1a   : > { %v369_v33 = vmax.f32 %v353_v24, 0.0  ;;  %v370_v34 = vmax.f32 %v354_v25, 0.0  ;;  %v371_v35 = vmax.f32 %v355_v26, 0.0  ;;  %v372_v36 = vmax.f32 %v356_v27, 0.0 }
  0x1b   : > { %v373_v38 = vmax.f32 %v357_v28, 0.0  ;;  %v374_v39 = vmax.f32 %v358_v29, 0.0  ;;  %v375_v40 = vmax.f32 %v359_v30, 0.0  ;;  %v376_v41 = vmax.f32 %v360_v31, 0.0 }
  0x1c   : > { %v385_v43 = vpack.c.bf16 %v370_v34, %v369_v33  ;;  %v386_v44 = vpack.c.bf16 %v372_v36, %v371_v35  ;;  %v919_v45 = vunpack.c.l.bf16 %v936_v32  ;;  %v920_v46 = vunpack.c.h.bf16 %v936_v32 }
  0x1d   : > { %v387_v48 = vpack.c.bf16 %v374_v39, %v373_v38  ;;  %v388_v49 = vpack.c.bf16 %v376_v41, %v375_v40  ;;  %v923_v50 = vunpack.c.l.bf16 %v937_v37  ;;  %v924_v51 = vunpack.c.h.bf16 %v937_v37 }
  0x1e   : > { %951 = vmatprep.mubr.msk.bf16.mxu0 %vm394_vm1, %v385_v43  ;;  %v338_v52 = vmul.f32 %v919_v45, %v1133_v2  ;;  %v339_v53 = vmul.f32 %v920_v46, %v1133_v2  ;;  %v927_v54 = vunpack.c.l.bf16 %v938_v42  ;;  %v928_v55 = vunpack.c.h.bf16 %v938_v42 }
  0x1f   : > { %952 = vmatmul.mubr.msk.bf16.vlgmr.msra.gmra.mxu0 %vm394_vm1, %v386_v44  ;;  %v340_v56 = vmul.f32 %v923_v50, %v1133_v2  ;;  %v341_v57 = vmul.f32 %v924_v51, %v1133_v2  ;;  %v931_v58 = vunpack.c.l.bf16 %v939_v47  ;;  %v932_v59 = vunpack.c.h.bf16 %v939_v47 }
  0x20   : > { %955 = vmatprep.mubr.msk.bf16.mxu0 %vm394_vm1, %v387_v48  ;;  %v361_v60 = vadd.f32 %v1142_v11, %v338_v52  ;;  %v362_v61 = vadd.f32 %v1142_v11, %v339_v53  ;;  %v342_v62 = vmul.f32 %v927_v54, %v1133_v2  ;;  %v343_v63 = vmul.f32 %v928_v55, %v1133_v2 }
  0x21   : > { %v363_v0 = vadd.f32 %v1142_v11, %v340_v56  ;;  %v364_v1 = vadd.f32 %v1142_v11, %v341_v57  ;;  %v344_v3 = vmul.f32 %v931_v58, %v1133_v2  ;;  %v345_v4 = vmul.f32 %v932_v59, %v1133_v2 }
  0x22   : > { %v377_v5 = vmax.f32 %v361_v60, 0.0  ;;  %v378_v6 = vmax.f32 %v362_v61, 0.0  ;;  %v365_v7 = vadd.f32 %v1142_v11, %v342_v62  ;;  %v366_v8 = vadd.f32 %v1142_v11, %v343_v63 }
  0x23   : > { %v379_v9 = vmax.f32 %v363_v0, 0.0  ;;  %v380_v10 = vmax.f32 %v364_v1, 0.0  ;;  %v367_v12 = vadd.f32 %v1142_v11, %v344_v3  ;;  %v368_v13 = vadd.f32 %v1142_v11, %v345_v4 }
  0x24   : > { %v389_v14 = vpack.c.bf16 %v378_v6, %v377_v5  ;;  %v381_v15 = vmax.f32 %v365_v7, 0.0  ;;  %v382_v16 = vmax.f32 %v366_v8, 0.0 }
  0x25   : > { %v390_v17 = vpack.c.bf16 %v380_v10, %v379_v9  ;;  %v383_v18 = vmax.f32 %v367_v12, 0.0  ;;  %v384_v19 = vmax.f32 %v368_v13, 0.0 }
  0x26   : > { %959 = vmatprep.mubr.msk.bf16.mxu1 %vm394_vm1, %v389_v14  ;;  %v391_v2 = vpack.c.bf16 %v382_v16, %v381_v15 }
  0x27   : > { %956 = vmatmul.mubr.msk.bf16.gmra.mxu0 %vm394_vm1, %v388_v49  ;;  %960 = vmatmul.mubr.msk.bf16.vlgmr.msra.gmra.mxu1 %vm394_vm1, %v390_v17  ;;  %v392_v20 = vpack.c.bf16 %v384_v19, %v383_v18 }
  0x28   : > { %963 = vmatprep.mubr.msk.bf16.mxu1 %vm394_vm1, %v391_v2 }
  0x2f   : > { %964 = vmatmul.mubr.msk.bf16.gmra.mxu1 %vm394_vm1, %v392_v20 }
  0xdf   : > { %v953_v11 = vpop.f32.mrf.mxu0 }
  0xe0   : > { %v887_v21 = vpack.c.bf16 %v953_v11, %v953_v11  ;;  %v560_v27 = vmul.f32 %v953_v11, %v953_v11  ;;  %v524_v33 = vsel %vm520_vm3, %v953_v11, 0.0 }
  0xe1   : > { %v457_v22 = vpop.f32.mrf.mxu0 }
  0xe2   : > { %682 = vst.msk [vmem:[%s1193_s16 + $0x8] sm:$0xf] %vm679_vm2, %v887_v21  ;;  %v885_v23 = vpack.c.bf16 %v457_v22, %v457_v22  ;;  %v558_v25 = vmul.f32 %v457_v22, %v457_v22  ;;  %v521_v29 = vsel %vm520_vm3, %v457_v22, 0.0  ;;  %v577_v45 = vsel %vm520_vm3, %v560_v27, 0.0 }
  0xe3   : > { %v954_v24 = vpop.f32.mrf.mxu0 }
  0xe4   : > { %680 = vst.msk [vmem:[%s1193_s16] sm:$0xf] %vm679_vm2, %v885_v23  ;;  %v888_v26 = vpack.c.bf16 %v954_v24, %v954_v24  ;;  %v574_v37 = vsel %vm520_vm3, %v558_v25, 0.0  ;;  %v561_v38 = vmul.f32 %v954_v24, %v954_v24  ;;  %v526_v46 = vsel %vm520_vm3, %v954_v24, 0.0 }
  0xe5   : > { %v460_v28 = vpop.f32.mrf.mxu0 }
  0xe6   : > { %683 = vst.msk [vmem:[%s1193_s16 + $0xc] sm:$0xf] %vm679_vm2, %v888_v26  ;;  %v522_v30 = vsel %vm520_vm3, %v460_v28, 0.0  ;;  %v559_v31 = vmul.f32 %v460_v28, %v460_v28  ;;  %v886_v32 = vpack.c.bf16 %v460_v28, %v460_v28  ;;  %v579_v54 = vsel %vm520_vm3, %v561_v38, 0.0 }
  0xe7   : > { %v523_v34 = vadd.f32 %v522_v30, %v521_v29  ;;  %v957_v35 = vpop.f32.mrf.mxu0  ;;  %v1204_v36 = vpop.f32.mrf.mxu1 }
  0xe8   : > { %v575_v39 = vsel %vm520_vm3, %v559_v31, 0.0  ;;  %681 = vst.msk [vmem:[%s1193_s16 + $0x4] sm:$0xf] %vm679_vm2, %v886_v32  ;;  %v891_v40 = vpack.c.bf16 %v957_v35, %v957_v35  ;;  %v895_v51 = vpack.c.bf16 %v1204_v36, %v1204_v36  ;;  %v564_v57 = vmul.f32 %v957_v35, %v957_v35 }
  0xe9   : > { %v525_v41 = vadd.f32 %v524_v33, %v523_v34  ;;  %v576_v42 = vadd.f32 %v575_v39, %v574_v37  ;;  %v473_v43 = vpop.f32.mrf.mxu0  ;;  %v489_v44 = vpop.f32.mrf.mxu1  ;;  %v532_v7 = vsel %vm520_vm3, %v957_v35, 0.0  ;;  %v568_v28 = vmul.f32 %v1204_v36, %v1204_v36 }
  0xea   : > { %686 = vst.msk [vmem:[%s1193_s16 + $0x18] sm:$0xf] %vm679_vm2, %v891_v40  ;;  %v562_v47 = vmul.f32 %v473_v43, %v473_v43  ;;  %v889_v48 = vpack.c.bf16 %v473_v43, %v473_v43  ;;  %v528_v55 = vsel %vm520_vm3, %v473_v43, 0.0  ;;  %690 = vst.msk [vmem:[%s1193_s16 + $0x28] sm:$0xf] %vm679_vm2, %v895_v51  ;;  %v893_v63 = vpack.c.bf16 %v489_v44, %v489_v44 }
  0xeb   : > { %v578_v49 = vadd.f32 %v577_v45, %v576_v42  ;;  %v527_v50 = vadd.f32 %v526_v46, %v525_v41  ;;  %v958_v52 = vpop.f32.mrf.mxu0  ;;  %v1216_v53 = vpop.f32.mrf.mxu1  ;;  %v585_v15 = vsel %vm520_vm3, %v564_v57, 0.0  ;;  %v566_v17 = vmul.f32 %v489_v44, %v489_v44 }
  0xec   : > { %684 = vst.msk [vmem:[%s1193_s16 + $0x10] sm:$0xf] %vm679_vm2, %v889_v48  ;;  %v892_v56 = vpack.c.bf16 %v958_v52, %v958_v52  ;;  %v581_v62 = vsel %vm520_vm3, %v562_v47, 0.0  ;;  %v565_v8 = vmul.f32 %v958_v52, %v958_v52  ;;  %688 = vst.msk [vmem:[%s1193_s16 + $0x20] sm:$0xf] %vm679_vm2, %v893_v63  ;;  %v896_v10 = vpack.c.bf16 %v1216_v53, %v1216_v53 }
  0xed   : > { %v529_v58 = vadd.f32 %v528_v55, %v527_v50  ;;  %v580_v59 = vadd.f32 %v579_v54, %v578_v49  ;;  %v476_v60 = vpop.f32.mrf.mxu0  ;;  %v492_v61 = vpop.f32.mrf.mxu1  ;;  %v534_v16 = vsel %vm520_vm3, %v958_v52, 0.0  ;;  %v536_v22 = vsel %vm520_vm3, %v489_v44, 0.0 }
  0xee   : > { %687 = vst.msk [vmem:[%s1193_s16 + $0x1c] sm:$0xf] %vm679_vm2, %v892_v56  ;;  %v530_v0 = vsel %vm520_vm3, %v476_v60, 0.0  ;;  %v563_v1 = vmul.f32 %v476_v60, %v476_v60  ;;  %v890_v5 = vpack.c.bf16 %v476_v60, %v476_v60  ;;  %691 = vst.msk [vmem:[%s1193_s16 + $0x2c] sm:$0xf] %vm679_vm2, %v896_v10  ;;  %v894_v2 = vpack.c.bf16 %v492_v61, %v492_v61 }
  0xef   : > { %v582_v3 = vadd.f32 %v581_v62, %v580_v59  ;;  %v531_v4 = vadd.f32 %v530_v0, %v529_v58  ;;  %v965_v6 = vpop.f32.mrf.mxu1  ;;  %v587_v21 = vsel %vm520_vm3, %v565_v8, 0.0  ;;  %v567_v23 = vmul.f32 %v492_v61, %v492_v61 }
  0xf0   : > { %v583_v9 = vsel %vm520_vm3, %v563_v1, 0.0  ;;  %685 = vst.msk [vmem:[%s1193_s16 + $0x14] sm:$0xf] %vm679_vm2, %v890_v5  ;;  %v899_v20 = vpack.c.bf16 %v965_v6, %v965_v6  ;;  %689 = vst.msk [vmem:[%s1193_s16 + $0x24] sm:$0xf] %vm679_vm2, %v894_v2  ;;  %v589_v29 = vsel %vm520_vm3, %v566_v17, 0.0  ;;  %v569_v37 = vmul.f32 %v1216_v53, %v1216_v53 }
  0xf1   : > { %v533_v12 = vadd.f32 %v532_v7, %v531_v4  ;;  %v584_v13 = vadd.f32 %v583_v9, %v582_v3  ;;  %v505_v14 = vpop.f32.mrf.mxu1  ;;  %v538_v30 = vsel %vm520_vm3, %v492_v61, 0.0  ;;  %v540_v35 = vsel %vm520_vm3, %v1204_v36, 0.0 }
  0xf2   : > { %v897_v24 = vpack.c.bf16 %v505_v14, %v505_v14  ;;  %694 = vst.msk [vmem:[%s1193_s16 + $0x38] sm:$0xf] %vm679_vm2, %v899_v20  ;;  %v591_v38 = vsel %vm520_vm3, %v567_v23, 0.0  ;;  %v593_v41 = vsel %vm520_vm3, %v568_v28, 0.0  ;;  %v542_v42 = vsel %vm520_vm3, %v1216_v53, 0.0 }
  0xf3   : > { %v535_v18 = vadd.f32 %v534_v16, %v533_v12  ;;  %v586_v19 = vadd.f32 %v585_v15, %v584_v13  ;;  %v966_v11 = vpop.f32.mrf.mxu1  ;;  %v570_v43 = vmul.f32 %v505_v14, %v505_v14  ;;  %v595_v36 = vsel %vm520_vm3, %v569_v37, 0.0 }
  0xf4   : > { %692 = vst.msk [vmem:[%s1193_s16 + $0x30] sm:$0xf] %vm679_vm2, %v897_v24  ;;  %v900_v31 = vpack.c.bf16 %v966_v11, %v966_v11  ;;  %v544_v46 = vsel %vm520_vm3, %v505_v14, 0.0  ;;  %v572_v50 = vmul.f32 %v965_v6, %v965_v6  ;;  %v548_v53 = vsel %vm520_vm3, %v965_v6, 0.0 }
  0xf5   : > { %v588_v25 = vadd.f32 %v587_v21, %v586_v19  ;;  %v537_v26 = vadd.f32 %v536_v22, %v535_v18  ;;  %v508_v27 = vpop.f32.mrf.mxu1  ;;  %v597_v51 = vsel %vm520_vm3, %v570_v43, 0.0  ;;  %v573_v56 = vmul.f32 %v966_v11, %v966_v11 }
  0xf6   : > { %v898_v34 = vpack.c.bf16 %v508_v27, %v508_v27  ;;  %695 = vst.msk [vmem:[%s1193_s16 + $0x3c] sm:$0xf] %vm679_vm2, %v900_v31  ;;  %v571_v47 = vmul.f32 %v508_v27, %v508_v27  ;;  %v546_v52 = vsel %vm520_vm3, %v508_v27, 0.0  ;;  %v601_v60 = vsel %vm520_vm3, %v572_v50, 0.0 }
  0xf7   : > { %v539_v32 = vadd.f32 %v538_v30, %v537_v26  ;;  %v590_v33 = vadd.f32 %v589_v29, %v588_v25  ;;  %v550_v61 = vsel %vm520_vm3, %v966_v11, 0.0  ;;  %v603_v0 = vsel %vm520_vm3, %v573_v56, 0.0 }
  0xf8   : > { %693 = vst.msk [vmem:[%s1193_s16 + $0x34] sm:$0xf] %vm679_vm2, %v898_v34  ;;  %v599_v57 = vsel %vm520_vm3, %v571_v47, 0.0 }
  0xf9   : > { %v541_v39 = vadd.f32 %v540_v35, %v539_v32  ;;  %v592_v40 = vadd.f32 %v591_v38, %v590_v33 }
  0xfb   : > { %v594_v44 = vadd.f32 %v593_v41, %v592_v40  ;;  %v543_v45 = vadd.f32 %v542_v42, %v541_v39 }
  0xfd   : > { %v545_v48 = vadd.f32 %v544_v46, %v543_v45  ;;  %v596_v49 = vadd.f32 %v595_v36, %v594_v44 }
  0xff   : > { %v598_v54 = vadd.f32 %v597_v51, %v596_v49  ;;  %v547_v55 = vadd.f32 %v546_v52, %v545_v48 }
 0x101   : > { %v549_v58 = vadd.f32 %v548_v53, %v547_v55  ;;  %v600_v59 = vadd.f32 %v599_v57, %v598_v54 }
 0x103   : > { %v551_v62 = vadd.f32 %v550_v61, %v549_v58  ;;  %v602_v63 = vadd.f32 %v601_v60, %v600_v59 }
 0x105   : > { %v552_v1 = vrot.slane %v551_v62, 4  ;;  %v604_v3 = vadd.f32 %v603_v0, %v602_v63 }
 0x107   : > { %v553_v4 = vadd.f32 %v552_v1, %v551_v62  ;;  %v605_v5 = vrot.slane %v604_v3, 4 }
 0x109   : > { %v554_v6 = vrot.slane %v553_v4, 2  ;;  %v606_v7 = vadd.f32 %v605_v5, %v604_v3 }
 0x10b   : > { %v555_v8 = vadd.f32 %v554_v6, %v553_v4  ;;  %v607_v9 = vrot.slane %v606_v7, 2 }
 0x10d   : > { %v556_v10 = vrot.slane %v555_v8, 1  ;;  %v608_v12 = vadd.f32 %v607_v9, %v606_v7 }
 0x10f   : > { %v609_v13 = vrot.slane %v608_v12, 1  ;;  %v557_v14 = vadd.f32 %v556_v10, %v555_v8 }
 0x111   : > { %v610_v15 = vadd.f32 %v609_v13, %v608_v12 }
 0x113   : > { %v612_v16 = vsel %vm611_vm4, %v557_v14, %v610_v15 }
 0x114   : > { %614 = vst.msk [vmem:[%s289_s29] sm:$0x3] %vm613_vm5, %v612_v16 }
 0x115 PF: > { %s16_s22 = sadd.s32 1, %s1049_s22   ;;  %s1300_s18 = smov %s1041_s20 }
 0x116   : > { %p13_p8 = scmp.ge.s32.totalorder %s16_s22, 6   ;;  %s1301_s19 = smov %s1045_s21 }
 0x117   : > { %s1302_s20 = smov %s1305_s23  ;;  %s1303_s21 = smov %s1309_s24 }
 0x118   :  { %15 = sbr.rel (!%p13_p8) target bundleno = 3 (0x3), region = 78 }

// kernel: bottleneck_forward.4
= control target key start
LH: loop header
LB: loop body
LE: loop exit
PB: predicated region body
PF: predicated region fallthrough
CT: control target
= control target key end

     0   :  { %11 = vsyncpa [#allocation3], 0  ;;  %s1342_s0 = inlined_call_operand.hbm [shape: f32[2,16,16,16], index: 0, kind: input, shape index: {}]   ;;  %s1343_s1 = inlined_call_operand.vmem [shape: f32[1,16], index: 1, kind: input, shape index: {}, may-alias: {1,2}]   ;;  %s1344_s2 = inlined_call_operand.vmem [shape: f32[1,16], index: 2, kind: input, shape index: {}, may-alias: {1,2}]   ;;  %s1345_s3 = inlined_call_operand.vmem [shape: bf16[16,4], index: 3, kind: input, shape index: {}]   ;;  %s1346_s4 = inlined_call_operand.vmem [shape: bf16[2,16,16,4], index: 4, kind: output, shape index: {0}]   ;;  %s1347_s5 = inlined_call_operand.vmem [shape: f32[2,2,2,4], index: 5, kind: output, shape index: {1}]  }
   0x1   :  { %13 = vsyncpa [#allocation3 + $0x1], 0  ;;  %s1072_s18 = smov 0   ;;  %s1074_s19 = smov 0  }
   0x2   :  { %s1076_s20 = smov 0   ;;  %s1078_s1 = smov 0  }
   0x3   :  { %s1080_s2 = smov 0   ;;  %s1082_s21 = smov 0  }
   0x4   :  { %s1084_s22 = smov 0   ;;  %s1086_s23 = smov 0  }
   0x5 LB: > { %s779_s24 = sadd.s32 4294967295, %s1037_s23   ;;  %s28_s25 = sadd.s32 1, %s1029_s21  ;;  %s1037_s23 = sphi %s1086_s23, %s19_s23   ;;  %s1033_s22 = sphi %s1084_s22, %s1357_s22   ;;  %s1029_s21 = sphi %s1082_s21, %s1356_s21   ;;  %s1025_s2 = sphi %s1080_s2, %s1355_s2   ;;  %s1021_s1 = sphi %s1078_s1, %s1354_s1   ;;  %s1017_s20 = sphi %s1076_s20, %s1353_s20   ;;  %s1013_s19 = sphi %s1074_s19, %s1352_s19   ;;  %s1009_s18 = sphi %s1072_s18, %s1351_s18  }
   0x6   : > { %p29_p0 = scmp.ge.s32.totalorder %s28_s25, 2  ;;  %s31_s26 = sadd.s32 1, %s1033_s22 }
   0x7   : > { %s40_s27 = sadd.s32 1, %s1017_s20  ;;  %p47_p1 = scmp.ne.s32.totalorder %s1017_s20, %s1013_s19 }
   0x8   : > { %s1359_s25 = smov (%p29_p0, %s28_s25), 0  ;;  %s1361_s26 = smov (!%p29_p0, %s31_s26), %s1033_s22 }
   0x9   : > { %s36_s28 = ssub.s32 %s1029_s21, %s1359_s25  ;;  %p48_p2 = scmp.eq.s32.totalorder %s1037_s23, 0 }
   0xa   : > { %p33_p3 = scmp.ge.s32.totalorder %s1361_s26, 2  ;;  %p53_p4 = scmp.ne.s32.totalorder %s1013_s19, %s1009_s18 }
   0xb   : > { %p1123_p5 = por %p48_p2, %p47_p1  ;;  %p54_p6 = scmp.eq.s32.totalorder %s779_s24, 0 }
   0xc   : > { %s1363_s26 = smov (%p33_p3, %s1361_s26), 0  ;;  %p875_p8 = scmp.lt.s32.totalorder %s1037_s23, 4 }
   0xd   : > { %p1129_p7 = por %p54_p6, %p53_p4  ;;  %s35_s6 = ssub.s32 %s1033_s22, %s1363_s26 }
   0xe   : > { %s37_s7 = sor.u32 %s36_s28, %s35_s6  ;;  %s205_s8 = sand.u32 1, %s1017_s20  }
   0xf   : > { %p38_p9 = scmp.eq.s32.totalorder %s37_s7, 0  ;;  %s783_s9 = sshll.u32 %s205_s8, 7 }
  0x10   : > { %s823_s10 = sshll.u32 %s1029_s21, 4  ;;  %s786_s12 = sshll.u32 %s1033_s22, 5 }
  0x11   : > { %s1139_s11 = scalar_select %p38_p9, %s1017_s20, %s40_s27  }
  0x12   : > { %s216_s13 = sadd.s32 %s823_s10, %s786_s12  ;;  %s209_s14 = scalar_lea.vmem [#allocation2], %s783_s9 }
  0x13   : > { %s219_s15 = sshll.u32 %s209_s14, 4  ;;  %s787_s16 = sshll.u32 %s216_s13, 7  ;;  %s220_s15 = int_to_ptr.vmem [resolvable:$true] %s219_s15 }
  0x14   : > { %s218_s24 = scalar_lea.hbm %s1342_s0, %s787_s16  ;;  %p1149_p10 = pnand %p875_p8, %p1123_p5 }
  0x15   : > { %p788_p11 = scmp.ge.s32.totalorder %s1037_s23, 1  ;;  %s206_s27 = scalar_lea.sflag [#allocation3], %s205_s8 }
  0x16   : > { %p945_p12 = pneg %p1149_p10  ;;  %s956_s6 = scalar_lea.vmem %s220_s15, 2048 }
  0x17   : > { %p957_p13 = scmp.ne.s32.totalorder %s220_s15, %s956_s6  ;;  %s1039_s7 = smov [#allocation2]  }
  0x18   : > { %s961_s9 = sshll.u32 %s1039_s7, 4  ;;  %s962_s9 = int_to_ptr.vmem [resolvable:$false] %s961_s9 }
  0x19   : > { %p959_p0 = pnand %p957_p13, %p945_p12  ;;  %s963_s10 = scalar_lea.vmem %s962_s9, 4096 }
  0x1a   : > { %p964_p2 = scmp.lt.s32.totalorder %s220_s15, %s962_s9  ;;  %p965_p3 = scmp.lt.s32.totalorder %s963_s10, %s956_s6 }
  0x1b   : > { %p960_p1 = pneg %p959_p0 }
  0x1c   : > { %p966_p4 = por %p965_p3, %p964_p2 }
  0x1e   : > { %p967_p5 = pnand %p966_p4, %p960_p1 }
  0x20   : > { %970 = shalt.err (!%p967_p5)
}
  0x21   : > { %s1040_s29 = smov 128   ;;  %s1041_s8 = smov 8  }
  0x22   : > { %874 = dma.hbm_to_vmem [thread:$0]  (!%p1149_p10), %s218_s24, 2048, %s220_s15, %s206_s27, %s1040_s29, %s1040_s29, %s1041_s8  }
  0x23   : > { %p227_p6 = scmp.lt.s32.totalorder %s1037_s23, 5 }
  0x25   : > { %p228_p8 = pnand %p788_p11, %p227_p6 }
  0x26   : > { %s233_s12 = sand.u32 (!%p228_p8), 1, %s1013_s19  }
  0x27   : > { %231 = sbr.rel (%p228_p8) target bundleno = 296 (0x128), region = 36  ;;  %s789_s13 = sshll.u32 (!%p228_p8), %s233_s12, 7 }
  0x28   : > { %s234_s14 = scalar_lea.sflag (!%p228_p8), [#allocation3], %s233_s12  ;;  %s1162_s16 = scalar_lea.vmem (!%p228_p8), [#allocation2], %s789_s13 }
  0x2c   : > { %1004 = dma.done.wait (%p1129_p7), %s234_s14, 2048  }
  0x2d   : > { %1006 = vsyncadd (%p1129_p7), %s234_s14, 4294965248  ;;  %v942_v0 = vld [vmem:[%s1345_s3] sm:$0xff]   ;;  %v298_v1 = vld [vmem:[%s1162_s16] sm:$0xff]  ;;  %vm330_vm0 = vcmask 130048   ;;  %s790_s30 = sshll.u32 %s1021_s1, 3  ;;  %p279_p7 = scmp.lt.s32.totalorder %s1025_s2, 1 }
  0x2e   : > { %v299_v2 = vld [vmem:[%s1162_s16 + $0x8] sm:$0xff]  ;;  %v300_v3 = vld [vmem:[%s1162_s16 + $0x10] sm:$0xff]  ;;  %849 = vmatprep.subr.bf16.mxu0 %v942_v0  ;;  %v301_v5 = vld [vmem:[%s1162_s16 + $0x18] sm:$0xff]  ;;  %867 = vmatprep.subr.bf16.mxu1 %v942_v0  ;;  %p281_p9 = scmp.lt.s32.totalorder %s790_s30, 15  ;;  %vm611_vm1 = vcmask 27648   ;;  %vm452_vm2 = vcmask 31744  }
  0x2f   : > { %v314_v4 = vpack.c.bf16 %v299_v2, %v298_v1  ;;  %v302_v6 = vld [vmem:[%s1162_s16 + $0x20] sm:$0xff]  ;;  %v303_v7 = vld [vmem:[%s1162_s16 + $0x28] sm:$0xff]  ;;  %850 = vmatpush3.bf16.msra.mxu0 %v942_v0  ;;  %v315_v8 = vpack.c.bf16 %v301_v5, %v300_v3  ;;  %868 = vmatpush3.bf16.msra.mxu1 %v942_v0  ;;  %v308_v12 = vld [vmem:[%s1162_s16 + $0x50] sm:$0xff]  ;;  %s1365_s2 = smov (!%p279_p7, %s1025_s2), 1  ;;  %p291_p10 = scmp.lt.s32.totalorder %s1021_s1, 1  ;;  %vm543_vm3 = vcmask 1040384  }
  0x30   : > { %v316_v9 = vpack.c.bf16 %v303_v7, %v302_v6  ;;  %v306_v10 = vld [vmem:[%s1162_s16 + $0x40] sm:$0xff]  ;;  %v307_v11 = vld [vmem:[%s1162_s16 + $0x48] sm:$0xff]  ;;  %v309_v13 = vld [vmem:[%s1162_s16 + $0x58] sm:$0xff]  ;;  %s1367_s30 = smov (!%p281_p9, %s790_s30), 15  ;;  %s792_s24 = sshll.u32 %s1365_s2, 5  ;;  %vm545_vm4 = vcmask 25600  }
  0x31   : > { %851 = vmatprep.mubr.msk.bf16.mxu0 %vm330_vm0, %v314_v4  ;;  %v318_v14 = vpack.c.bf16 %v307_v11, %v306_v10  ;;  %v319_v15 = vpack.c.bf16 %v309_v13, %v308_v12  ;;  %v310_v16 = vld [vmem:[%s1162_s16 + $0x60] sm:$0xff]  ;;  %v311_v17 = vld [vmem:[%s1162_s16 + $0x68] sm:$0xff]  ;;  %v304_v19 = vld [vmem:[%s1162_s16 + $0x30] sm:$0xff]  ;;  %s791_s15 = sshll.u32 %s1367_s30, 1  ;;  %s1369_s1 = smov (!%p291_p10, %s1021_s1), 1 }
  0x32   : > { %852 = vmatmul.mubr.msk.bf16.vlgmr.msra.gmra.mxu0 %vm330_vm0, %v315_v8  ;;  %v320_v18 = vpack.c.bf16 %v311_v17, %v310_v16  ;;  %v305_v20 = vld [vmem:[%s1162_s16 + $0x38] sm:$0xff]  ;;  %v312_v21 = vld [vmem:[%s1162_s16 + $0x70] sm:$0xff]  ;;  %s285_s28 = sadd.s32 %s792_s24, %s791_s15  ;;  %s794_s10 = sshll.u32 %s1365_s2, 1 }
  0x33   : > { %855 = vmatprep.mubr.msk.bf16.mxu0 %vm330_vm0, %v316_v9  ;;  %859 = vmatprep.mubr.msk.bf16.mxu1 %vm330_vm0, %v318_v14  ;;  %v313_v22 = vld [vmem:[%s1162_s16 + $0x78] sm:$0xff]  ;;  %v317_v23 = vpack.c.bf16 %v305_v20, %v304_v19  ;;  %s793_s27 = sshll.u32 %s285_s28, 2  ;;  %s294_s29 = sadd.s32 %s794_s10, %s1369_s1 }
  0x34   : > { %860 = vmatmul.mubr.msk.bf16.vlgmr.msra.gmra.mxu1 %vm330_vm0, %v319_v15  ;;  %v321_v24 = vpack.c.bf16 %v313_v22, %v312_v21  ;;  %s1204_s9 = scalar_lea.vmem %s1346_s4, %s793_s27  ;;  %s795_s8 = sshll.u32 %s294_s29, 1 }
  0x35   : > { %863 = vmatprep.mubr.msk.bf16.mxu1 %vm330_vm0, %v320_v18  ;;  %s296_s14 = scalar_lea.vmem %s1347_s5, %s795_s8 }
  0x3a   : > { %856 = vmatmul.mubr.msk.bf16.gmra.mxu0 %vm330_vm0, %v317_v23 }
  0x3c   : > { %864 = vmatmul.mubr.msk.bf16.gmra.mxu1 %vm330_vm0, %v321_v24 }
  0xf2   : > { %v853_v25 = vpop.f32.mrf.mxu0 }
  0xf3   : > { %v826_v26 = vpack.c.bf16 %v853_v25, %v853_v25  ;;  %v492_v35 = vmul.f32 %v853_v25, %v853_v25  ;;  %v456_v43 = vsel %vm452_vm2, %v853_v25, 0.0 }
  0xf4   : > { %v389_v27 = vpop.f32.mrf.mxu0  ;;  %v1206_v28 = vpop.f32.mrf.mxu1 }
  0xf5   : > { %614 = vst.msk [vmem:[%s1204_s9 + $0x8] sm:$0xf] %vm611_vm1, %v826_v26  ;;  %v824_v29 = vpack.c.bf16 %v389_v27, %v389_v27  ;;  %v834_v31 = vpack.c.bf16 %v1206_v28, %v1206_v28  ;;  %v490_v33 = vmul.f32 %v389_v27, %v389_v27  ;;  %v453_v39 = vsel %vm452_vm2, %v389_v27, 0.0 }
  0xf6   : > { %v854_v30 = vpop.f32.mrf.mxu0  ;;  %v1212_v32 = vpop.f32.mrf.mxu1  ;;  %v509_v56 = vsel %vm452_vm2, %v492_v35, 0.0 }
  0xf7   : > { %612 = vst.msk [vmem:[%s1204_s9] sm:$0xf] %vm611_vm1, %v824_v29  ;;  %v827_v34 = vpack.c.bf16 %v854_v30, %v854_v30  ;;  %622 = vst.msk [vmem:[%s1204_s9 + $0x28] sm:$0xf] %vm611_vm1, %v834_v31  ;;  %v832_v37 = vpack.c.bf16 %v1212_v32, %v1212_v32  ;;  %v506_v47 = vsel %vm452_vm2, %v490_v33, 0.0  ;;  %v493_v48 = vmul.f32 %v854_v30, %v854_v30 }
  0xf8   : > { %v392_v36 = vpop.f32.mrf.mxu0  ;;  %v1220_v38 = vpop.f32.mrf.mxu1  ;;  %v458_v57 = vsel %vm452_vm2, %v854_v30, 0.0  ;;  %v498_v25 = vmul.f32 %v1212_v32, %v1212_v32  ;;  %v468_v31 = vsel %vm452_vm2, %v1212_v32, 0.0 }
  0xf9   : > { %615 = vst.msk [vmem:[%s1204_s9 + $0xc] sm:$0xf] %vm611_vm1, %v827_v34  ;;  %v454_v40 = vsel %vm452_vm2, %v392_v36, 0.0  ;;  %v491_v41 = vmul.f32 %v392_v36, %v392_v36  ;;  %v825_v42 = vpack.c.bf16 %v392_v36, %v392_v36  ;;  %620 = vst.msk [vmem:[%s1204_s9 + $0x20] sm:$0xf] %vm611_vm1, %v832_v37  ;;  %v835_v54 = vpack.c.bf16 %v1220_v38, %v1220_v38 }
  0xfa   : > { %v455_v44 = vadd.f32 %v454_v40, %v453_v39  ;;  %v857_v45 = vpop.f32.mrf.mxu0  ;;  %v1229_v46 = vpop.f32.mrf.mxu1  ;;  %v511_v0 = vsel %vm452_vm2, %v493_v48, 0.0  ;;  %v500_v37 = vmul.f32 %v1206_v28, %v1206_v28  ;;  %v521_v39 = vsel %vm452_vm2, %v498_v25, 0.0 }
  0xfb   : > { %v507_v49 = vsel %vm452_vm2, %v491_v41, 0.0  ;;  %613 = vst.msk [vmem:[%s1204_s9 + $0x4] sm:$0xf] %vm611_vm1, %v825_v42  ;;  %v830_v50 = vpack.c.bf16 %v857_v45, %v857_v45  ;;  %623 = vst.msk [vmem:[%s1204_s9 + $0x2c] sm:$0xf] %vm611_vm1, %v835_v54  ;;  %v496_v3 = vmul.f32 %v857_v45, %v857_v45  ;;  %v833_v7 = vpack.c.bf16 %v1229_v46, %v1229_v46 }
  0xfc   : > { %v457_v51 = vadd.f32 %v456_v43, %v455_v44  ;;  %v508_v52 = vadd.f32 %v507_v49, %v506_v47  ;;  %v405_v53 = vpop.f32.mrf.mxu0  ;;  %v1237_v55 = vpop.f32.mrf.mxu1  ;;  %v464_v15 = vsel %vm452_vm2, %v857_v45, 0.0  ;;  %v499_v33 = vmul.f32 %v1229_v46, %v1229_v46 }
  0xfd   : > { %618 = vst.msk [vmem:[%s1204_s9 + $0x18] sm:$0xf] %vm611_vm1, %v830_v50  ;;  %v494_v58 = vmul.f32 %v405_v53, %v405_v53  ;;  %v828_v59 = vpack.c.bf16 %v405_v53, %v405_v53  ;;  %v460_v1 = vsel %vm452_vm2, %v405_v53, 0.0  ;;  %621 = vst.msk [vmem:[%s1204_s9 + $0x24] sm:$0xf] %vm611_vm1, %v833_v7  ;;  %v838_v18 = vpack.c.bf16 %v1237_v55, %v1237_v55 }
  0xfe   : > { %v510_v60 = vadd.f32 %v509_v56, %v508_v52  ;;  %v459_v61 = vadd.f32 %v458_v57, %v457_v51  ;;  %v858_v62 = vpop.f32.mrf.mxu0  ;;  %v437_v63 = vpop.f32.mrf.mxu1  ;;  %v517_v23 = vsel %vm452_vm2, %v496_v3, 0.0  ;;  %v470_v40 = vsel %vm452_vm2, %v1229_v46, 0.0 }
  0xff   : > { %616 = vst.msk [vmem:[%s1204_s9 + $0x10] sm:$0xf] %vm611_vm1, %v828_v59  ;;  %v831_v2 = vpack.c.bf16 %v858_v62, %v858_v62  ;;  %v513_v9 = vsel %vm452_vm2, %v494_v58, 0.0  ;;  %v497_v16 = vmul.f32 %v858_v62, %v858_v62  ;;  %v836_v21 = vpack.c.bf16 %v437_v63, %v437_v63  ;;  %626 = vst.msk [vmem:[%s1204_s9 + $0x38] sm:$0xf] %vm611_vm1, %v838_v18 }
 0x100   : > { %v461_v4 = vadd.f32 %v460_v1, %v459_v61  ;;  %v512_v5 = vadd.f32 %v511_v0, %v510_v60  ;;  %v408_v6 = vpop.f32.mrf.mxu0  ;;  %v1251_v8 = vpop.f32.mrf.mxu1  ;;  %v466_v24 = vsel %vm452_vm2, %v858_v62, 0.0  ;;  %v472_v42 = vsel %vm452_vm2, %v1206_v28, 0.0 }
 0x101   : > { %619 = vst.msk [vmem:[%s1204_s9 + $0x1c] sm:$0xf] %vm611_vm1, %v831_v2  ;;  %v462_v10 = vsel %vm452_vm2, %v408_v6, 0.0  ;;  %v495_v11 = vmul.f32 %v408_v6, %v408_v6  ;;  %v829_v12 = vpack.c.bf16 %v408_v6, %v408_v6  ;;  %v839_v26 = vpack.c.bf16 %v1251_v8, %v1251_v8  ;;  %624 = vst.msk [vmem:[%s1204_s9 + $0x30] sm:$0xf] %vm611_vm1, %v836_v21 }
 0x102   : > { %v514_v13 = vadd.f32 %v513_v9, %v512_v5  ;;  %v463_v14 = vadd.f32 %v462_v10, %v461_v4  ;;  %v440_v22 = vpop.f32.mrf.mxu1  ;;  %v519_v30 = vsel %vm452_vm2, %v497_v16, 0.0  ;;  %v501_v43 = vmul.f32 %v1220_v38, %v1220_v38 }
 0x103   : > { %v515_v17 = vsel %vm452_vm2, %v495_v11, 0.0  ;;  %617 = vst.msk [vmem:[%s1204_s9 + $0x14] sm:$0xf] %vm611_vm1, %v829_v12  ;;  %627 = vst.msk [vmem:[%s1204_s9 + $0x3c] sm:$0xf] %vm611_vm1, %v839_v26  ;;  %v837_v34 = vpack.c.bf16 %v440_v22, %v440_v22  ;;  %v523_v44 = vsel %vm452_vm2, %v499_v33, 0.0  ;;  %v502_v46 = vmul.f32 %v437_v63, %v437_v63 }
 0x104   : > { %v465_v19 = vadd.f32 %v464_v15, %v463_v14  ;;  %v516_v20 = vadd.f32 %v515_v17, %v514_v13  ;;  %v525_v48 = vsel %vm452_vm2, %v500_v37, 0.0  ;;  %v474_v49 = vsel %vm452_vm2, %v1220_v38, 0.0 }
 0x105   : > { %625 = vst.msk [vmem:[%s1204_s9 + $0x34] sm:$0xf] %vm611_vm1, %v837_v34  ;;  %v527_v52 = vsel %vm452_vm2, %v501_v43, 0.0  ;;  %v476_v53 = vsel %vm452_vm2, %v437_v63, 0.0  ;;  %v503_v28 = vmul.f32 %v440_v22, %v440_v22  ;;  %v504_v57 = vmul.f32 %v1237_v55, %v1237_v55 }
 0x106   : > { %v467_v27 = vadd.f32 %v466_v24, %v465_v19  ;;  %v518_v29 = vadd.f32 %v517_v23, %v516_v20  ;;  %v529_v58 = vsel %vm452_vm2, %v502_v46, 0.0  ;;  %v478_v59 = vsel %vm452_vm2, %v440_v22, 0.0 }
 0x107   : > { %v480_v61 = vsel %vm452_vm2, %v1237_v55, 0.0  ;;  %v505_v62 = vmul.f32 %v1251_v8, %v1251_v8  ;;  %v531_v63 = vsel %vm452_vm2, %v503_v28, 0.0  ;;  %v533_v2 = vsel %vm452_vm2, %v504_v57, 0.0 }
 0x108   : > { %v520_v35 = vadd.f32 %v519_v30, %v518_v29  ;;  %v469_v36 = vadd.f32 %v468_v31, %v467_v27  ;;  %v482_v3 = vsel %vm452_vm2, %v1251_v8, 0.0 }
 0x109   : > { %v535_v6 = vsel %vm452_vm2, %v505_v62, 0.0 }
 0x10a   : > { %v471_v41 = vadd.f32 %v470_v40, %v469_v36  ;;  %v522_v32 = vadd.f32 %v521_v39, %v520_v35 }
 0x10c   : > { %v473_v45 = vadd.f32 %v472_v42, %v471_v41  ;;  %v524_v47 = vadd.f32 %v523_v44, %v522_v32 }
 0x10e   : > { %v526_v50 = vadd.f32 %v525_v48, %v524_v47  ;;  %v475_v51 = vadd.f32 %v474_v49, %v473_v45 }
 0x110   : > { %v477_v54 = vadd.f32 %v476_v53, %v475_v51  ;;  %v528_v56 = vadd.f32 %v527_v52, %v526_v50 }
 0x112   : > { %v530_v38 = vadd.f32 %v529_v58, %v528_v56  ;;  %v479_v60 = vadd.f32 %v478_v59, %v477_v54 }
 0x114   : > { %v481_v0 = vadd.f32 %v480_v61, %v479_v60  ;;  %v532_v1 = vadd.f32 %v531_v63, %v530_v38 }
 0x116   : > { %v483_v4 = vadd.f32 %v482_v3, %v481_v0  ;;  %v534_v5 = vadd.f32 %v533_v2, %v532_v1 }
 0x118   : > { %v484_v7 = vrot.slane %v483_v4, 4  ;;  %v536_v55 = vadd.f32 %v535_v6, %v534_v5 }
 0x11a   : > { %v485_v9 = vadd.f32 %v484_v7, %v483_v4  ;;  %v537_v10 = vrot.slane %v536_v55, 4 }
 0x11c   : > { %v486_v11 = vrot.slane %v485_v9, 2  ;;  %v538_v12 = vadd.f32 %v537_v10, %v536_v55 }
 0x11e   : > { %v487_v13 = vadd.f32 %v486_v11, %v485_v9  ;;  %v539_v14 = vrot.slane %v538_v12, 2 }
 0x120   : > { %v488_v15 = vrot.slane %v487_v13, 1  ;;  %v540_v16 = vadd.f32 %v539_v14, %v538_v12 }
 0x122   : > { %v541_v8 = vrot.slane %v540_v16, 1  ;;  %v489_v17 = vadd.f32 %v488_v15, %v487_v13 }
 0x124   : > { %v542_v18 = vadd.f32 %v541_v8, %v540_v16 }
 0x126   : > { %v544_v19 = vsel %vm543_vm3, %v489_v17, %v542_v18 }
 0x127   : > { %546 = vst.msk [vmem:[%s296_s14] sm:$0x3] %vm545_vm4, %v544_v19 }
 0x128 PF: > { %s19_s23 = sadd.s32 1, %s1037_s23   ;;  %s1351_s18 = smov %s1013_s19 }
 0x129   : > { %p16_p11 = scmp.ge.s32.totalorder %s19_s23, 6   ;;  %s1352_s19 = smov %s1017_s20 }
 0x12a   : > { %s1353_s20 = smov %s1139_s11  ;;  %s1354_s1 = smov %s1029_s21 }
 0x12b   : > { %s1355_s2 = smov %s1033_s22  ;;  %s1356_s21 = smov %s1359_s25 }
 0x12c   : > { %s1357_s22 = smov %s1363_s26  ;;  %18 = sbr.rel (!%p16_p11) target bundleno = 5 (0x5), region = 88 }
 0x131   :  { %682 = vsyncpa [#allocation3], 1 }
 0x132   :  { %684 = vsyncpa [#allocation3 + $0x1], 1 }

// kernel: bottleneck_forward.5
= control target key start
LH: loop header
LB: loop body
LE: loop exit
PB: predicated region body
PF: predicated region fallthrough
CT: control target
= control target key end

     0   :  { %s2580_s18 = smov 0   ;;  %s3626_s0 = inlined_call_operand.vmem [shape: bf16[2,16,16,4], index: 0, kind: input, shape index: {}]   ;;  %s3627_s1 = inlined_call_operand.vmem [shape: f32[1,4], index: 1, kind: input, shape index: {}]   ;;  %s3628_s2 = inlined_call_operand.vmem [shape: f32[1,4], index: 2, kind: input, shape index: {}]   ;;  %s3629_s3 = inlined_call_operand.vmem [shape: bf16[36,4], index: 3, kind: input, shape index: {}]   ;;  %s3630_s4 = inlined_call_operand.vmem [shape: bf16[2,16,16,4], index: 4, kind: output, shape index: {0}]   ;;  %s3631_s5 = inlined_call_operand.vmem [shape: f32[2,2,4], index: 5, kind: output, shape index: {1}]  }
   0x1 LB: > { %s1991_s19 = sadd.s32 4294967295, %s2545_s18   ;;  %p1995_p0 = scmp.ge.s32.totalorder %s2545_s18, 1  ;;  %s2545_s18 = sphi %s2580_s18, %s16_s18  }
   0x2   : > { %p190_p1 = scmp.lt.s32.totalorder %s2545_s18, 3 }
   0x4   : > { %p191_p2 = pnand %p1995_p0, %p190_p1 }
   0x5   : > { %p222_p3 = scmp.lt.s32.totalorder (!%p191_p2), %s1991_s19, 1  ;;  %s2547_s28 = smov (!%p191_p2), 4  }
   0x6   : > { %194 = sbr.rel (%p191_p2) target bundleno = 496 (0x1f0), region = 36  ;;  %s2548_s29 = smov (!%p191_p2), 8  }
   0xb   : > { %v411_v0 = vlaneseq  ;;  %s3633_s19 = smov (!%p222_p3, %s1991_s19), 1  ;;  %v2603_v2 = vld [vmem:[%s3627_s1] ss:$0 sm:$0xff]  ;;  %vm1030_vm4 = vcmask 1045504   ;;  %vm856_vm5 = vcmask 31744   ;;  %vm889_vm6 = vcmask 64512  }
   0xc   : > { %s2088_s20 = sshll.u32 %s3633_s19, 7  ;;  %v2615_v12 = vld [vmem:[%s3628_s2] ss:$0 sm:$0xff]  ;;  %vm981_vm7 = vcmask 97280   ;;  %vm1872_vm8 = vcmask 27648   ;;  %s2000_s14 = sshll.u32 %s3633_s19, 1 }
   0xd   : > { %v2590_v1 = vshrl.u32 %v411_v0, 7  ;;  %s2598_s23 = scalar_lea.vmem %s3626_s0, %s2088_s20  ;;  %s3463_s13 = scalar_lea.vmem %s3630_s4, %s2088_s20  ;;  %vm1740_vm9 = vcmask 1040384   ;;  %vm1742_vm10 = vcmask 25600  }
   0xe   : > { %v2193_v3 = vld [vmem:[%s2598_s23 + $0x40] sm:$0xff]   ;;  %v2194_v5 = vld [vmem:[%s2598_s23 + $0x48] sm:$0xff]   ;;  %v2195_v41 = vld [vmem:[%s2598_s23 + $0x50] sm:$0xff]   ;;  %s235_s17 = scalar_lea.vmem %s3631_s5, %s2000_s14 }
   0xf   : > { %v2123_v4 = vld [vmem:[%s2598_s23] sm:$0xff]   ;;  %v2609_v6 = vadd.s32 8, %v2590_v1  ;;  %v2156_v7 = vunpack.c.l.bf16 %v2193_v3  ;;  %v2157_v8 = vunpack.c.h.bf16 %v2193_v3  ;;  %v2186_v11 = vld [vmem:[%s2598_s23 + $0x8] sm:$0xff]   ;;  %v2160_v13 = vunpack.c.l.bf16 %v2194_v5  ;;  %v2196_v42 = vld [vmem:[%s2598_s23 + $0x58] sm:$0xff]  }
  0x10   : > { %v2124_v9 = vunpack.c.l.bf16 %v2123_v4  ;;  %v2125_v10 = vunpack.c.h.bf16 %v2123_v4  ;;  %v2161_v14 = vunpack.c.h.bf16 %v2194_v5  ;;  %v2128_v15 = vunpack.c.l.bf16 %v2186_v11 }
  0x11   : > { %v2129_v16 = vunpack.c.h.bf16 %v2186_v11  ;;  %v324_v17 = vmul.f32 %v2156_v7, %v2603_v2  ;;  %v325_v18 = vmul.f32 %v2157_v8, %v2603_v2  ;;  %v326_v21 = vmul.f32 %v2160_v13, %v2603_v2 }
  0x12   : > { %v308_v19 = vmul.f32 %v2124_v9, %v2603_v2  ;;  %v309_v20 = vmul.f32 %v2125_v10, %v2603_v2  ;;  %v327_v22 = vmul.f32 %v2161_v14, %v2603_v2  ;;  %v310_v23 = vmul.f32 %v2128_v15, %v2603_v2 }
  0x13   : > { %v311_v24 = vmul.f32 %v2129_v16, %v2603_v2  ;;  %v363_v25 = vadd.f32 %v2615_v12, %v324_v17  ;;  %v364_v26 = vadd.f32 %v2615_v12, %v325_v18  ;;  %v365_v29 = vadd.f32 %v2615_v12, %v326_v21  ;;  %v2187_v17 = vld [vmem:[%s2598_s23 + $0x10] sm:$0xff]  }
  0x14   : > { %v347_v27 = vadd.f32 %v2615_v12, %v308_v19  ;;  %v348_v28 = vadd.f32 %v2615_v12, %v309_v20  ;;  %v366_v30 = vadd.f32 %v2615_v12, %v327_v22  ;;  %v349_v31 = vadd.f32 %v2615_v12, %v310_v23  ;;  %v2188_v22 = vld [vmem:[%s2598_s23 + $0x18] sm:$0xff]  }
  0x15   : > { %v350_v32 = vadd.f32 %v2615_v12, %v311_v24  ;;  %v2633_v33 = vmax.f32 %v363_v25, 0.0  ;;  %v2635_v34 = vmax.f32 %v364_v26, 0.0  ;;  %v2641_v37 = vmax.f32 %v365_v29, 0.0 }
  0x16   : > { %v2637_v35 = vmax.f32 %v347_v27, 0.0  ;;  %v2639_v36 = vmax.f32 %v348_v28, 0.0  ;;  %v2643_v38 = vmax.f32 %v366_v30, 0.0  ;;  %v2645_v39 = vmax.f32 %v349_v31, 0.0 }
  0x17   : > { %v2647_v40 = vmax.f32 %v350_v32, 0.0  ;;  %v441_v43 = vrot.slane %v2635_v34, 7  ;;  %v2371_v44 = vpack.i.bf16 %v2635_v34, %v2633_v33  ;;  %vm417_vm0 = vcmp.lt.s32.totalorder %v2609_v6, 15 }
  0x18   : > { %vm541_vm1 = vcmp.lt.s32.totalorder %v2590_v1, 7  ;;  %v426_v45 = vrot.slane %v2633_v33, 7  ;;  %v2381_v46 = vpack.i.bf16 %v2639_v36, %v2637_v35  ;;  %v2376_v47 = vpack.i.bf16 %v2643_v38, %v2641_v37 }
  0x19   : > { %v2386_v48 = vpack.i.bf16 %v2647_v40, %v2645_v39  ;;  %2372 = vrot.lane.b32.xlu0 %v2371_v44, %s2547_s28  ;;  %v2164_v49 = vunpack.c.l.bf16 %v2195_v41  ;;  %v2165_v50 = vunpack.c.h.bf16 %v2195_v41  ;;  %v2168_v51 = vunpack.c.l.bf16 %v2196_v42 }
  0x1a   : > { %v2169_v52 = vunpack.c.h.bf16 %v2196_v42  ;;  %2382 = vrot.lane.b32.xlu1 %v2381_v46, %s2547_s28  ;;  %v520_v53 = vrot.slane %v2641_v37, 1  ;;  %v535_v54 = vrot.slane %v2643_v38, 1  ;;  %v519_v55 = vrot.slane %v2633_v33, 1 }
  0x1b   : > { %v534_v56 = vrot.slane %v2635_v34, 1  ;;  %v328_v57 = vmul.f32 %v2164_v49, %v2603_v2  ;;  %v329_v58 = vmul.f32 %v2165_v50, %v2603_v2  ;;  %v330_v59 = vmul.f32 %v2168_v51, %v2603_v2 }
  0x1c   : > { %v331_v60 = vmul.f32 %v2169_v52, %v2603_v2  ;;  %v551_v61 = vsel %vm541_vm1, %v520_v53, %v535_v54  ;;  %v566_v62 = vsel %vm541_vm1, %v535_v54, %v520_v53  ;;  %v512_v10 = vrot.slane %v2645_v39, 1  ;;  %v2198_v53 = vld [vmem:[%s2598_s23 + $0x68] sm:$0xff]  }
  0x1d   : > { %v550_v63 = vsel %vm541_vm1, %v519_v55, %v534_v56  ;;  %v565_v0 = vsel %vm541_vm1, %v534_v56, %v519_v55  ;;  %2377 = vrot.lane.b32.xlu0 %v2376_v47, %s2547_s28  ;;  %v367_v3 = vadd.f32 %v2615_v12, %v328_v57  ;;  %v368_v4 = vadd.f32 %v2615_v12, %v329_v58  ;;  %v2197_v58 = vld [vmem:[%s2598_s23 + $0x60] sm:$0xff]  }
  0x1e   : > { %v369_v5 = vadd.f32 %v2615_v12, %v330_v59  ;;  %v370_v7 = vadd.f32 %v2615_v12, %v331_v60  ;;  %2387 = vrot.lane.b32.xlu1 %v2386_v48, %s2547_s28  ;;  %v593_v8 = vsel %vm417_vm0, %v566_v62, 0.0  ;;  %v591_v9 = vsel %vm417_vm0, %v565_v0, 0.0 }
  0x1f   : > { %v527_v11 = vrot.slane %v2647_v40, 1  ;;  %v2693_v13 = vmax.f32 %v367_v3, 0.0  ;;  %v2695_v14 = vmax.f32 %v368_v4, 0.0  ;;  %v2406_v18 = vpack.i.bf16 %v593_v8, %v551_v61 }
  0x20   : > { %v2697_v15 = vmax.f32 %v369_v5, 0.0  ;;  %v2699_v16 = vmax.f32 %v370_v7, 0.0  ;;  %v2401_v19 = vpack.i.bf16 %v591_v9, %v550_v63  ;;  %v511_v26 = vrot.slane %v2637_v35, 1 }
  0x21   : > { %v543_v20 = vsel %vm541_vm1, %v512_v10, %v527_v11  ;;  %v558_v21 = vsel %vm541_vm1, %v527_v11, %v512_v10  ;;  %v2391_v23 = vpack.i.bf16 %v2695_v14, %v2693_v13  ;;  %v526_v28 = vrot.slane %v2639_v36, 1 }
  0x22   : > { %v2396_v24 = vpack.i.bf16 %v2699_v16, %v2697_v15  ;;  %v577_v25 = vsel %vm417_vm0, %v558_v21, 0.0  ;;  %v2132_v29 = vunpack.c.l.bf16 %v2187_v17  ;;  %v2133_v30 = vunpack.c.h.bf16 %v2187_v17 }
  0x23   : > { %v2416_v27 = vpack.i.bf16 %v577_v25, %v543_v20  ;;  %2392 = vrot.lane.b32.xlu0 %v2391_v23, %s2547_s28  ;;  %v521_v31 = vrot.slane %v2693_v13, 1  ;;  %v536_v32 = vrot.slane %v2695_v14, 1  ;;  %v2136_v41 = vunpack.c.l.bf16 %v2188_v22 }
  0x24   : > { %2397 = vrot.lane.b32.xlu1 %v2396_v24, %s2547_s28  ;;  %v2137_v42 = vunpack.c.h.bf16 %v2188_v22  ;;  %v542_v44 = vsel %vm541_vm1, %v511_v26, %v526_v28  ;;  %v557_v46 = vsel %vm541_vm1, %v526_v28, %v511_v26  ;;  %v312_v47 = vmul.f32 %v2132_v29, %v2603_v2 }
  0x25   : > { %v313_v48 = vmul.f32 %v2133_v30, %v2603_v2  ;;  %v575_v49 = vsel %vm417_vm0, %v557_v46, 0.0  ;;  %v552_v50 = vsel %vm541_vm1, %v521_v31, %v536_v32  ;;  %v567_v51 = vsel %vm541_vm1, %v536_v32, %v521_v31 }
  0x26   : > { %v314_v52 = vmul.f32 %v2136_v41, %v2603_v2  ;;  %v2411_v54 = vpack.i.bf16 %v575_v49, %v542_v44  ;;  %v351_v55 = vadd.f32 %v2615_v12, %v312_v47  ;;  %v595_v57 = vsel %vm417_vm0, %v567_v51, 0.0 }
  0x27   : > { %v352_v56 = vadd.f32 %v2615_v12, %v313_v48  ;;  %2407 = vrot.lane.b32.xlu0 %v2406_v18, %s2548_s29  ;;  %v2421_v59 = vpack.i.bf16 %v595_v57, %v552_v50  ;;  %v315_v60 = vmul.f32 %v2137_v42, %v2603_v2  ;;  %v522_v62 = vrot.slane %v2697_v15, 1  ;;  %v2190_v50 = vld [vmem:[%s2598_s23 + $0x28] sm:$0xff]  }
  0x28   : > { %2402 = vrot.lane.b32.xlu1 %v2401_v19, %s2548_s29  ;;  %v353_v61 = vadd.f32 %v2615_v12, %v314_v52  ;;  %v2743_v63 = vmax.f32 %v351_v55, 0.0  ;;  %v537_v3 = vrot.slane %v2699_v16, 1  ;;  %v2176_v4 = vunpack.c.l.bf16 %v2198_v53 }
  0x29   : > { %v2745_v0 = vmax.f32 %v352_v56, 0.0  ;;  %v354_v5 = vadd.f32 %v2615_v12, %v315_v60  ;;  %v2177_v8 = vunpack.c.h.bf16 %v2198_v53  ;;  %v2172_v9 = vunpack.c.l.bf16 %v2197_v58 }
  0x2a   : > { %v2749_v7 = vmax.f32 %v353_v61, 0.0  ;;  %v553_v11 = vsel %vm541_vm1, %v522_v62, %v537_v3  ;;  %v568_v17 = vsel %vm541_vm1, %v537_v3, %v522_v62  ;;  %v513_v18 = vrot.slane %v2743_v63, 1 }
  0x2b   : > { %v2426_v10 = vpack.i.bf16 %v2745_v0, %v2743_v63  ;;  %2412 = vrot.lane.b32.xlu0 %v2411_v54, %s2548_s29  ;;  %v2760_v19 = vmax.f32 %v354_v5, 0.0  ;;  %v597_v20 = vsel %vm417_vm0, %v568_v17, 0.0  ;;  %v528_v22 = vrot.slane %v2745_v0, 1 }
  0x2c   : > { %2417 = vrot.lane.b32.xlu1 %v2416_v27, %s2548_s29  ;;  %v514_v21 = vrot.slane %v2749_v7, 1  ;;  %v433_v23 = vrot.slane %v2639_v36, 7  ;;  %v334_v24 = vmul.f32 %v2176_v4, %v2603_v2  ;;  %v335_v25 = vmul.f32 %v2177_v8, %v2603_v2  ;;  %v2189_v27 = vld [vmem:[%s2598_s23 + $0x20] sm:$0xff]  }
  0x2d   : > { %v2173_v26 = vunpack.c.h.bf16 %v2197_v58  ;;  %v2431_v28 = vpack.i.bf16 %v597_v20, %v553_v11  ;;  %v529_v29 = vrot.slane %v2760_v19, 1  ;;  %v544_v30 = vsel %vm541_vm1, %v513_v18, %v528_v22 }
  0x2e   : > { %v559_v31 = vsel %vm541_vm1, %v528_v22, %v513_v18  ;;  %v373_v41 = vadd.f32 %v2615_v12, %v334_v24  ;;  %v374_v42 = vadd.f32 %v2615_v12, %v335_v25  ;;  %v332_v44 = vmul.f32 %v2172_v9, %v2603_v2  ;;  %v2199_v9 = vld [vmem:[%s2598_s23 + $0x70] sm:$0xff]  }
  0x2f   : > { %v579_v32 = vsel %vm417_vm0, %v559_v31, 0.0  ;;  %2422 = vrot.lane.b32.xlu0 %v2421_v59, %s2548_s29  ;;  %v2436_v46 = vpack.i.bf16 %v2760_v19, %v2749_v7  ;;  %v545_v47 = vsel %vm541_vm1, %v514_v21, %v529_v29  ;;  %v560_v48 = vsel %vm541_vm1, %v529_v29, %v514_v21 }
  0x30   : > { %2427 = vrot.lane.b32.xlu1 %v2426_v10, %s2547_s28  ;;  %v2140_v49 = vunpack.c.l.bf16 %v2189_v27  ;;  %v581_v51 = vsel %vm417_vm0, %v560_v48, 0.0  ;;  %v2441_v52 = vpack.i.bf16 %v579_v32, %v544_v30  ;;  %v2791_v53 = vmax.f32 %v373_v41, 0.0 }
  0x31   : > { %v333_v54 = vmul.f32 %v2173_v26, %v2603_v2  ;;  %v2794_v55 = vmax.f32 %v374_v42, 0.0  ;;  %v371_v56 = vadd.f32 %v2615_v12, %v332_v44  ;;  %v2141_v57 = vunpack.c.h.bf16 %v2189_v27 }
  0x32   : > { %v316_v58 = vmul.f32 %v2140_v49, %v2603_v2  ;;  %v2446_v59 = vpack.i.bf16 %v581_v51, %v545_v47  ;;  %v2144_v61 = vunpack.c.l.bf16 %v2190_v50  ;;  %v2145_v62 = vunpack.c.h.bf16 %v2190_v50  ;;  %v2191_v51 = vld [vmem:[%s2598_s23 + $0x30] sm:$0xff]  }
  0x33   : > { %v372_v60 = vadd.f32 %v2615_v12, %v333_v54  ;;  %2432 = vrot.lane.b32.xlu0 %v2431_v28, %s2548_s29  ;;  %v2801_v3 = vmax.f32 %v371_v56, 0.0  ;;  %v317_v4 = vmul.f32 %v2141_v57, %v2603_v2  ;;  %v524_v8 = vrot.slane %v2791_v53, 1 }
  0x34   : > { %2437 = vrot.lane.b32.xlu1 %v2436_v46, %s2547_s28  ;;  %v355_v5 = vadd.f32 %v2615_v12, %v316_v58  ;;  %v318_v11 = vmul.f32 %v2144_v61, %v2603_v2  ;;  %v319_v17 = vmul.f32 %v2145_v62, %v2603_v2  ;;  %v539_v18 = vrot.slane %v2794_v55, 1 }
  0x35   : > { %v2807_v10 = vmax.f32 %v372_v60, 0.0  ;;  %v2456_v20 = vpack.i.bf16 %v2794_v55, %v2791_v53  ;;  %v356_v21 = vadd.f32 %v2615_v12, %v317_v4  ;;  %v523_v24 = vrot.slane %v2801_v3, 1 }
  0x36   : > { %v2815_v22 = vmax.f32 %v355_v5, 0.0  ;;  %v357_v26 = vadd.f32 %v2615_v12, %v318_v11  ;;  %v358_v27 = vadd.f32 %v2615_v12, %v319_v17  ;;  %v2180_v28 = vunpack.c.l.bf16 %v2199_v9  ;;  %v2200_v11 = vld [vmem:[%s2598_s23 + $0x78] sm:$0xff]  }
  0x37   : > { %v538_v25 = vrot.slane %v2807_v10, 1  ;;  %2442 = vrot.lane.b32.xlu0 %v2441_v52, %s2548_s29  ;;  %v2451_v29 = vpack.i.bf16 %v2807_v10, %v2801_v3  ;;  %v2825_v30 = vmax.f32 %v356_v21, 0.0  ;;  %v570_v31 = vsel %vm541_vm1, %v539_v18, %v524_v8 }
  0x38   : > { %2447 = vrot.lane.b32.xlu1 %v2446_v59, %s2548_s29  ;;  %v515_v32 = vrot.slane %v2815_v22, 1  ;;  %v2834_v44 = vmax.f32 %v357_v26, 0.0  ;;  %v2836_v46 = vmax.f32 %v358_v27, 0.0  ;;  %v555_v48 = vsel %vm541_vm1, %v524_v8, %v539_v18 }
  0x39   : > { %v554_v41 = vsel %vm541_vm1, %v523_v24, %v538_v25  ;;  %v569_v42 = vsel %vm541_vm1, %v538_v25, %v523_v24  ;;  %v601_v49 = vsel %vm417_vm0, %v570_v31, 0.0  ;;  %v530_v50 = vrot.slane %v2825_v30, 1  ;;  %v2192_v24 = vld [vmem:[%s2598_s23 + $0x38] sm:$0xff]  }
  0x3a   : > { %v599_v47 = vsel %vm417_vm0, %v569_v42, 0.0  ;;  %v418_v52 = vrot.slane %v2637_v35, 7  ;;  %v2466_v54 = vpack.i.bf16 %v2825_v30, %v2815_v22  ;;  %v516_v57 = vrot.slane %v2834_v44, 1 }
  0x3b   : > { %v2461_v56 = vpack.i.bf16 %v599_v47, %v554_v41  ;;  %2452 = vrot.lane.b32.xlu0 %v2451_v29, %s2547_s28  ;;  %v2476_v58 = vpack.i.bf16 %v2836_v46, %v2834_v44  ;;  %v531_v59 = vrot.slane %v2836_v46, 1  ;;  %v561_v60 = vsel %vm541_vm1, %v530_v50, %v515_v32 }
  0x3c   : > { %2457 = vrot.lane.b32.xlu1 %v2456_v20, %s2547_s28  ;;  %v2181_v61 = vunpack.c.h.bf16 %v2199_v9  ;;  %v2471_v62 = vpack.i.bf16 %v601_v49, %v555_v48  ;;  %v336_v4 = vmul.f32 %v2180_v28, %v2603_v2  ;;  %v2148_v5 = vunpack.c.l.bf16 %v2191_v51 }
  0x3d   : > { %v2149_v8 = vunpack.c.h.bf16 %v2191_v51  ;;  %v562_v17 = vsel %vm541_vm1, %v531_v59, %v516_v57  ;;  %v546_v18 = vsel %vm541_vm1, %v515_v32, %v530_v50  ;;  %v583_v20 = vsel %vm417_vm0, %v561_v60, 0.0 }
  0x3e   : > { %v337_v21 = vmul.f32 %v2181_v61, %v2603_v2  ;;  %vm448_vm2 = vcmp.lt.s32.totalorder %v2590_v1, 1  ;;  %v547_v9 = vsel %vm541_vm1, %v516_v57, %v531_v59  ;;  %v375_v25 = vadd.f32 %v2615_v12, %v336_v4 }
  0x3f   : > { %v320_v26 = vmul.f32 %v2148_v5, %v2603_v2  ;;  %v321_v27 = vmul.f32 %v2149_v8, %v2603_v2  ;;  %2462 = vrot.lane.b32.xlu0 %v2461_v56, %s2548_s29  ;;  %v585_v28 = vsel %vm417_vm0, %v562_v17, 0.0  ;;  %v2184_v31 = vunpack.c.l.bf16 %v2200_v11 }
  0x40   : > { %2467 = vrot.lane.b32.xlu1 %v2466_v54, %s2547_s28  ;;  %v376_v29 = vadd.f32 %v2615_v12, %v337_v21  ;;  %v2185_v32 = vunpack.c.h.bf16 %v2200_v11  ;;  %v2878_v41 = vmax.f32 %v375_v25, 0.0  ;;  %v2152_v48 = vunpack.c.l.bf16 %v2192_v24 }
  0x41   : > { %v359_v42 = vadd.f32 %v2615_v12, %v320_v26  ;;  %v360_v47 = vadd.f32 %v2615_v12, %v321_v27  ;;  %v338_v50 = vmul.f32 %v2184_v31, %v2603_v2  ;;  %v2153_v54 = vunpack.c.h.bf16 %v2192_v24 }
  0x42   : > { %v2882_v49 = vmax.f32 %v376_v29, 0.0  ;;  %v339_v51 = vmul.f32 %v2185_v32, %v2603_v2  ;;  %vm414_vm3 = vcmp.ge.s32.totalorder %v2590_v1, 1  ;;  %v2481_v56 = vpack.i.bf16 %v583_v20, %v546_v18 }
  0x43   : > { %v525_v57 = vrot.slane %v2878_v41, 1  ;;  %v2888_v59 = vmax.f32 %v359_v42, 0.0  ;;  %v322_v60 = vmul.f32 %v2152_v48, %v2603_v2  ;;  %2472 = vrot.lane.b32.xlu0 %v2471_v62, %s2548_s29  ;;  %v2486_v61 = vpack.i.bf16 %v585_v28, %v547_v9 }
  0x44   : > { %2477 = vrot.lane.b32.xlu1 %v2476_v58, %s2547_s28  ;;  %v540_v4 = vrot.slane %v2882_v49, 1  ;;  %v377_v5 = vadd.f32 %v2615_v12, %v338_v50  ;;  %v378_v8 = vadd.f32 %v2615_v12, %v339_v51  ;;  %v2896_v11 = vmax.f32 %v360_v47, 0.0 }
  0x45   : > { %v323_v17 = vmul.f32 %v2153_v54, %v2603_v2  ;;  %v361_v18 = vadd.f32 %v2615_v12, %v322_v60  ;;  %v517_v20 = vrot.slane %v2888_v59, 1  ;;  %v2491_v28 = vpack.i.bf16 %v2882_v49, %v2878_v41 }
  0x46   : > { %v556_v58 = vsel %vm541_vm1, %v525_v57, %v540_v4  ;;  %v571_v62 = vsel %vm541_vm1, %v540_v4, %v525_v57  ;;  %v2905_v21 = vmax.f32 %v377_v5, 0.0  ;;  %v2907_v24 = vmax.f32 %v378_v8, 0.0 }
  0x47   : > { %v603_v9 = vsel %vm417_vm0, %v571_v62, 0.0  ;;  %v362_v25 = vadd.f32 %v2615_v12, %v323_v17  ;;  %v2912_v2 = vmax.f32 %v361_v18, 0.0  ;;  %v532_v26 = vrot.slane %v2896_v11, 1  ;;  %2482 = vrot.lane.b32.xlu0 %v2481_v56, %s2548_s29 }
  0x48   : > { %2487 = vrot.lane.b32.xlu1 %v2486_v61, %s2548_s29  ;;  %v2496_v27 = vpack.i.bf16 %v603_v9, %v556_v58  ;;  %v946_v29 = vrot.slane %v2905_v21, 1  ;;  %v947_v31 = vrot.slane %v2907_v24, 1  ;;  %v2506_v32 = vpack.i.bf16 %v2896_v11, %v2888_v59 }
  0x49   : > { %v2923_v12 = vmax.f32 %v362_v25, 0.0  ;;  %v518_v42 = vrot.slane %v2912_v2, 1  ;;  %v563_v47 = vsel %vm541_vm1, %v532_v26, %v517_v20  ;;  %v2501_v48 = vpack.i.bf16 %v2907_v24, %v2905_v21 }
  0x4a   : > { %v948_v50 = vsel %vm541_vm1, %v946_v29, %v947_v31  ;;  %v949_v51 = vsel %vm541_vm1, %v947_v31, %v946_v29  ;;  %v2940_v54 = vsel %vm448_vm2, %v426_v45, %v441_v43  ;;  %v2947_v60 = vsel %vm541_vm1, %v517_v20, %v532_v26 }
  0x4b   : > { %v951_v56 = vsel %vm417_vm0, %v949_v51, 0.0  ;;  %v533_v57 = vrot.slane %v2923_v12, 1  ;;  %v2951_v61 = vsel %vm417_vm0, %v563_v47, 0.0  ;;  %2492 = vrot.lane.b32.xlu0 %v2491_v28, %s2547_s28  ;;  %v2516_v4 = vpack.i.bf16 %v2923_v12, %v2912_v2  ;;  %v2538_v51 = vld [vmem:[%s3629_s3 + $0xc] sm:$0x3f]  }
  0x4c   : > { %2497 = vrot.lane.b32.xlu1 %v2496_v27, %s2548_s29  ;;  %v472_v5 = vsel %vm448_vm2, %v441_v43, %v426_v45  ;;  %v427_v8 = vrot.slane %v2641_v37, 7  ;;  %v442_v17 = vrot.slane %v2643_v38, 7  ;;  %v2511_v18 = vpack.i.bf16 %v951_v56, %v948_v50  ;;  %v2536_v43 = vld [vmem:[%s3629_s3 + $0x4] sm:$0xfc]  }
  0x4d   : > { %v564_v20 = vsel %vm541_vm1, %v533_v57, %v518_v42  ;;  %v2969_v58 = vsel %vm414_vm3, %v472_v5, 0.0  ;;  %v419_v62 = vrot.slane %v2645_v39, 7  ;;  %v549_v33 = vsel %vm541_vm1, %v518_v42, %v533_v57  ;;  %v2537_v42 = vld [vmem:[%s3629_s3] sm:$0x3f]  }
  0x4e   : > { %v2976_v34 = vsel %vm448_vm2, %v427_v8, %v442_v17  ;;  %v473_v37 = vsel %vm448_vm2, %v442_v17, %v427_v8  ;;  %v434_v38 = vrot.slane %v2647_v40, 7  ;;  %v589_v45 = vsel %vm417_vm0, %v564_v20, 0.0 }
  0x4f   : > { %v2988_v39 = vsel %vm414_vm3, %v473_v37, 0.0  ;;  %v428_v9 = vrot.slane %v2693_v13, 7  ;;  %v443_v25 = vrot.slane %v2695_v14, 7  ;;  %2502 = vrot.lane.b32.xlu0 %v2501_v48, %s2547_s28  ;;  %v429_v26 = vrot.slane %v2697_v15, 7 }
  0x50   : > { %2507 = vrot.lane.b32.xlu1 %v2506_v32, %s2547_s28  ;;  %v2996_v40 = vsel %vm448_vm2, %v419_v62, %v434_v38  ;;  %v465_v6 = vsel %vm448_vm2, %v434_v38, %v419_v62  ;;  %v444_v27 = vrot.slane %v2699_v16, 7  ;;  %v2521_v13 = vpack.i.bf16 %v2951_v61, %v2947_v60 }
  0x51   : > { %v3006_v14 = vsel %vm414_vm3, %v465_v6, 0.0  ;;  %v3010_v28 = vsel %vm448_vm2, %v428_v9, %v443_v25  ;;  %v474_v29 = vsel %vm448_vm2, %v443_v25, %v428_v9  ;;  %v980_v32 = vrot.slane %v2536_v43, 2 }
  0x52   : > { %v3016_v31 = vsel %vm414_vm3, %v474_v29, 0.0  ;;  %v3020_v15 = vsel %vm448_vm2, %v429_v26, %v444_v27  ;;  %v475_v16 = vsel %vm448_vm2, %v444_v27, %v429_v26  ;;  %v2526_v47 = vpack.i.bf16 %v589_v45, %v549_v33 }
  0x53   : > { %v3029_v48 = vsel %vm414_vm3, %v475_v16, 0.0  ;;  %v420_v50 = vrot.slane %v2743_v63, 7  ;;  %2512 = vrot.lane.b32.xlu0 %v2511_v18, %s2548_s29  ;;  %v1032_v56 = vsel %vm1030_vm4, %v980_v32, 0  ;;  %v435_v57 = vrot.slane %v2745_v0, 7  ;;  %2357 = vmatprep.subr.msk.bf16.mxu1 %vm1030_vm4, %v980_v32 }
  0x54   : > { %2517 = vrot.lane.b32.xlu1 %v2516_v4, %s2547_s28  ;;  %v3045_v60 = vsel %vm448_vm2, %v418_v52, %v433_v23  ;;  %v464_v63 = vsel %vm448_vm2, %v433_v23, %v418_v52  ;;  %2356 = vmatprep.subr.msk.bf16.mxu0 %vm1030_vm4, %v980_v32  ;;  %v421_v61 = vrot.slane %v2749_v7, 7  ;;  %v436_v4 = vrot.slane %v2760_v19, 7 }
  0x55   : > { %v3057_v0 = vsel %vm414_vm3, %v464_v63, 0.0  ;;  %v431_v5 = vrot.slane %v2791_v53, 7  ;;  %2355 = vmatpush3.bf16.msra.mxu1 %v1032_v56  ;;  %2253 = vmatpush3.bf16.msra.mxu0 %v1032_v56  ;;  %v3064_v35 = vsel %vm448_vm2, %v420_v50, %v435_v57  ;;  %v466_v36 = vsel %vm448_vm2, %v435_v57, %v420_v50 }
  0x56   : > { %v446_v23 = vrot.slane %v2794_v55, 7  ;;  %v430_v52 = vrot.slane %v2801_v3, 7  ;;  %v3072_v7 = vsel %vm414_vm3, %v466_v36, 0.0  ;;  %v3076_v19 = vsel %vm448_vm2, %v421_v61, %v436_v4  ;;  %2358 = vmatprep.subr.msk.bf16.mxu1 %vm1030_vm4, %v2537_v42  ;;  %2359 = vmatprep.subr.msk.bf16.mxu0 %vm1030_vm4, %v2538_v51 }
  0x57   : > { %v467_v53 = vsel %vm448_vm2, %v436_v4, %v421_v61  ;;  %v445_v8 = vrot.slane %v2807_v10, 7  ;;  %2522 = vrot.lane.b32.xlu0 %v2521_v13, %s2548_s29  ;;  %v422_v10 = vrot.slane %v2815_v22, 7  ;;  %v437_v33 = vrot.slane %v2825_v30, 7 }
  0x58   : > { %2527 = vrot.lane.b32.xlu1 %v2526_v47, %s2548_s29  ;;  %v3087_v55 = vsel %vm414_vm3, %v467_v53, 0.0  ;;  %v3091_v3 = vsel %vm448_vm2, %v431_v5, %v446_v23  ;;  %v477_v17 = vsel %vm448_vm2, %v446_v23, %v431_v5  ;;  %v423_v38 = vrot.slane %v2834_v44, 7 }
  0x59   : > { %v3098_v18 = vsel %vm414_vm3, %v477_v17, 0.0  ;;  %v3102_v20 = vsel %vm448_vm2, %v430_v52, %v445_v8  ;;  %v476_v62 = vsel %vm448_vm2, %v445_v8, %v430_v52  ;;  %v438_v22 = vrot.slane %v2836_v46, 7 }
  0x5a   : > { %v3109_v37 = vsel %vm414_vm3, %v476_v62, 0.0  ;;  %v3114_v43 = vsel %vm1030_vm4, %v2537_v42, 0  ;;  %v3118_v45 = vsel %vm448_vm2, %v422_v10, %v437_v33  ;;  %v468_v9 = vsel %vm448_vm2, %v437_v33, %v422_v10 }
  0x5b   : > { %v3123_v30 = vsel %vm1030_vm4, %v2538_v51, 0  ;;  %v432_v25 = vrot.slane %v2878_v41, 7  ;;  %v2549_v6 = vmov 0.0   ;;  %v3130_v44 = vsel %vm414_vm3, %v468_v9, 0.0 }
  0x5c   : > { %2532 = vrot.lane.b32.xlu1 %v2549_v6, %s2548_s29  ;;  %635 = vrot.lane.b32.xlu0 %v2549_v6, %s2547_s28  ;;  %v3134_v46 = vsel %vm448_vm2, %v423_v38, %v438_v22  ;;  %v469_v26 = vsel %vm448_vm2, %v438_v22, %v423_v38  ;;  %v447_v27 = vrot.slane %v2882_v49, 7  ;;  %v424_v13 = vrot.slane %v2888_v59, 7 }
  0x5d   : > { %v3141_v41 = vsel %vm414_vm3, %v469_v26, 0.0  ;;  %v439_v29 = vrot.slane %v2896_v11, 7  ;;  %v940_v16 = vrot.slane %v2905_v21, 7  ;;  %v941_v47 = vrot.slane %v2907_v24, 7 }
  0x5e   : > { %v3148_v32 = vsel %vm448_vm2, %v432_v25, %v447_v27  ;;  %v478_v42 = vsel %vm448_vm2, %v447_v27, %v432_v25  ;;  %v425_v49 = vrot.slane %v2912_v2, 7  ;;  %v440_v21 = vrot.slane %v2923_v12, 7 }
  0x5f   : > { %v3156_v50 = vsel %vm414_vm3, %v478_v42, 0.0  ;;  %v3160_v59 = vsel %vm448_vm2, %v424_v13, %v439_v29  ;;  %v470_v11 = vsel %vm448_vm2, %v439_v29, %v424_v13  ;;  %v3171_v24 = vsel %vm448_vm2, %v940_v16, %v941_v47 }
  0x60   : > { %v3167_v51 = vsel %vm414_vm3, %v470_v11, 0.0  ;;  %v943_v2 = vsel %vm448_vm2, %v941_v47, %v940_v16  ;;  %v3181_v57 = vsel %vm448_vm2, %v425_v49, %v440_v21  ;;  %v471_v12 = vsel %vm448_vm2, %v440_v21, %v425_v49 }
  0x61   : > { %v3177_v56 = vsel %vm414_vm3, %v943_v2, 0.0  ;;  %v3187_v63 = vsel %vm414_vm3, %v471_v12, 0.0 }
  0x8b   : > { %v2373_v61 = vpop.permute.xlu0 %2372 }
  0x8c   : > { %v2383_v4 = vpop.permute.xlu1 %2382  ;;  %v2375_v23 = vunpack.i.h.bf16 %v2373_v61  ;;  %v2374_v52 = vunpack.i.l.bf16 %v2373_v61 }
  0x8d   : > { %v2385_v33 = vunpack.i.h.bf16 %v2383_v4  ;;  %v2384_v38 = vunpack.i.l.bf16 %v2383_v4 }
  0x8e   : > { %v875_v62 = vsel %vm856_vm5, %v2969_v58, %v2374_v52  ;;  %v876_v1 = vsel %vm856_vm5, %v2940_v54, %v2375_v23 }
  0x8f   : > { %v2378_v5 = vpop.permute.xlu0 %2377 }
  0x90   : > { %v2388_v36 = vpop.permute.xlu1 %2387  ;;  %v2380_v17 = vunpack.i.h.bf16 %v2378_v5  ;;  %v2379_v10 = vunpack.i.l.bf16 %v2378_v5 }
  0x91   : > { %v2390_v16 = vunpack.i.h.bf16 %v2388_v36  ;;  %v2389_v42 = vunpack.i.l.bf16 %v2388_v36 }
  0x92   : > { %v878_v13 = vsel %vm856_vm5, %v2976_v34, %v2380_v17  ;;  %v877_v29 = vsel %vm856_vm5, %v2988_v39, %v2379_v10  ;;  %v859_v34 = vsel %vm856_vm5, %v3057_v0, %v2384_v38  ;;  %v860_v39 = vsel %vm856_vm5, %v3045_v60, %v2385_v33 }
  0x93   : > { %v862_v23 = vsel %vm856_vm5, %v2996_v40, %v2390_v16  ;;  %v861_v52 = vsel %vm856_vm5, %v3006_v14, %v2389_v42 }
  0x95   : > { %v2393_v53 = vpop.permute.xlu0 %2392 }
  0x96   : > { %v3189_v8 = vpop.permute.xlu1 %2397  ;;  %v2395_v17 = vunpack.i.h.bf16 %v2393_v53  ;;  %v2394_v10 = vunpack.i.l.bf16 %v2393_v53 }
  0x97   : > { %v2400_v53 = vunpack.i.h.bf16 %v3189_v8 }
  0x99   : > { %v2408_v22 = vpop.permute.xlu0 %2407 }
  0x9a   : > { %v2403_v9 = vpop.permute.xlu1 %2402  ;;  %v2410_v25 = vunpack.i.h.bf16 %v2408_v22  ;;  %v2409_v6 = vunpack.i.l.bf16 %v2408_v22  ;;  %v2399_v22 = vunpack.i.l.bf16 %v3189_v8 }
  0x9b   : > { %v2405_v26 = vunpack.i.h.bf16 %v2403_v9  ;;  %v2404_v27 = vunpack.i.l.bf16 %v2403_v9 }
  0x9c   : > { %v910_v58 = vsel %vm889_vm6, %v877_v29, %v2409_v6  ;;  %v911_v54 = vsel %vm889_vm6, %v878_v13, %v2410_v25  ;;  %v880_v6 = vsel %vm856_vm5, %v3010_v28, %v2395_v17  ;;  %v882_v28 = vsel %vm856_vm5, %v3020_v15, %v2400_v53 }
  0x9d   : > { %v908_v47 = vsel %vm889_vm6, %v875_v62, %v2404_v27  ;;  %v909_v49 = vsel %vm889_vm6, %v876_v1, %v2405_v26  ;;  %v3203_v11 = vpack.c.bf16 %v911_v54, %v910_v58  ;;  %v2413_v2 = vpop.permute.xlu0 %2412  ;;  %v879_v26 = vsel %vm856_vm5, %v3016_v31, %v2394_v10 }
  0x9e   : > { %v2418_v21 = vpop.permute.xlu1 %2417  ;;  %v3205_v12 = vpack.c.bf16 %v909_v49, %v908_v47  ;;  %v2415_v5 = vunpack.i.h.bf16 %v2413_v2  ;;  %v2414_v36 = vunpack.i.l.bf16 %v2413_v2  ;;  %v881_v31 = vsel %vm856_vm5, %v3029_v48, %v2399_v22 }
  0x9f   : > { %v2420_v61 = vunpack.i.h.bf16 %v2418_v21  ;;  %v2419_v4 = vunpack.i.l.bf16 %v2418_v21 }
  0xa0   : > { %2270 = vmatprep.mubr.msk.bf16.mxu1 %vm981_vm7, %v3205_v12  ;;  %v892_v60 = vsel %vm889_vm6, %v859_v34, %v2414_v36  ;;  %v893_v1 = vsel %vm889_vm6, %v860_v39, %v2415_v5 }
  0xa1   : > { %v894_v0 = vsel %vm889_vm6, %v861_v52, %v2419_v4  ;;  %v895_v62 = vsel %vm889_vm6, %v862_v23, %v2420_v61  ;;  %2271 = vmatmul.mubr.msk.bf16.vlgmr.msra.gmra.mxu1 %vm981_vm7, %v3203_v11  ;;  %v2423_v14 = vpop.permute.xlu0 %2422  ;;  %v3225_v38 = vpack.c.bf16 %v893_v1, %v892_v60 }
  0xa2   : > { %v3223_v40 = vpack.c.bf16 %v895_v62, %v894_v0  ;;  %v2428_v33 = vpop.permute.xlu1 %2427  ;;  %2287 = vmatpush3.bf16.msra.mxu1 %v3114_v43  ;;  %v2425_v9 = vunpack.i.h.bf16 %v2423_v14  ;;  %v2424_v25 = vunpack.i.l.bf16 %v2423_v14 }
  0xa3   : > { %2254 = vmatprep.mubr.msk.bf16.mxu0 %vm981_vm7, %v3225_v38  ;;  %v2430_v58 = vunpack.i.h.bf16 %v2428_v33  ;;  %v2429_v54 = vunpack.i.l.bf16 %v2428_v33 }
  0xa4   : > { %v913_v27 = vsel %vm889_vm6, %v880_v6, %v2425_v9  ;;  %v912_v13 = vsel %vm889_vm6, %v879_v26, %v2424_v25  ;;  %2255 = vmatmul.mubr.msk.bf16.vlgmr.msra.gmra.mxu0 %vm981_vm7, %v3223_v40 }
  0xa5   : > { %v3240_v43 = vpack.c.bf16 %v913_v27, %v912_v13  ;;  %v2433_v29 = vpop.permute.xlu0 %2432  ;;  %2321 = vmatpush3.bf16.msra.mxu0 %v3123_v30  ;;  %v864_v5 = vsel %vm856_vm5, %v3064_v35, %v2430_v58  ;;  %v863_v36 = vsel %vm856_vm5, %v3072_v7, %v2429_v54 }
  0xa6   : > { %v2438_v8 = vpop.permute.xlu1 %2437  ;;  %v2435_v16 = vunpack.i.h.bf16 %v2433_v29  ;;  %v2434_v42 = vunpack.i.l.bf16 %v2433_v29 }
  0xa7   : > { %v2440_v47 = vunpack.i.h.bf16 %v2438_v8  ;;  %v2439_v49 = vunpack.i.l.bf16 %v2438_v8  ;;  %2274 = vmatprep.mubr.msk.bf16.mxu1 %vm981_vm7, %v3240_v43 }
  0xa8   : > { %v915_v21 = vsel %vm889_vm6, %v882_v28, %v2435_v16  ;;  %v914_v2 = vsel %vm889_vm6, %v881_v31, %v2434_v42 }
  0xa9   : > { %v3251_v30 = vpack.c.bf16 %v915_v21, %v914_v2  ;;  %v2443_v15 = vpop.permute.xlu0 %2442  ;;  %v866_v23 = vsel %vm856_vm5, %v3076_v19, %v2440_v47  ;;  %v865_v52 = vsel %vm856_vm5, %v3087_v55, %v2439_v49 }
  0xaa   : > { %v2448_v34 = vpop.permute.xlu1 %2447  ;;  %v2445_v48 = vunpack.i.h.bf16 %v2443_v15  ;;  %v2444_v4 = vunpack.i.l.bf16 %v2443_v15 }
  0xab   : > { %v2450_v39 = vunpack.i.h.bf16 %v2448_v34  ;;  %v2449_v61 = vunpack.i.l.bf16 %v2448_v34  ;;  %2275 = vmatmul.mubr.msk.bf16.gmra.mxu1 %vm981_vm7, %v3251_v30 }
  0xac   : > { %v897_v0 = vsel %vm889_vm6, %v864_v5, %v2445_v48  ;;  %v896_v35 = vsel %vm889_vm6, %v863_v36, %v2444_v4 }
  0xad   : > { %v898_v17 = vsel %vm889_vm6, %v865_v52, %v2449_v61  ;;  %v899_v10 = vsel %vm889_vm6, %v866_v23, %v2450_v39  ;;  %v3269_v7 = vpack.c.bf16 %v897_v0, %v896_v35  ;;  %v2453_v19 = vpop.permute.xlu0 %2452 }
  0xae   : > { %v3267_v62 = vpack.c.bf16 %v899_v10, %v898_v17  ;;  %v2458_v60 = vpop.permute.xlu1 %2457  ;;  %v2455_v1 = vunpack.i.h.bf16 %v2453_v19  ;;  %v2454_v33 = vunpack.i.l.bf16 %v2453_v19 }
  0xaf   : > { %2258 = vmatprep.mubr.msk.bf16.mxu0 %vm981_vm7, %v3269_v7  ;;  %v2460_v53 = vunpack.i.h.bf16 %v2458_v60  ;;  %v2459_v22 = vunpack.i.l.bf16 %v2458_v60 }
  0xb0   : > { %2259 = vmatmul.mubr.msk.bf16.gmra.mxu0 %vm981_vm7, %v3267_v62  ;;  %v884_v6 = vsel %vm856_vm5, %v3102_v20, %v2455_v1  ;;  %v883_v26 = vsel %vm856_vm5, %v3109_v37, %v2454_v33 }
  0xb1   : > { %v2463_v14 = vpop.permute.xlu0 %2462  ;;  %v886_v31 = vsel %vm856_vm5, %v3091_v3, %v2460_v53  ;;  %v885_v16 = vsel %vm856_vm5, %v3098_v18, %v2459_v22 }
  0xb2   : > { %v2468_v55 = vpop.permute.xlu1 %2467  ;;  %v2465_v9 = vunpack.i.h.bf16 %v2463_v14  ;;  %v2464_v25 = vunpack.i.l.bf16 %v2463_v14 }
  0xb3   : > { %v2470_v20 = vunpack.i.h.bf16 %v2468_v55  ;;  %v2469_v54 = vunpack.i.l.bf16 %v2468_v55 }
  0xb4   : > { %v916_v27 = vsel %vm889_vm6, %v883_v26, %v2464_v25  ;;  %v917_v13 = vsel %vm889_vm6, %v884_v6, %v2465_v9 }
  0xb5   : > { %v3281_v8 = vpack.c.bf16 %v917_v13, %v916_v27  ;;  %v2473_v28 = vpop.permute.xlu0 %2472  ;;  %v868_v48 = vsel %vm856_vm5, %v3118_v45, %v2470_v20  ;;  %v867_v4 = vsel %vm856_vm5, %v3130_v44, %v2469_v54 }
  0xb6   : > { %v2478_v29 = vpop.permute.xlu1 %2477  ;;  %v2475_v42 = vunpack.i.h.bf16 %v2473_v28  ;;  %v2474_v58 = vunpack.i.l.bf16 %v2473_v28 }
  0xb7   : > { %v2480_v47 = vunpack.i.h.bf16 %v2478_v29  ;;  %v2479_v37 = vunpack.i.l.bf16 %v2478_v29  ;;  %2278 = vmatprep.mubr.msk.bf16.mxu1 %vm981_vm7, %v3281_v8 }
  0xb8   : > { %v919_v49 = vsel %vm889_vm6, %v886_v31, %v2475_v42  ;;  %v918_v21 = vsel %vm889_vm6, %v885_v16, %v2474_v58 }
  0xb9   : > { %v3291_v2 = vpack.c.bf16 %v919_v49, %v918_v21  ;;  %v2483_v3 = vpop.permute.xlu0 %2482  ;;  %v870_v5 = vsel %vm856_vm5, %v3134_v46, %v2480_v47  ;;  %v869_v36 = vsel %vm856_vm5, %v3141_v41, %v2479_v37 }
  0xba   : > { %v2488_v34 = vpop.permute.xlu1 %2487  ;;  %v2485_v18 = vunpack.i.h.bf16 %v2483_v3  ;;  %v2484_v61 = vunpack.i.l.bf16 %v2483_v3 }
  0xbb   : > { %v2490_v15 = vunpack.i.h.bf16 %v2488_v34  ;;  %v2489_v39 = vunpack.i.l.bf16 %v2488_v34  ;;  %2279 = vmatmul.mubr.msk.bf16.gmra.mxu1 %vm981_vm7, %v3291_v2 }
  0xbc   : > { %v901_v17 = vsel %vm889_vm6, %v868_v48, %v2485_v18  ;;  %v900_v45 = vsel %vm889_vm6, %v867_v4, %v2484_v61 }
  0xbd   : > { %v902_v23 = vsel %vm889_vm6, %v869_v36, %v2489_v39  ;;  %v903_v52 = vsel %vm889_vm6, %v870_v5, %v2490_v15  ;;  %v3309_v44 = vpack.c.bf16 %v901_v17, %v900_v45  ;;  %v2493_v46 = vpop.permute.xlu0 %2492 }
  0xbe   : > { %v3307_v10 = vpack.c.bf16 %v903_v52, %v902_v23  ;;  %v2498_v0 = vpop.permute.xlu1 %2497  ;;  %v2495_v41 = vunpack.i.h.bf16 %v2493_v46  ;;  %v2494_v19 = vunpack.i.l.bf16 %v2493_v46 }
  0xbf   : > { %v2500_v35 = vunpack.i.h.bf16 %v2498_v0  ;;  %v2499_v60 = vunpack.i.l.bf16 %v2498_v0  ;;  %2262 = vmatprep.mubr.msk.bf16.mxu0 %vm981_vm7, %v3309_v44 }
  0xc0   : > { %v888_v1 = vsel %vm856_vm5, %v3148_v32, %v2495_v41  ;;  %v887_v33 = vsel %vm856_vm5, %v3156_v50, %v2494_v19  ;;  %2263 = vmatmul.mubr.msk.bf16.gmra.mxu0 %vm981_vm7, %v3307_v10 }
  0xc1   : > { %v2503_v14 = vpop.permute.xlu0 %2502  ;;  %v920_v53 = vsel %vm889_vm6, %v887_v33, %v2499_v60  ;;  %v921_v22 = vsel %vm889_vm6, %v888_v1, %v2500_v35 }
  0xc2   : > { %v2508_v55 = vpop.permute.xlu1 %2507  ;;  %v2505_v9 = vunpack.i.h.bf16 %v2503_v14  ;;  %v2504_v25 = vunpack.i.l.bf16 %v2503_v14  ;;  %v3321_v6 = vpack.c.bf16 %v921_v22, %v920_v53 }
  0xc3   : > { %v2510_v27 = vunpack.i.h.bf16 %v2508_v55  ;;  %v2509_v50 = vunpack.i.l.bf16 %v2508_v55 }
  0xc4   : > { %2282 = vmatprep.mubr.msk.bf16.mxu1 %vm981_vm7, %v3321_v6  ;;  %v969_v28 = vsel %vm856_vm5, %v3171_v24, %v2505_v9  ;;  %v968_v31 = vsel %vm856_vm5, %v3177_v56, %v2504_v25 }
  0xc5   : > { %v2513_v26 = vpop.permute.xlu0 %2512  ;;  %v872_v15 = vsel %vm856_vm5, %v3160_v59, %v2510_v27  ;;  %v871_v24 = vsel %vm856_vm5, %v3167_v51, %v2509_v50 }
  0xc6   : > { %v2518_v32 = vpop.permute.xlu1 %2517  ;;  %v2515_v13 = vunpack.i.h.bf16 %v2513_v26  ;;  %v2514_v29 = vunpack.i.l.bf16 %v2513_v26 }
  0xc7   : > { %v2520_v16 = vunpack.i.h.bf16 %v2518_v32  ;;  %v2519_v42 = vunpack.i.l.bf16 %v2518_v32 }
  0xc8   : > { %v970_v58 = vsel %vm889_vm6, %v968_v31, %v2514_v29  ;;  %v971_v20 = vsel %vm889_vm6, %v969_v28, %v2515_v13 }
  0xc9   : > { %v972_v54 = vpack.c.bf16 %v971_v20, %v970_v58  ;;  %v2523_v37 = vpop.permute.xlu0 %2522  ;;  %v874_v56 = vsel %vm856_vm5, %v3181_v57, %v2520_v16  ;;  %v873_v39 = vsel %vm856_vm5, %v3187_v63, %v2519_v42 }
  0xca   : > { %v2528_v47 = vpop.permute.xlu1 %2527  ;;  %v2525_v34 = vunpack.i.h.bf16 %v2523_v37  ;;  %v2524_v3 = vunpack.i.l.bf16 %v2523_v37 }
  0xcb   : > { %v2530_v49 = vunpack.i.h.bf16 %v2528_v47  ;;  %v2529_v21 = vunpack.i.l.bf16 %v2528_v47  ;;  %2283 = vmatmul.mubr.msk.bf16.gmra.mxu1 %vm981_vm7, %v972_v54 }
  0xcc   : > { %v905_v48 = vsel %vm889_vm6, %v872_v15, %v2525_v34  ;;  %v904_v4 = vsel %vm889_vm6, %v871_v24, %v2524_v3 }
  0xcd   : > { %v906_v18 = vsel %vm889_vm6, %v873_v39, %v2529_v21  ;;  %v907_v61 = vsel %vm889_vm6, %v874_v56, %v2530_v49  ;;  %v929_v5 = vpack.c.bf16 %v905_v48, %v904_v4 }
  0xce   : > { %v930_v59 = vpack.c.bf16 %v907_v61, %v906_v18  ;;  %v2533_v36 = vpop.permute.xlu1 %2532  ;;  %v636_v51 = vpop.permute.xlu0 %635 }
  0xcf   : > { %v2535_v23 = vunpack.i.h.bf16 %v2533_v36  ;;  %v2534_v52 = vunpack.i.l.bf16 %v2533_v36  ;;  %v857_v57 = vsel %vm856_vm5, 0.0, %v636_v51  ;;  %2266 = vmatprep.mubr.msk.bf16.mxu0 %vm981_vm7, %v929_v5 }
  0xd0   : > { %2267 = vmatmul.mubr.msk.bf16.gmra.mxu0 %vm981_vm7, %v930_v59 }
  0xd1   : > { %v890_v63 = vsel %vm889_vm6, %v857_v57, %v2534_v52  ;;  %v891_v17 = vsel %vm889_vm6, %v857_v57, %v2535_v23  ;;  %2322 = vmatprep.mubr.msk.bf16.mxu0 %vm981_vm7, %v3223_v40 }
  0xd2   : > { %v922_v45 = vpack.c.bf16 %v891_v17, %v890_v63 }
  0xd4   : > { %2288 = vmatprep.mubr.msk.bf16.mxu1 %vm981_vm7, %v922_v45 }
  0xd5   : > { %2289 = vmatmul.mubr.msk.bf16.vlgmr.msra.gmra.mxu1 %vm981_vm7, %v3225_v38 }
  0xd6   : > { %2292 = vmatprep.mubr.msk.bf16.mxu1 %vm981_vm7, %v3223_v40 }
  0xd8   : > { %2323 = vmatmul.mubr.msk.bf16.vlgmr.msra.gmra.mxu0 %vm981_vm7, %v3269_v7 }
  0xd9   : > { %2326 = vmatprep.mubr.msk.bf16.mxu0 %vm981_vm7, %v3267_v62 }
  0xdd   : > { %2293 = vmatmul.mubr.msk.bf16.gmra.mxu1 %vm981_vm7, %v3269_v7 }
  0xde   : > { %2296 = vmatprep.mubr.msk.bf16.mxu1 %vm981_vm7, %v3267_v62 }
  0xe0   : > { %2327 = vmatmul.mubr.msk.bf16.gmra.mxu0 %vm981_vm7, %v3309_v44 }
  0xe1   : > { %2330 = vmatprep.mubr.msk.bf16.mxu0 %vm981_vm7, %v3307_v10 }
  0xe5   : > { %2297 = vmatmul.mubr.msk.bf16.gmra.mxu1 %vm981_vm7, %v3309_v44 }
  0xe6   : > { %2300 = vmatprep.mubr.msk.bf16.mxu1 %vm981_vm7, %v3307_v10 }
  0xe8   : > { %2331 = vmatmul.mubr.msk.bf16.gmra.mxu0 %vm981_vm7, %v929_v5 }
  0xe9   : > { %2334 = vmatprep.mubr.msk.bf16.mxu0 %vm981_vm7, %v930_v59 }
  0xed   : > { %2301 = vmatmul.mubr.msk.bf16.gmra.mxu1 %vm981_vm7, %v929_v5 }
  0xee   : > { %2304 = vmatprep.mubr.msk.bf16.mxu1 %vm981_vm7, %v930_v59 }
  0xf0   : > { %2335 = vmatmul.mubr.msk.bf16.gmra.mxu0 %vm981_vm7, %v3205_v12 }
  0xf1   : > { %2338 = vmatprep.mubr.msk.bf16.mxu0 %vm981_vm7, %v3203_v11 }
  0xf5   : > { %2305 = vmatmul.mubr.msk.bf16.gmra.mxu1 %vm981_vm7, %v3205_v12 }
  0xf6   : > { %2308 = vmatprep.mubr.msk.bf16.mxu1 %vm981_vm7, %v3203_v11 }
  0xf8   : > { %2339 = vmatmul.mubr.msk.bf16.gmra.mxu0 %vm981_vm7, %v3240_v43 }
  0xf9   : > { %2342 = vmatprep.mubr.msk.bf16.mxu0 %vm981_vm7, %v3251_v30 }
  0xfd   : > { %2309 = vmatmul.mubr.msk.bf16.gmra.mxu1 %vm981_vm7, %v3240_v43 }
  0xfe   : > { %2312 = vmatprep.mubr.msk.bf16.mxu1 %vm981_vm7, %v3251_v30 }
 0x100   : > { %2343 = vmatmul.mubr.msk.bf16.gmra.mxu0 %vm981_vm7, %v3281_v8 }
 0x101   : > { %2346 = vmatprep.mubr.msk.bf16.mxu0 %vm981_vm7, %v3291_v2 }
 0x105   : > { %2313 = vmatmul.mubr.msk.bf16.gmra.mxu1 %vm981_vm7, %v3281_v8 }
 0x106   : > { %2316 = vmatprep.mubr.msk.bf16.mxu1 %vm981_vm7, %v3291_v2 }
 0x108   : > { %2347 = vmatmul.mubr.msk.bf16.gmra.mxu0 %vm981_vm7, %v3321_v6 }
 0x109   : > { %2350 = vmatprep.mubr.msk.bf16.mxu0 %vm981_vm7, %v972_v54 }
 0x10d   : > { %2317 = vmatmul.mubr.msk.bf16.gmra.mxu1 %vm981_vm7, %v3321_v6 }
 0x110   : > { %2351 = vmatmul.mubr.msk.bf16.gmra.mxu0 %vm981_vm7, %v922_v45 }
 0x161   : > { %v3406_v11 = vpop.f32.mrf.mxu1 }
 0x163   : > { %v3408_v12 = vpop.f32.mrf.mxu1 }
 0x164   : > { %v2256_v40 = vpop.f32.mrf.mxu0 }
 0x165   : > { %v3410_v38 = vpop.f32.mrf.mxu1 }
 0x166   : > { %v1068_v43 = vpop.f32.mrf.mxu0 }
 0x167   : > { %v3412_v30 = vpop.f32.mrf.mxu1 }
 0x168   : > { %v2257_v62 = vpop.f32.mrf.mxu0 }
 0x16a   : > { %v1071_v8 = vpop.f32.mrf.mxu0 }
 0x16b   : > { %v3414_v7 = vpop.f32.mrf.mxu1 }
 0x16d   : > { %v3416_v2 = vpop.f32.mrf.mxu1 }
 0x16f   : > { %v3418_v44 = vpop.f32.mrf.mxu1 }
 0x170   : > { %v2260_v10 = vpop.f32.mrf.mxu0 }
 0x171   : > { %v3420_v46 = vpop.f32.mrf.mxu1 }
 0x172   : > { %v1084_v0 = vpop.f32.mrf.mxu0 }
 0x174   : > { %v3422_v35 = vpop.f32.mrf.mxu0 }
 0x176   : > { %v3426_v41 = vpop.f32.mrf.mxu0 }
 0x17b   : > { %v3424_v60 = vpop.f32.mrf.mxu1 }
 0x17d   : > { %v3428_v19 = vpop.f32.mrf.mxu1 }
 0x17f   : > { %v3432_v33 = vpop.f32.mrf.mxu1 }
 0x180   : > { %v3430_v1 = vpop.f32.mrf.mxu0 }
 0x181   : > { %v3436_v14 = vpop.f32.mrf.mxu1 }
 0x182   : > { %v3434_v55 = vpop.f32.mrf.mxu0 }
 0x184   : > { %v3438_v53 = vpop.f32.mrf.mxu0 }
 0x186   : > { %v3444_v25 = vpop.f32.mrf.mxu0 }
 0x18b   : > { %v3440_v22 = vpop.f32.mrf.mxu1 }
 0x18d   : > { %v3442_v9 = vpop.f32.mrf.mxu1 }
 0x18f   : > { %v3446_v6 = vpop.f32.mrf.mxu1 }
 0x190   : > { %v3448_v32 = vpop.f32.mrf.mxu0 }
 0x191   : > { %v3450_v26 = vpop.f32.mrf.mxu1 }
 0x192   : > { %v3452_v27 = vpop.f32.mrf.mxu0 }
 0x194   : > { %v3454_v50 = vpop.f32.mrf.mxu0 }
 0x195   : > { %v2290_v13 = vpop.f32.mrf.mxu1 }
 0x196   : > { %v3456_v29 = vpop.f32.mrf.mxu0  ;;  %v1249_v31 = vadd.f32 %v2290_v13, %v2256_v40 }
 0x197   : > { %v1240_v28 = vpop.f32.mrf.mxu1 }
 0x198   : > { %v2324_v42 = vpop.f32.mrf.mxu0  ;;  %v1241_v20 = vadd.f32 %v1240_v28, %v1068_v43 }
 0x199   : > { %v2291_v16 = vpop.f32.mrf.mxu1  ;;  %v1540_v58 = vadd.f32 %v2324_v42, %v1249_v31 }
 0x19a   : > { %v1411_v47 = vpop.f32.mrf.mxu0  ;;  %v1252_v37 = vadd.f32 %v2291_v16, %v2257_v62 }
 0x19b   : > { %v1243_v54 = vpop.f32.mrf.mxu1  ;;  %v2092_v49 = vpack.c.bf16 %v1540_v58, %v1540_v58  ;;  %v1538_v21 = vadd.f32 %v1411_v47, %v1241_v20  ;;  %v1641_v61 = vmul.f32 %v1540_v58, %v1540_v58 }
 0x19c   : > { %v2325_v3 = vpop.f32.mrf.mxu0  ;;  %v1244_v24 = vadd.f32 %v1243_v54, %v1071_v8  ;;  %v1573_v8 = vsel %vm856_vm5, %v1540_v58, 0.0 }
 0x19d   : > { %v2294_v34 = vpop.f32.mrf.mxu1  ;;  %1875 = vst.msk [vmem:[%s3463_s13 + $0x8] sm:$0xf] %vm1872_vm8, %v2092_v49  ;;  %v1541_v15 = vadd.f32 %v2325_v3, %v1252_v37  ;;  %v2090_v56 = vpack.c.bf16 %v1538_v21, %v1538_v21  ;;  %v1639_v59 = vmul.f32 %v1538_v21, %v1538_v21  ;;  %v1570_v23 = vsel %vm856_vm5, %v1538_v21, 0.0 }
 0x19e   : > { %v1414_v18 = vpop.f32.mrf.mxu0  ;;  %v1265_v48 = vadd.f32 %v2294_v34, %v2260_v10  ;;  %v1674_v10 = vsel %vm856_vm5, %v1641_v61, 0.0 }
 0x19f   : > { %v1256_v39 = vpop.f32.mrf.mxu1  ;;  %v2093_v4 = vpack.c.bf16 %v1541_v15, %v1541_v15  ;;  %1873 = vst.msk [vmem:[%s3463_s13] sm:$0xf] %vm1872_vm8, %v2090_v56  ;;  %v1539_v5 = vadd.f32 %v1414_v18, %v1244_v24  ;;  %v1642_v52 = vmul.f32 %v1541_v15, %v1541_v15  ;;  %v1671_v31 = vsel %vm856_vm5, %v1639_v59, 0.0 }
 0x1a0   : > { %v2328_v51 = vpop.f32.mrf.mxu0  ;;  %v1257_v63 = vadd.f32 %v1256_v39, %v1084_v0  ;;  %v1575_v47 = vsel %vm856_vm5, %v1541_v15, 0.0 }
 0x1a1   : > { %v2295_v36 = vpop.f32.mrf.mxu1  ;;  %1876 = vst.msk [vmem:[%s3463_s13 + $0xc] sm:$0xf] %vm1872_vm8, %v2093_v4  ;;  %v1544_v57 = vadd.f32 %v2328_v51, %v1265_v48  ;;  %v1571_v17 = vsel %vm856_vm5, %v1539_v5, 0.0  ;;  %v1640_v45 = vmul.f32 %v1539_v5, %v1539_v5  ;;  %v2091_v40 = vpack.c.bf16 %v1539_v5, %v1539_v5 }
 0x1a2   : > { %v1427_v62 = vpop.f32.mrf.mxu0  ;;  %v1572_v13 = vadd.f32 %v1571_v17, %v1570_v23  ;;  %v1268_v0 = vadd.f32 %v2295_v36, %v3422_v35  ;;  %v1676_v21 = vsel %vm856_vm5, %v1642_v52, 0.0 }
 0x1a3   : > { %v1259_v43 = vpop.f32.mrf.mxu1  ;;  %v2096_v28 = vpack.c.bf16 %v1544_v57, %v1544_v57  ;;  %v1672_v16 = vsel %vm856_vm5, %v1640_v45, 0.0  ;;  %1874 = vst.msk [vmem:[%s3463_s13 + $0x4] sm:$0xf] %vm1872_vm8, %v2091_v40  ;;  %v1542_v42 = vadd.f32 %v1427_v62, %v1257_v63  ;;  %v1645_v18 = vmul.f32 %v1544_v57, %v1544_v57 }
 0x1a4   : > { %v2329_v54 = vpop.f32.mrf.mxu0  ;;  %v1574_v37 = vadd.f32 %v1573_v8, %v1572_v13  ;;  %v1673_v58 = vadd.f32 %v1672_v16, %v1671_v31  ;;  %v1260_v49 = vadd.f32 %v1259_v43, %v3426_v41 }
 0x1a5   : > { %v2298_v20 = vpop.f32.mrf.mxu1  ;;  %1879 = vst.msk [vmem:[%s3463_s13 + $0x18] sm:$0xf] %vm1872_vm8, %v2096_v28  ;;  %v1643_v34 = vmul.f32 %v1542_v42, %v1542_v42  ;;  %v2094_v3 = vpack.c.bf16 %v1542_v42, %v1542_v42  ;;  %v1545_v24 = vadd.f32 %v2329_v54, %v1268_v0  ;;  %v1577_v15 = vsel %vm856_vm5, %v1542_v42, 0.0 }
 0x1a6   : > { %v1430_v39 = vpop.f32.mrf.mxu0  ;;  %v1675_v35 = vadd.f32 %v1674_v10, %v1673_v58  ;;  %v1576_v61 = vadd.f32 %v1575_v47, %v1574_v37  ;;  %v1281_v4 = vadd.f32 %v2298_v20, %v3430_v1  ;;  %v1581_v28 = vsel %vm856_vm5, %v1544_v57, 0.0 }
 0x1a7   : > { %v1272_v56 = vpop.f32.mrf.mxu1  ;;  %v1543_v48 = vadd.f32 %v1430_v39, %v1260_v49  ;;  %1877 = vst.msk [vmem:[%s3463_s13 + $0x10] sm:$0xf] %vm1872_vm8, %v2094_v3  ;;  %v2097_v59 = vpack.c.bf16 %v1545_v24, %v1545_v24  ;;  %v1678_v17 = vsel %vm856_vm5, %v1643_v34, 0.0  ;;  %v1646_v45 = vmul.f32 %v1545_v24, %v1545_v24 }
 0x1a8   : > { %v1273_v41 = vadd.f32 %v1272_v56, %v3434_v55  ;;  %v2332_v36 = vpop.f32.mrf.mxu0  ;;  %v1578_v51 = vadd.f32 %v1577_v15, %v1576_v61  ;;  %v1677_v23 = vadd.f32 %v1676_v21, %v1675_v35  ;;  %v1682_v31 = vsel %vm856_vm5, %v1645_v18, 0.0 }
 0x1a9   : > { %v2299_v5 = vpop.f32.mrf.mxu1  ;;  %v1579_v52 = vsel %vm856_vm5, %v1543_v48, 0.0  ;;  %v1644_v63 = vmul.f32 %v1543_v48, %v1543_v48  ;;  %1880 = vst.msk [vmem:[%s3463_s13 + $0x1c] sm:$0xf] %vm1872_vm8, %v2097_v59  ;;  %v2095_v40 = vpack.c.bf16 %v1543_v48, %v1543_v48  ;;  %v1548_v43 = vadd.f32 %v2332_v36, %v1281_v4 }
 0x1aa   : > { %v1443_v1 = vpop.f32.mrf.mxu0  ;;  %v1679_v8 = vadd.f32 %v1678_v17, %v1677_v23  ;;  %v1580_v55 = vadd.f32 %v1579_v52, %v1578_v51  ;;  %v1284_v13 = vadd.f32 %v2299_v5, %v3438_v53  ;;  %v1583_v54 = vsel %vm856_vm5, %v1545_v24, 0.0 }
 0x1ab   : > { %v1275_v62 = vpop.f32.mrf.mxu1  ;;  %v1680_v10 = vsel %vm856_vm5, %v1644_v63, 0.0  ;;  %1878 = vst.msk [vmem:[%s3463_s13 + $0x14] sm:$0xf] %vm1872_vm8, %v2095_v40  ;;  %v2100_v16 = vpack.c.bf16 %v1548_v43, %v1548_v43  ;;  %v1546_v0 = vadd.f32 %v1443_v1, %v1273_v41  ;;  %v1684_v49 = vsel %vm856_vm5, %v1646_v45, 0.0 }
 0x1ac   : > { %v2333_v20 = vpop.f32.mrf.mxu0  ;;  %v1582_v47 = vadd.f32 %v1581_v28, %v1580_v55  ;;  %v1681_v37 = vadd.f32 %v1680_v10, %v1679_v8  ;;  %v1276_v53 = vadd.f32 %v1275_v62, %v3444_v25  ;;  %v1649_v39 = vmul.f32 %v1548_v43, %v1548_v43 }
 0x1ad   : > { %v2302_v42 = vpop.f32.mrf.mxu1  ;;  %v1549_v58 = vadd.f32 %v2333_v20, %v1284_v13  ;;  %1883 = vst.msk [vmem:[%s3463_s13 + $0x28] sm:$0xf] %vm1872_vm8, %v2100_v16  ;;  %v1647_v57 = vmul.f32 %v1546_v0, %v1546_v0  ;;  %v2098_v21 = vpack.c.bf16 %v1546_v0, %v1546_v0  ;;  %v1585_v18 = vsel %vm856_vm5, %v1546_v0, 0.0 }
 0x1ae   : > { %v1446_v3 = vpop.f32.mrf.mxu0  ;;  %v1683_v56 = vadd.f32 %v1682_v31, %v1681_v37  ;;  %v1584_v35 = vadd.f32 %v1583_v54, %v1582_v47  ;;  %v1297_v24 = vadd.f32 %v2302_v42, %v3448_v32  ;;  %v1589_v45 = vsel %vm856_vm5, %v1548_v43, 0.0 }
 0x1af   : > { %v1288_v34 = vpop.f32.mrf.mxu1  ;;  %1881 = vst.msk [vmem:[%s3463_s13 + $0x20] sm:$0xf] %vm1872_vm8, %v2098_v21  ;;  %v1650_v61 = vmul.f32 %v1549_v58, %v1549_v58  ;;  %v2101_v48 = vpack.c.bf16 %v1549_v58, %v1549_v58  ;;  %v1547_v15 = vadd.f32 %v1446_v3, %v1276_v53  ;;  %v1686_v5 = vsel %vm856_vm5, %v1647_v57, 0.0 }
 0x1b0   : > { %v2336_v59 = vpop.f32.mrf.mxu0  ;;  %v1586_v25 = vadd.f32 %v1585_v18, %v1584_v35  ;;  %v1685_v41 = vadd.f32 %v1684_v49, %v1683_v56  ;;  %v1289_v36 = vadd.f32 %v1288_v34, %v3452_v27  ;;  %v1690_v8 = vsel %vm856_vm5, %v1649_v39, 0.0 }
 0x1b1   : > { %v2303_v4 = vpop.f32.mrf.mxu1  ;;  %1884 = vst.msk [vmem:[%s3463_s13 + $0x2c] sm:$0xf] %vm1872_vm8, %v2101_v48  ;;  %v1587_v32 = vsel %vm856_vm5, %v1547_v15, 0.0  ;;  %v1648_v51 = vmul.f32 %v1547_v15, %v1547_v15  ;;  %v2099_v23 = vpack.c.bf16 %v1547_v15, %v1547_v15  ;;  %v1552_v52 = vadd.f32 %v2336_v59, %v1297_v24 }
 0x1b2   : > { %v1459_v17 = vpop.f32.mrf.mxu0  ;;  %v1687_v40 = vadd.f32 %v1686_v5, %v1685_v41  ;;  %v1588_v62 = vadd.f32 %v1587_v32, %v1586_v25  ;;  %v1300_v27 = vadd.f32 %v2303_v4, %v3454_v50  ;;  %v1591_v31 = vsel %vm856_vm5, %v1549_v58, 0.0 }
 0x1b3   : > { %v1291_v63 = vpop.f32.mrf.mxu1  ;;  %v1550_v1 = vadd.f32 %v1459_v17, %v1289_v36  ;;  %v1688_v55 = vsel %vm856_vm5, %v1648_v51, 0.0  ;;  %1882 = vst.msk [vmem:[%s3463_s13 + $0x24] sm:$0xf] %vm1872_vm8, %v2099_v23  ;;  %v2104_v10 = vpack.c.bf16 %v1552_v52, %v1552_v52  ;;  %v1692_v42 = vsel %vm856_vm5, %v1650_v61, 0.0 }
 0x1b4   : > { %v2337_v28 = vpop.f32.mrf.mxu0  ;;  %v1590_v16 = vadd.f32 %v1589_v45, %v1588_v62  ;;  %v1689_v43 = vadd.f32 %v1688_v55, %v1687_v40  ;;  %v1292_v20 = vadd.f32 %v1291_v63, %v3456_v29  ;;  %v1653_v53 = vmul.f32 %v1552_v52, %v1552_v52 }
 0x1b5   : > { %v2306_v13 = vpop.f32.mrf.mxu1  ;;  %v1651_v0 = vmul.f32 %v1550_v1, %v1550_v1  ;;  %1887 = vst.msk [vmem:[%s3463_s13 + $0x38] sm:$0xf] %vm1872_vm8, %v2104_v10  ;;  %v2102_v54 = vpack.c.bf16 %v1550_v1, %v1550_v1  ;;  %v1553_v47 = vadd.f32 %v2337_v28, %v1300_v27  ;;  %v1593_v21 = vsel %vm856_vm5, %v1550_v1, 0.0 }
 0x1b6   : > { %v1462_v49 = vpop.f32.mrf.mxu0  ;;  %v1691_v50 = vadd.f32 %v1690_v8, %v1689_v43  ;;  %v1592_v57 = vadd.f32 %v1591_v31, %v1590_v16  ;;  %v1313_v58 = vadd.f32 %v2306_v13, %v3406_v11  ;;  %v1597_v41 = vsel %vm856_vm5, %v1552_v52, 0.0 }
 0x1b7   : > { %v1304_v37 = vpop.f32.mrf.mxu1  ;;  %v1694_v34 = vsel %vm856_vm5, %v1651_v0, 0.0  ;;  %1885 = vst.msk [vmem:[%s3463_s13 + $0x30] sm:$0xf] %vm1872_vm8, %v2102_v54  ;;  %v2105_v3 = vpack.c.bf16 %v1553_v47, %v1553_v47  ;;  %v1551_v56 = vadd.f32 %v1462_v49, %v1292_v20  ;;  %v1654_v48 = vmul.f32 %v1553_v47, %v1553_v47 }
 0x1b8   : > { %v2340_v29 = vpop.f32.mrf.mxu0  ;;  %v1594_v35 = vadd.f32 %v1593_v21, %v1592_v57  ;;  %v1693_v24 = vadd.f32 %v1692_v42, %v1691_v50  ;;  %v1305_v18 = vadd.f32 %v1304_v37, %v3408_v12  ;;  %v1698_v5 = vsel %vm856_vm5, %v1653_v53, 0.0 }
 0x1b9   : > { %v2307_v39 = vpop.f32.mrf.mxu1  ;;  %v1556_v61 = vadd.f32 %v2340_v29, %v1313_v58  ;;  %1888 = vst.msk [vmem:[%s3463_s13 + $0x3c] sm:$0xf] %vm1872_vm8, %v2105_v3  ;;  %v1595_v11 = vsel %vm856_vm5, %v1551_v56, 0.0  ;;  %v1652_v15 = vmul.f32 %v1551_v56, %v1551_v56  ;;  %v2103_v4 = vpack.c.bf16 %v1551_v56, %v1551_v56 }
 0x1ba   : > { %v1475_v25 = vpop.f32.mrf.mxu0  ;;  %v1695_v36 = vadd.f32 %v1694_v34, %v1693_v24  ;;  %v1596_v32 = vadd.f32 %v1595_v11, %v1594_v35  ;;  %v1316_v12 = vadd.f32 %v2307_v39, %v3410_v38  ;;  %v1599_v40 = vsel %vm856_vm5, %v1553_v47, 0.0 }
 0x1bb   : > { %v1307_v59 = vpop.f32.mrf.mxu1  ;;  %v1696_v51 = vsel %vm856_vm5, %v1652_v15, 0.0  ;;  %1886 = vst.msk [vmem:[%s3463_s13 + $0x34] sm:$0xf] %vm1872_vm8, %v2103_v4  ;;  %v2108_v23 = vpack.c.bf16 %v1556_v61, %v1556_v61  ;;  %v1554_v63 = vadd.f32 %v1475_v25, %v1305_v18  ;;  %v1700_v8 = vsel %vm856_vm5, %v1654_v48, 0.0 }
 0x1bc   : > { %v2341_v45 = vpop.f32.mrf.mxu0  ;;  %v1598_v62 = vadd.f32 %v1597_v41, %v1596_v32  ;;  %v1697_v52 = vadd.f32 %v1696_v51, %v1695_v36  ;;  %v1308_v1 = vadd.f32 %v1307_v59, %v3412_v30  ;;  %v1657_v31 = vmul.f32 %v1556_v61, %v1556_v61 }
 0x1bd   : > { %v2310_v17 = vpop.f32.mrf.mxu1  ;;  %1891 = vst.msk [vmem:[%s3463_s13 + $0x48] sm:$0xf] %vm1872_vm8, %v2108_v23  ;;  %v1655_v55 = vmul.f32 %v1554_v63, %v1554_v63  ;;  %v2106_v27 = vpack.c.bf16 %v1554_v63, %v1554_v63  ;;  %v1557_v10 = vadd.f32 %v2341_v45, %v1316_v12  ;;  %v1601_v0 = vsel %vm856_vm5, %v1554_v63, 0.0 }
 0x1be   : > { %v1478_v38 = vpop.f32.mrf.mxu0  ;;  %v1699_v28 = vadd.f32 %v1698_v5, %v1697_v52  ;;  %v1600_v16 = vadd.f32 %v1599_v40, %v1598_v62  ;;  %v1329_v30 = vadd.f32 %v2310_v17, %v3414_v7  ;;  %v1605_v35 = vsel %vm856_vm5, %v1556_v61, 0.0 }
 0x1bf   : > { %v1320_v13 = vpop.f32.mrf.mxu1  ;;  %v1555_v43 = vadd.f32 %v1478_v38, %v1308_v1  ;;  %1889 = vst.msk [vmem:[%s3463_s13 + $0x40] sm:$0xf] %vm1872_vm8, %v2106_v27  ;;  %v2109_v42 = vpack.c.bf16 %v1557_v10, %v1557_v10  ;;  %v1702_v57 = vsel %vm856_vm5, %v1655_v55, 0.0  ;;  %v1658_v58 = vmul.f32 %v1557_v10, %v1557_v10 }
 0x1c0   : > { %v1321_v20 = vadd.f32 %v1320_v13, %v3416_v2  ;;  %v2344_v47 = vpop.f32.mrf.mxu0  ;;  %v1602_v37 = vadd.f32 %v1601_v0, %v1600_v16  ;;  %v1701_v49 = vadd.f32 %v1700_v8, %v1699_v28  ;;  %v1706_v15 = vsel %vm856_vm5, %v1657_v31, 0.0 }
 0x1c1   : > { %v2311_v54 = vpop.f32.mrf.mxu1  ;;  %v1603_v50 = vsel %vm856_vm5, %v1555_v43, 0.0  ;;  %v1656_v53 = vmul.f32 %v1555_v43, %v1555_v43  ;;  %1892 = vst.msk [vmem:[%s3463_s13 + $0x4c] sm:$0xf] %vm1872_vm8, %v2109_v42  ;;  %v2107_v21 = vpack.c.bf16 %v1555_v43, %v1555_v43  ;;  %v1560_v34 = vadd.f32 %v2344_v47, %v1329_v30 }
 0x1c2   : > { %v1491_v7 = vpop.f32.mrf.mxu0  ;;  %v1703_v56 = vadd.f32 %v1702_v57, %v1701_v49  ;;  %v1604_v2 = vadd.f32 %v1603_v50, %v1602_v37  ;;  %v1332_v29 = vadd.f32 %v2311_v54, %v3418_v44  ;;  %v1607_v41 = vsel %vm856_vm5, %v1557_v10, 0.0 }
 0x1c3   : > { %v1323_v3 = vpop.f32.mrf.mxu1  ;;  %v1704_v39 = vsel %vm856_vm5, %v1656_v53, 0.0  ;;  %1890 = vst.msk [vmem:[%s3463_s13 + $0x44] sm:$0xf] %vm1872_vm8, %v2107_v21  ;;  %v2112_v24 = vpack.c.bf16 %v1560_v34, %v1560_v34  ;;  %v1558_v18 = vadd.f32 %v1491_v7, %v1321_v20  ;;  %v1708_v51 = vsel %vm856_vm5, %v1658_v58, 0.0 }
 0x1c4   : > { %v2345_v11 = vpop.f32.mrf.mxu0  ;;  %v1606_v4 = vadd.f32 %v1605_v35, %v1604_v2  ;;  %v1705_v59 = vadd.f32 %v1704_v39, %v1703_v56  ;;  %v1324_v44 = vadd.f32 %v1323_v3, %v3420_v46  ;;  %v1661_v23 = vmul.f32 %v1560_v34, %v1560_v34 }
 0x1c5   : > { %v2314_v48 = vpop.f32.mrf.mxu1  ;;  %v1561_v25 = vadd.f32 %v2345_v11, %v1332_v29  ;;  %1895 = vst.msk [vmem:[%s3463_s13 + $0x58] sm:$0xf] %vm1872_vm8, %v2112_v24  ;;  %v1659_v5 = vmul.f32 %v1558_v18, %v1558_v18  ;;  %v2110_v61 = vpack.c.bf16 %v1558_v18, %v1558_v18  ;;  %v1609_v17 = vsel %vm856_vm5, %v1558_v18, 0.0 }
 0x1c6   : > { %v1494_v32 = vpop.f32.mrf.mxu0  ;;  %v1707_v12 = vadd.f32 %v1706_v15, %v1705_v59  ;;  %v1608_v63 = vadd.f32 %v1607_v41, %v1606_v4  ;;  %v1345_v45 = vadd.f32 %v2314_v48, %v3424_v60  ;;  %v1613_v42 = vsel %vm856_vm5, %v1560_v34, 0.0 }
 0x1c7   : > { %v1336_v36 = vpop.f32.mrf.mxu1  ;;  %1893 = vst.msk [vmem:[%s3463_s13 + $0x50] sm:$0xf] %vm1872_vm8, %v2110_v61  ;;  %v2113_v40 = vpack.c.bf16 %v1561_v25, %v1561_v25  ;;  %v1559_v62 = vadd.f32 %v1494_v32, %v1324_v44  ;;  %v1710_v55 = vsel %vm856_vm5, %v1659_v5, 0.0  ;;  %v1662_v43 = vmul.f32 %v1561_v25, %v1561_v25 }
 0x1c8   : > { %v2348_v46 = vpop.f32.mrf.mxu0  ;;  %v1610_v1 = vadd.f32 %v1609_v17, %v1608_v63  ;;  %v1709_v8 = vadd.f32 %v1708_v51, %v1707_v12  ;;  %v1337_v27 = vadd.f32 %v1336_v36, %v3428_v19  ;;  %v1714_v49 = vsel %vm856_vm5, %v1661_v23, 0.0 }
 0x1c9   : > { %v2315_v52 = vpop.f32.mrf.mxu1  ;;  %1896 = vst.msk [vmem:[%s3463_s13 + $0x5c] sm:$0xf] %vm1872_vm8, %v2113_v40  ;;  %v1611_v10 = vsel %vm856_vm5, %v1559_v62, 0.0  ;;  %v1660_v13 = vmul.f32 %v1559_v62, %v1559_v62  ;;  %v2111_v38 = vpack.c.bf16 %v1559_v62, %v1559_v62  ;;  %v1564_v28 = vadd.f32 %v2348_v46, %v1345_v45 }
 0x1ca   : > { %v1507_v60 = vpop.f32.mrf.mxu0  ;;  %v1711_v16 = vadd.f32 %v1710_v55, %v1709_v8  ;;  %v1612_v0 = vadd.f32 %v1611_v10, %v1610_v1  ;;  %v1348_v19 = vadd.f32 %v2315_v52, %v3432_v33  ;;  %v1615_v58 = vsel %vm856_vm5, %v1561_v25, 0.0 }
 0x1cb   : > { %v1339_v31 = vpop.f32.mrf.mxu1  ;;  %v1562_v30 = vadd.f32 %v1507_v60, %v1337_v27  ;;  %v1712_v20 = vsel %vm856_vm5, %v1660_v13, 0.0  ;;  %1894 = vst.msk [vmem:[%s3463_s13 + $0x54] sm:$0xf] %vm1872_vm8, %v2111_v38  ;;  %v2116_v54 = vpack.c.bf16 %v1564_v28, %v1564_v28  ;;  %v1716_v33 = vsel %vm856_vm5, %v1662_v43, 0.0 }
 0x1cc   : > { %v2349_v37 = vpop.f32.mrf.mxu0  ;;  %v1614_v50 = vadd.f32 %v1613_v42, %v1612_v0  ;;  %v1713_v53 = vadd.f32 %v1712_v20, %v1711_v16  ;;  %v1340_v21 = vadd.f32 %v1339_v31, %v3436_v14  ;;  %v1665_v35 = vmul.f32 %v1564_v28, %v1564_v28 }
 0x1cd   : > { %v2318_v47 = vpop.f32.mrf.mxu1  ;;  %v1663_v57 = vmul.f32 %v1562_v30, %v1562_v30  ;;  %1899 = vst.msk [vmem:[%s3463_s13 + $0x68] sm:$0xf] %vm1872_vm8, %v2116_v54  ;;  %v2114_v34 = vpack.c.bf16 %v1562_v30, %v1562_v30  ;;  %v1565_v3 = vadd.f32 %v2349_v37, %v1348_v19  ;;  %v1617_v24 = vsel %vm856_vm5, %v1562_v30, 0.0 }
 0x1ce   : > { %v1510_v56 = vpop.f32.mrf.mxu0  ;;  %v1715_v2 = vadd.f32 %v1714_v49, %v1713_v53  ;;  %v1616_v39 = vadd.f32 %v1615_v58, %v1614_v50  ;;  %v1361_v29 = vadd.f32 %v2318_v47, %v3440_v22  ;;  %v1621_v36 = vsel %vm856_vm5, %v1564_v28, 0.0 }
 0x1cf   : > { %v1352_v7 = vpop.f32.mrf.mxu1  ;;  %1897 = vst.msk [vmem:[%s3463_s13 + $0x60] sm:$0xf] %vm1872_vm8, %v2114_v34  ;;  %v2117_v18 = vpack.c.bf16 %v1565_v3, %v1565_v3  ;;  %v1563_v48 = vadd.f32 %v1510_v56, %v1340_v21  ;;  %v1718_v59 = vsel %vm856_vm5, %v1663_v57, 0.0  ;;  %v1666_v63 = vmul.f32 %v1565_v3, %v1565_v3 }
 0x1d0   : > { %v2352_v14 = vpop.f32.mrf.mxu0  ;;  %v1618_v15 = vadd.f32 %v1617_v24, %v1616_v39  ;;  %v1717_v4 = vadd.f32 %v1716_v33, %v1715_v2  ;;  %v1353_v41 = vadd.f32 %v1352_v7, %v3442_v9  ;;  %v1722_v62 = vsel %vm856_vm5, %v1665_v35, 0.0 }
 0x1d1   : > { %v2319_v11 = vpop.f32.mrf.mxu1  ;;  %v1568_v25 = vadd.f32 %v2352_v14, %v1361_v29  ;;  %1900 = vst.msk [vmem:[%s3463_s13 + $0x6c] sm:$0xf] %vm1872_vm8, %v2117_v18  ;;  %v1619_v22 = vsel %vm856_vm5, %v1563_v48, 0.0  ;;  %v1664_v44 = vmul.f32 %v1563_v48, %v1563_v48  ;;  %v2115_v5 = vpack.c.bf16 %v1563_v48, %v1563_v48 }
 0x1d2   : > { %v1523_v61 = vpop.f32.mrf.mxu0  ;;  %v1719_v32 = vadd.f32 %v1718_v59, %v1717_v4  ;;  %v1620_v51 = vadd.f32 %v1619_v22, %v1618_v15  ;;  %v1364_v12 = vadd.f32 %v2319_v11, %v3446_v6  ;;  %v1623_v8 = vsel %vm856_vm5, %v1565_v3, 0.0 }
 0x1d3   : > { %v1355_v23 = vpop.f32.mrf.mxu1  ;;  %v1720_v17 = vsel %vm856_vm5, %v1664_v44, 0.0  ;;  %1898 = vst.msk [vmem:[%s3463_s13 + $0x64] sm:$0xf] %vm1872_vm8, %v2115_v5  ;;  %v2120_v45 = vpack.c.bf16 %v1568_v25, %v1568_v25  ;;  %v1566_v9 = vadd.f32 %v1523_v61, %v1353_v41  ;;  %v1724_v28 = vsel %vm856_vm5, %v1666_v63, 0.0 }
 0x1d4   : > { %v2353_v40 = vpop.f32.mrf.mxu0  ;;  %v1622_v52 = vadd.f32 %v1621_v36, %v1620_v51  ;;  %v1721_v46 = vadd.f32 %v1720_v17, %v1719_v32  ;;  %v1356_v6 = vadd.f32 %v1355_v23, %v3450_v26  ;;  %v1669_v43 = vmul.f32 %v1568_v25, %v1568_v25 }
 0x1d5   : > { %v1569_v1 = vadd.f32 %v2353_v40, %v1364_v12  ;;  %1903 = vst.msk [vmem:[%s3463_s13 + $0x78] sm:$0xf] %vm1872_vm8, %v2120_v45  ;;  %v1667_v55 = vmul.f32 %v1566_v9, %v1566_v9  ;;  %v2118_v27 = vpack.c.bf16 %v1566_v9, %v1566_v9  ;;  %v1625_v31 = vsel %vm856_vm5, %v1566_v9, 0.0 }
 0x1d6   : > { %v1526_v10 = vpop.f32.mrf.mxu0  ;;  %v1723_v13 = vadd.f32 %v1722_v62, %v1721_v46  ;;  %v1624_v38 = vadd.f32 %v1623_v8, %v1622_v52  ;;  %v1629_v37 = vsel %vm856_vm5, %v1568_v25, 0.0  ;;  %v1730_v58 = vsel %vm856_vm5, %v1669_v43, 0.0 }
 0x1d7   : > { %1901 = vst.msk [vmem:[%s3463_s13 + $0x70] sm:$0xf] %vm1872_vm8, %v2118_v27  ;;  %v2121_v60 = vpack.c.bf16 %v1569_v1, %v1569_v1  ;;  %v1567_v16 = vadd.f32 %v1526_v10, %v1356_v6  ;;  %v1726_v42 = vsel %vm856_vm5, %v1667_v55, 0.0  ;;  %v1670_v49 = vmul.f32 %v1569_v1, %v1569_v1 }
 0x1d8   : > { %v1626_v0 = vadd.f32 %v1625_v31, %v1624_v38  ;;  %v1725_v30 = vadd.f32 %v1724_v28, %v1723_v13  ;;  %v1631_v21 = vsel %vm856_vm5, %v1569_v1, 0.0 }
 0x1d9   : > { %1904 = vst.msk [vmem:[%s3463_s13 + $0x7c] sm:$0xf] %vm1872_vm8, %v2121_v60  ;;  %v1627_v26 = vsel %vm856_vm5, %v1567_v16, 0.0  ;;  %v1668_v20 = vmul.f32 %v1567_v16, %v1567_v16  ;;  %v2119_v19 = vpack.c.bf16 %v1567_v16, %v1567_v16  ;;  %v1732_v7 = vsel %vm856_vm5, %v1670_v49, 0.0 }
 0x1da   : > { %v1727_v54 = vadd.f32 %v1726_v42, %v1725_v30  ;;  %v1628_v47 = vadd.f32 %v1627_v26, %v1626_v0 }
 0x1db   : > { %v1728_v50 = vsel %vm856_vm5, %v1668_v20, 0.0  ;;  %1902 = vst.msk [vmem:[%s3463_s13 + $0x74] sm:$0xf] %vm1872_vm8, %v2119_v19 }
 0x1dc   : > { %v1630_v53 = vadd.f32 %v1629_v37, %v1628_v47  ;;  %v1729_v57 = vadd.f32 %v1728_v50, %v1727_v54 }
 0x1de   : > { %v1632_v34 = vadd.f32 %v1631_v21, %v1630_v53  ;;  %v1731_v3 = vadd.f32 %v1730_v58, %v1729_v57 }
 0x1e0   : > { %v1633_v56 = vrot.slane %v1632_v34, 4  ;;  %v1733_v33 = vadd.f32 %v1732_v7, %v1731_v3 }
 0x1e2   : > { %v1634_v2 = vadd.f32 %v1633_v56, %v1632_v34  ;;  %v1734_v39 = vrot.slane %v1733_v33, 4 }
 0x1e4   : > { %v1635_v29 = vrot.slane %v1634_v2, 2  ;;  %v1735_v35 = vadd.f32 %v1734_v39, %v1733_v33 }
 0x1e6   : > { %v1636_v24 = vadd.f32 %v1635_v29, %v1634_v2  ;;  %v1736_v18 = vrot.slane %v1735_v35, 2 }
 0x1e8   : > { %v1637_v48 = vrot.slane %v1636_v24, 1  ;;  %v1737_v11 = vadd.f32 %v1736_v18, %v1735_v35 }
 0x1ea   : > { %v1738_v14 = vrot.slane %v1737_v11, 1  ;;  %v1638_v15 = vadd.f32 %v1637_v48, %v1636_v24 }
 0x1ec   : > { %v1739_v4 = vadd.f32 %v1738_v14, %v1737_v11 }
 0x1ee   : > { %v1741_v59 = vsel %vm1740_vm9, %v1638_v15, %v1739_v4 }
 0x1ef   : > { %1743 = vst.msk [vmem:[%s235_s17] sm:$0x3] %vm1742_vm10, %v1741_v59 }
 0x1f0 PF: > { %s16_s18 = sadd.s32 1, %s2545_s18  }
 0x1f1   : > { %p13_p4 = scmp.ge.s32.totalorder %s16_s18, 4  }
 0x1f3   :  { %15 = sbr.rel (!%p13_p4) target bundleno = 1 (0x1), region = 78 }

</bundles_post_ra>
